<compile_context>
chip_gen: v7x
topology: tpu7x:2x2x1
jax: 0.10.0
libtpu: 0.0.40
codegen_flags: <defaults>
</compile_context>

<pallas_src>
import functools

import jax
import jax.numpy as jnp
from jax import lax
from jax.experimental import pallas as pl
from jax.experimental.pallas import tpu as pltpu

H = 128          # lstm_size == embedding_dim
NUM_LAYERS = 3


def _round_up(n, m):
    return ((n + m - 1) // m) * m


def _pick_time_chunk(t, max_tc=32):
    """Largest divisor of t that is <= max_tc (keeps grid exact, no T padding)."""
    tc = 1
    for cand in range(1, min(t, max_tc) + 1):
        if t % cand == 0:
            tc = cand
    return tc


def _pick_div_tile(n, unit, max_tile):
    """Largest multiple of `unit` dividing n, capped at max_tile."""
    best = unit
    cand = unit
    while cand <= min(n, max_tile):
        if n % cand == 0:
            best = cand
        cand += unit
    return best


# ----------------------------------------------------------------------------
# LSTM layer kernel: grid over time-chunks; h/c carried in VMEM scratch.
# Per chunk: one big bf16 GEMM for the input projection (+ bias), then an
# unrolled recurrence doing only h @ W_hh^T + gates_in[t] per step.
# ----------------------------------------------------------------------------
def _lstm_layer_kernel(x_ref, wih_ref, whh_ref, b_ref, h0_ref, c0_ref,
                       y_ref, hN_ref, cN_ref, gi_sc, h_sc, c_sc):
    chunk = pl.program_id(0)
    Tc, Bp, _ = x_ref.shape                     # static block shape

    @pl.when(chunk == 0)
    def _():
        h_sc[...] = h0_ref[...]
        c_sc[...] = c0_ref[...]

    # Hoisted input projection for the whole chunk: (Tc*Bp, H) @ (H, 4H) + b.
    x2d = x_ref[...].reshape(Tc * Bp, H).astype(jnp.bfloat16)
    gi = jnp.dot(x2d, wih_ref[...], preferred_element_type=jnp.float32)
    gi_sc[...] = gi.reshape(Tc, Bp, 4 * H) + b_ref[...]      # bias folded once

    whh = whh_ref[...]                                        # (H, 4H) bf16

    def step(t, carry):
        h, c = carry                                          # f32 (Bp, H)
        g = gi_sc[t] + jnp.dot(h.astype(jnp.bfloat16), whh,
                               preferred_element_type=jnp.float32)
        i_g = jax.nn.sigmoid(g[:, 0 * H:1 * H])
        f_g = jax.nn.sigmoid(g[:, 1 * H:2 * H])
        g_g = jnp.tanh(g[:, 2 * H:3 * H])
        o_g = jax.nn.sigmoid(g[:, 3 * H:4 * H])
        c_new = f_g * c + i_g * g_g
        h_new = o_g * jnp.tanh(c_new)
        y_ref[t] = h_new
        return h_new, c_new

    h_fin, c_fin = lax.fori_loop(0, Tc, step, (h_sc[...], c_sc[...]),
                                 unroll=True)
    h_sc[...] = h_fin
    c_sc[...] = c_fin

    @pl.when(chunk == pl.num_programs(0) - 1)
    def _():
        hN_ref[...] = h_fin
        cN_ref[...] = c_fin


def lstm_layer(x, wih_t, whh_t, b, h0, c0, tc):
    """One LSTM layer over a full sequence. x: (T, Bp, H) f32 -> (y, hN, cN)."""
    T, Bp, _ = x.shape
    n_chunks = T // tc
    G4 = 4 * H
    return pl.pallas_call(
        _lstm_layer_kernel,
        out_shape=(jax.ShapeDtypeStruct((T, Bp, H), jnp.float32),
                   jax.ShapeDtypeStruct((Bp, H), jnp.float32),
                   jax.ShapeDtypeStruct((Bp, H), jnp.float32)),
        grid_spec=pltpu.PrefetchScalarGridSpec(
            num_scalar_prefetch=0,
            grid=(n_chunks,),
            in_specs=[
                pl.BlockSpec((tc, Bp, H), lambda c: (c, 0, 0)),   # x chunk
                pl.BlockSpec((H, G4), lambda c: (0, 0)),          # W_ih^T (bf16)
                pl.BlockSpec((H, G4), lambda c: (0, 0)),          # W_hh^T (bf16)
                pl.BlockSpec((1, G4), lambda c: (0, 0)),          # bias
                pl.BlockSpec((Bp, H), lambda c: (0, 0)),          # h0
                pl.BlockSpec((Bp, H), lambda c: (0, 0)),          # c0
            ],
            out_specs=[
                pl.BlockSpec((tc, Bp, H), lambda c: (c, 0, 0)),   # y chunk
                pl.BlockSpec((Bp, H), lambda c: (0, 0)),          # h_final
                pl.BlockSpec((Bp, H), lambda c: (0, 0)),          # c_final
            ],
            scratch_shapes=[
                pltpu.VMEM((tc, Bp, G4), jnp.float32),            # gates_in chunk
                pltpu.VMEM((Bp, H), jnp.float32),                 # h carry
                pltpu.VMEM((Bp, H), jnp.float32),                 # c carry
            ]),
        compiler_params=pltpu.CompilerParams(
            dimension_semantics=("arbitrary",),                   # recurrent axis
            vmem_limit_bytes=32 * 1024 * 1024),
    )(x, wih_t, whh_t, b, h0, c0)


# ----------------------------------------------------------------------------
# FC (linear) kernel: tiled over (rows, vocab), bf16 matmul, f32 accumulation.
# ----------------------------------------------------------------------------
def _fc_kernel(x_ref, w_ref, b_ref, o_ref):
    o_ref[...] = (jnp.dot(x_ref[...].astype(jnp.bfloat16), w_ref[...],
                          preferred_element_type=jnp.float32) + b_ref[...])


def fc(x2d, w_t, b_row):
    M, _ = x2d.shape
    Vp = w_t.shape[1]
    tile_m = _pick_div_tile(M, 8, 512)
    tile_v = _pick_div_tile(Vp, 128, 2048)
    return pl.pallas_call(
        _fc_kernel,
        out_shape=jax.ShapeDtypeStruct((M, Vp), jnp.float32),
        grid_spec=pltpu.PrefetchScalarGridSpec(
            num_scalar_prefetch=0,
            grid=(M // tile_m, Vp // tile_v),
            in_specs=[
                pl.BlockSpec((tile_m, H), lambda i, j: (i, 0)),
                pl.BlockSpec((H, tile_v), lambda i, j: (0, j)),
                pl.BlockSpec((1, tile_v), lambda i, j: (0, j)),
            ],
            out_specs=pl.BlockSpec((tile_m, tile_v), lambda i, j: (i, j))),
        compiler_params=pltpu.CompilerParams(
            dimension_semantics=("parallel", "parallel"),
            vmem_limit_bytes=32 * 1024 * 1024),
    )(x2d, w_t, b_row)


# ----------------------------------------------------------------------------
# Parameters.
# ----------------------------------------------------------------------------
def init_params(key, n_vocab):
    ks = jax.random.split(key, 2 + 3 * NUM_LAYERS)
    scale = 1.0 / jnp.sqrt(jnp.float32(H))
    v_pad = _round_up(n_vocab, 128)

    fc_w = jax.random.uniform(ks[1], (H, n_vocab), jnp.float32, -scale, scale)
    fc_w_t = (jnp.zeros((H, v_pad), jnp.float32)
              .at[:, :n_vocab].set(fc_w).astype(jnp.bfloat16))

    params = {
        "embedding": jax.random.normal(ks[0], (n_vocab, H), jnp.float32) * 0.02,
        "fc_w_t": fc_w_t,                                 # (H, Vp) bf16, padded
        "fc_b": jnp.zeros((1, v_pad), jnp.float32),       # (1, Vp) f32, padded
        "layers": [],
    }
    for l in range(NUM_LAYERS):
        k1, k2, k3 = ks[2 + 3 * l], ks[3 + 3 * l], ks[4 + 3 * l]
        params["layers"].append({
            "wih_t": jax.random.uniform(k1, (H, 4 * H), jnp.float32,
                                        -scale, scale).astype(jnp.bfloat16),
            "whh_t": jax.random.uniform(k2, (H, 4 * H), jnp.float32,
                                        -scale, scale).astype(jnp.bfloat16),
            # combined b_ih + b_hh, kept f32
            "b": jax.random.uniform(k3, (1, 4 * H), jnp.float32, -scale, scale),
        })
    return params


# ----------------------------------------------------------------------------
# Full model forward.
# ----------------------------------------------------------------------------
@jax.jit
def lstm_forward(params, x_ids, prev_state):
    """x_ids: (T, B) int32; prev_state: (h0, c0) each (NUM_LAYERS, B, H)."""
    h0_all, c0_all = prev_state
    T, B = x_ids.shape
    n_vocab = params["embedding"].shape[0]

    # Embedding lookup (gather) -- glue, not the hot path.
    emb = jnp.take(params["embedding"], x_ids, axis=0)        # (T, B, H) f32

    # Pad batch to >= 8 sublanes.
    Bp = max(8, _round_up(B, 8))
    pad_b = Bp - B
    if pad_b:
        emb = jnp.pad(emb, ((0, 0), (0, pad_b), (0, 0)))
        h0_all = jnp.pad(h0_all, ((0, 0), (0, pad_b), (0, 0)))
        c0_all = jnp.pad(c0_all, ((0, 0), (0, pad_b), (0, 0)))

    tc = _pick_time_chunk(T)

    layer_in = emb
    hN, cN = [], []
    for l in range(NUM_LAYERS):
        p = params["layers"][l]
        # TODO(synk): inter-layer dropout (p=0.2) skipped -- eval semantics.
        y, h_l, c_l = lstm_layer(layer_in, p["wih_t"], p["whh_t"], p["b"],
                                 h0_all[l], c0_all[l], tc)
        layer_in = y
        hN.append(h_l)
        cN.append(c_l)

    M = T * Bp
    Vp = params["fc_w_t"].shape[1]
    logits_p = fc(layer_in.reshape(M, H), params["fc_w_t"], params["fc_b"])
    logits = logits_p.reshape(T, Bp, Vp)[:, :B, :n_vocab]
    h_out = jnp.stack(hN, 0)[:, :B]
    c_out = jnp.stack(cN, 0)[:, :B]
    return logits, (h_out, c_out)


# ----------------------------------------------------------------------------
# Pure-JAX reference (mirrors the bf16-at-matmul / f32-accumulate pattern).
# ----------------------------------------------------------------------------
def lstm_forward_ref(params, x_ids, prev_state):
    h0_all, c0_all = prev_state
    n_vocab = params["embedding"].shape[0]
    emb = jnp.take(params["embedding"], x_ids, axis=0)
    layer_in = emb
    hN, cN = [], []
    for l in range(NUM_LAYERS):
        p = params["layers"][l]
        h, c = h0_all[l], c0_all[l]
        ys = []
        for t in range(layer_in.shape[0]):
            g = (jnp.dot(layer_in[t].astype(jnp.bfloat16), p["wih_t"],
                         preferred_element_type=jnp.float32)
                 + jnp.dot(h.astype(jnp.bfloat16), p["whh_t"],
                           preferred_element_type=jnp.float32)
                 + p["b"])
            i_g = jax.nn.sigmoid(g[:, 0 * H:1 * H])
            f_g = jax.nn.sigmoid(g[:, 1 * H:2 * H])
            g_g = jnp.tanh(g[:, 2 * H:3 * H])
            o_g = jax.nn.sigmoid(g[:, 3 * H:4 * H])
            c = f_g * c + i_g * g_g
            h = o_g * jnp.tanh(c)
            ys.append(h)
        layer_in = jnp.stack(ys, 0)
        hN.append(h)
        cN.append(c)
    T, B, _ = layer_in.shape
    logits = (jnp.dot(layer_in.reshape(T * B, H).astype(jnp.bfloat16),
                      params["fc_w_t"][:, :n_vocab],
                      preferred_element_type=jnp.float32)
              + params["fc_b"][:, :n_vocab]).reshape(T, B, n_vocab)
    return logits, (jnp.stack(hN, 0), jnp.stack(cN, 0))


if __name__ == "__main__":
    T, B = 8, 2
    N_VOCAB = 50

    key = jax.random.PRNGKey(0)
    k_param, k_ids = jax.random.split(key)
    params = init_params(k_param, N_VOCAB)

    x_ids = jax.random.randint(k_ids, (T, B), 0, N_VOCAB, dtype=jnp.int32)
    # init_state: zeros of shape (num_layers, batch, hidden)
    prev_state = (jnp.zeros((NUM_LAYERS, B, H), jnp.float32),
                  jnp.zeros((NUM_LAYERS, B, H), jnp.float32))

    logits, (h_out, c_out) = lstm_forward(params, x_ids, prev_state)
    jax.block_until_ready((logits, h_out, c_out))

    # Sanity check against the pure-JAX reference.
    ref_logits, (ref_h, ref_c) = lstm_forward_ref(params, x_ids, prev_state)
    assert logits.shape == (T, B, N_VOCAB)
    assert h_out.shape == (NUM_LAYERS, B, H) and c_out.shape == (NUM_LAYERS, B, H)
    assert jnp.allclose(logits, ref_logits, rtol=1e-2, atol=1e-2)
    assert jnp.allclose(h_out, ref_h, rtol=1e-2, atol=1e-2)
    assert jnp.allclose(c_out, ref_c, rtol=1e-2, atol=1e-2)

    print("KERNEL_OK")
</pallas_src>

<mosaic_0001>
module attributes {stable_mosaic.version = 11 : i64} {
  func.func @_fc_kernel(%arg0: i32, %arg1: i32, %arg2: memref<64x128xf32, #tpu.memory_space<vmem>>, %arg3: memref<128x128xbf16, #tpu.memory_space<vmem>>, %arg4: memref<1x128xf32, #tpu.memory_space<vmem>>, %arg5: memref<64x128xf32, #tpu.memory_space<vmem>>) attributes {dimension_semantics = [#tpu.dimension_semantics<parallel>, #tpu.dimension_semantics<parallel>], iteration_bounds = array<i64: 1, 1>, scalar_prefetch = 0 : i64, scratch_operands = 0 : i64, tpu.core_type = #tpu.core_type<tc>, window_params = [{transform_indices = @transform_0, window_bounds = array<i64: 64, 128>}, {transform_indices = @transform_1, window_bounds = array<i64: 128, 128>}, {transform_indices = @transform_2, window_bounds = array<i64: 1, 128>}, {transform_indices = @transform_3, window_bounds = array<i64: 64, 128>}]} {
    %c0 = arith.constant 0 : index
    %c0_0 = arith.constant 0 : index
    %0 = vector.load %arg2[%c0, %c0_0] : memref<64x128xf32, #tpu.memory_space<vmem>>, vector<64x128xf32>
    %1 = arith.truncf %0 : vector<64x128xf32> to vector<64x128xbf16>
    %c0_1 = arith.constant 0 : index
    %c0_2 = arith.constant 0 : index
    %2 = vector.load %arg3[%c0_1, %c0_2] : memref<128x128xbf16, #tpu.memory_space<vmem>>, vector<128x128xbf16>
    %cst = arith.constant dense<0.000000e+00> : vector<64x128xf32>
    %3 = tpu.matmul %1, %2, %cst {dimension_numbers = #tpu.dot_dimension_numbers<[1], [0], [0], [1], [0, 0, 1, 1], [], []>} : vector<64x128xbf16>, vector<128x128xbf16>, vector<64x128xf32> -> vector<64x128xf32>
    %c0_3 = arith.constant 0 : index
    %c0_4 = arith.constant 0 : index
    %4 = vector.load %arg4[%c0_3, %c0_4] : memref<1x128xf32, #tpu.memory_space<vmem>>, vector<1x128xf32>
    %5 = vector.broadcast %4 : vector<1x128xf32> to vector<64x128xf32>
    %6 = arith.addf %3, %5 : vector<64x128xf32>
    %c0_5 = arith.constant 0 : index
    %c0_6 = arith.constant 0 : index
    %7 = vector.load %arg5[%c0_5, %c0_6] : memref<64x128xf32, #tpu.memory_space<vmem>>, vector<64x128xf32>
    tpu.vector_store %arg5[%c0_5, %c0_6], %6 {strides = array<i32>} : memref<64x128xf32, #tpu.memory_space<vmem>>, vector<64x128xf32>,
    return
  }
  func.func @transform_0(%arg0: i32, %arg1: i32) -> (i32, i32) {
    %c0_i32 = arith.constant 0 : i32
    %c0_i32_0 = arith.constant 0 : i32
    return %arg0, %c0_i32 : i32, i32
  }
  func.func @transform_1(%arg0: i32, %arg1: i32) -> (i32, i32) {
    %c0_i32 = arith.constant 0 : i32
    %c0_i32_0 = arith.constant 0 : i32
    return %c0_i32, %arg1 : i32, i32
  }
  func.func @transform_2(%arg0: i32, %arg1: i32) -> (i32, i32) {
    %c0_i32 = arith.constant 0 : i32
    %c0_i32_0 = arith.constant 0 : i32
    return %c0_i32, %arg1 : i32, i32
  }
  func.func @transform_3(%arg0: i32, %arg1: i32) -> (i32, i32) {
    %c0_i32 = arith.constant 0 : i32
    return %arg0, %arg1 : i32, i32
  }
}

module attributes {stable_mosaic.version = 11 : i64} {
  func.func @_lstm_layer_kernel(%arg0: i32, %arg1: memref<8x8x128xf32, #tpu.memory_space<vmem>>, %arg2: memref<128x512xbf16, #tpu.memory_space<vmem>>, %arg3: memref<128x512xbf16, #tpu.memory_space<vmem>>, %arg4: memref<1x512xf32, #tpu.memory_space<vmem>>, %arg5: memref<8x128xf32, #tpu.memory_space<vmem>>, %arg6: memref<8x128xf32, #tpu.memory_space<vmem>>, %arg7: memref<8x8x128xf32, #tpu.memory_space<vmem>>, %arg8: memref<8x128xf32, #tpu.memory_space<vmem>>, %arg9: memref<8x128xf32, #tpu.memory_space<vmem>>, %arg10: memref<8x8x512xf32, #tpu.memory_space<vmem>>, %arg11: memref<8x128xf32, #tpu.memory_space<vmem>>, %arg12: memref<8x128xf32, #tpu.memory_space<vmem>>) attributes {dimension_semantics = [#tpu.dimension_semantics<arbitrary>], iteration_bounds = array<i64: 1>, scalar_prefetch = 0 : i64, scratch_operands = 3 : i64, tpu.core_type = #tpu.core_type<tc>, window_params = [{transform_indices = @transform_0, window_bounds = array<i64: 8, 8, 128>}, {pipeline_mode = #tpu.pipeline_mode<synchronous>, transform_indices = @transform_1, window_bounds = array<i64: 128, 512>}, {pipeline_mode = #tpu.pipeline_mode<synchronous>, transform_indices = @transform_2, window_bounds = array<i64: 128, 512>}, {pipeline_mode = #tpu.pipeline_mode<synchronous>, transform_indices = @transform_3, window_bounds = array<i64: 1, 512>}, {pipeline_mode = #tpu.pipeline_mode<synchronous>, transform_indices = @transform_4, window_bounds = array<i64: 8, 128>}, {pipeline_mode = #tpu.pipeline_mode<synchronous>, transform_indices = @transform_5, window_bounds = array<i64: 8, 128>}, {transform_indices = @transform_6, window_bounds = array<i64: 8, 8, 128>}, {pipeline_mode = #tpu.pipeline_mode<synchronous>, transform_indices = @transform_7, window_bounds = array<i64: 8, 128>}, {pipeline_mode = #tpu.pipeline_mode<synchronous>, transform_indices = @transform_8, window_bounds = array<i64: 8, 128>}]} {
    %c0_i32 = arith.constant 0 : i32
    %0 = arith.cmpi eq, %arg0, %c0_i32 : i32
    %1 = arith.extui %0 : i1 to i32
    %c0_i32_0 = arith.constant 0 : i32
    %2 = arith.cmpi ne, %1, %c0_i32_0 : i32
    scf.if %2 {
      %c0_87 = arith.constant 0 : index
      %c0_88 = arith.constant 0 : index
      %302 = vector.load %arg5[%c0_87, %c0_88] : memref<8x128xf32, #tpu.memory_space<vmem>>, vector<8x128xf32>
      %c0_89 = arith.constant 0 : index
      %c0_90 = arith.constant 0 : index
      %303 = vector.load %arg11[%c0_89, %c0_90] : memref<8x128xf32, #tpu.memory_space<vmem>>, vector<8x128xf32>
      tpu.vector_store %arg11[%c0_89, %c0_90], %302 {strides = array<i32>} : memref<8x128xf32, #tpu.memory_space<vmem>>, vector<8x128xf32>,
      %c0_91 = arith.constant 0 : index
      %c0_92 = arith.constant 0 : index
      %304 = vector.load %arg6[%c0_91, %c0_92] : memref<8x128xf32, #tpu.memory_space<vmem>>, vector<8x128xf32>
      %c0_93 = arith.constant 0 : index
      %c0_94 = arith.constant 0 : index
      %305 = vector.load %arg12[%c0_93, %c0_94] : memref<8x128xf32, #tpu.memory_space<vmem>>, vector<8x128xf32>
      tpu.vector_store %arg12[%c0_93, %c0_94], %304 {strides = array<i32>} : memref<8x128xf32, #tpu.memory_space<vmem>>, vector<8x128xf32>,
    } else {
    }
    %c0 = arith.constant 0 : index
    %c0_1 = arith.constant 0 : index
    %c0_2 = arith.constant 0 : index
    %3 = vector.load %arg1[%c0, %c0_1, %c0_2] : memref<8x8x128xf32, #tpu.memory_space<vmem>>, vector<8x8x128xf32>
    %4 = vector.shape_cast %3 : vector<8x8x128xf32> to vector<64x128xf32>
    %5 = arith.truncf %4 : vector<64x128xf32> to vector<64x128xbf16>
    %c0_3 = arith.constant 0 : index
    %c0_4 = arith.constant 0 : index
    %6 = vector.load %arg2[%c0_3, %c0_4] : memref<128x512xbf16, #tpu.memory_space<vmem>>, vector<128x512xbf16>
    %cst = arith.constant dense<0.000000e+00> : vector<64x512xf32>
    %7 = tpu.matmul %5, %6, %cst {dimension_numbers = #tpu.dot_dimension_numbers<[1], [0], [0], [1], [0, 0, 1, 1], [], []>} : vector<64x128xbf16>, vector<128x512xbf16>, vector<64x512xf32> -> vector<64x512xf32>
    %8 = vector.shape_cast %7 : vector<64x512xf32> to vector<8x8x512xf32>
    %c0_5 = arith.constant 0 : index
    %c0_6 = arith.constant 0 : index
    %9 = vector.load %arg4[%c0_5, %c0_6] : memref<1x512xf32, #tpu.memory_space<vmem>>, vector<1x512xf32>
    %10 = vector.shape_cast %9 : vector<1x512xf32> to vector<1x1x512xf32>
    %11 = vector.broadcast %10 : vector<1x1x512xf32> to vector<8x8x512xf32>
    %12 = arith.addf %8, %11 : vector<8x8x512xf32>
    %c0_7 = arith.constant 0 : index
    %c0_8 = arith.constant 0 : index
    %c0_9 = arith.constant 0 : index
    %13 = vector.load %arg10[%c0_7, %c0_8, %c0_9] : memref<8x8x512xf32, #tpu.memory_space<vmem>>, vector<8x8x512xf32>
    tpu.vector_store %arg10[%c0_7, %c0_8, %c0_9], %12 {strides = array<i32>} : memref<8x8x512xf32, #tpu.memory_space<vmem>>, vector<8x8x512xf32>,
    %c0_10 = arith.constant 0 : index
    %c0_11 = arith.constant 0 : index
    %14 = vector.load %arg3[%c0_10, %c0_11] : memref<128x512xbf16, #tpu.memory_space<vmem>>, vector<128x512xbf16>
    %c0_12 = arith.constant 0 : index
    %c0_13 = arith.constant 0 : index
    %15 = vector.load %arg11[%c0_12, %c0_13] : memref<8x128xf32, #tpu.memory_space<vmem>>, vector<8x128xf32>
    %c0_14 = arith.constant 0 : index
    %c0_15 = arith.constant 0 : index
    %16 = vector.load %arg12[%c0_14, %c0_15] : memref<8x128xf32, #tpu.memory_space<vmem>>, vector<8x128xf32>
    %c0_i32_16 = arith.constant 0 : i32
    %17 = arith.index_cast %c0_i32_16 : i32 to index
    %c0_17 = arith.constant 0 : index
    %c0_18 = arith.constant 0 : index
    %18 = vector.load %arg10[%17, %c0_17, %c0_18] : memref<8x8x512xf32, #tpu.memory_space<vmem>>, vector<1x8x512xf32>
    %19 = vector.shape_cast %18 : vector<1x8x512xf32> to vector<8x512xf32>
    %20 = arith.truncf %15 : vector<8x128xf32> to vector<8x128xbf16>
    %cst_19 = arith.constant dense<0.000000e+00> : vector<8x512xf32>
    %21 = tpu.matmul %20, %14, %cst_19 {dimension_numbers = #tpu.dot_dimension_numbers<[1], [0], [0], [1], [0, 0, 1, 1], [], []>} : vector<8x128xbf16>, vector<128x512xbf16>, vector<8x512xf32> -> vector<8x512xf32>
    %22 = arith.addf %19, %21 : vector<8x512xf32>
    %23 = vector.extract_strided_slice %22 {offsets = [0, 0], sizes = [8, 128], strides = [1, 1]} : vector<8x512xf32> to vector<8x128xf32>
    %24 = arith.negf %23 : vector<8x128xf32>
    %25 = math.exp %24 : vector<8x128xf32>
    %cst_20 = arith.constant 1.000000e+00 : f32
    %26 = vector.broadcast %cst_20 : f32 to vector<8x128xf32>
    %27 = arith.addf %26, %25 : vector<8x128xf32>
    %28 = arith.divf %26, %27 : vector<8x128xf32>
    %29 = vector.extract_strided_slice %22 {offsets = [0, 128], sizes = [8, 128], strides = [1, 1]} : vector<8x512xf32> to vector<8x128xf32>
    %30 = arith.negf %29 : vector<8x128xf32>
    %31 = math.exp %30 : vector<8x128xf32>
    %cst_21 = arith.constant 1.000000e+00 : f32
    %32 = vector.broadcast %cst_21 : f32 to vector<8x128xf32>
    %33 = arith.addf %32, %31 : vector<8x128xf32>
    %34 = arith.divf %32, %33 : vector<8x128xf32>
    %35 = vector.extract_strided_slice %22 {offsets = [0, 256], sizes = [8, 128], strides = [1, 1]} : vector<8x512xf32> to vector<8x128xf32>
    %36 = math.tanh %35 : vector<8x128xf32>
    %37 = vector.extract_strided_slice %22 {offsets = [0, 384], sizes = [8, 128], strides = [1, 1]} : vector<8x512xf32> to vector<8x128xf32>
    %38 = arith.negf %37 : vector<8x128xf32>
    %39 = math.exp %38 : vector<8x128xf32>
    %cst_22 = arith.constant 1.000000e+00 : f32
    %40 = vector.broadcast %cst_22 : f32 to vector<8x128xf32>
    %41 = arith.addf %40, %39 : vector<8x128xf32>
    %42 = arith.divf %40, %41 : vector<8x128xf32>
    %43 = arith.mulf %34, %16 : vector<8x128xf32>
    %44 = arith.mulf %28, %36 : vector<8x128xf32>
    %45 = arith.addf %43, %44 : vector<8x128xf32>
    %46 = math.tanh %45 : vector<8x128xf32>
    %47 = arith.mulf %42, %46 : vector<8x128xf32>
    %48 = arith.index_cast %c0_i32_16 : i32 to index
    %c0_23 = arith.constant 0 : index
    %c0_24 = arith.constant 0 : index
    %49 = vector.load %arg7[%48, %c0_23, %c0_24] : memref<8x8x128xf32, #tpu.memory_space<vmem>>, vector<1x8x128xf32>
    %50 = vector.shape_cast %49 : vector<1x8x128xf32> to vector<8x128xf32>
    %51 = vector.shape_cast %47 : vector<8x128xf32> to vector<1x8x128xf32>
    tpu.vector_store %arg7[%48, %c0_23, %c0_24], %51 {strides = array<i32>} : memref<8x8x128xf32, #tpu.memory_space<vmem>>, vector<1x8x128xf32>,
    %c1_i32 = arith.constant 1 : i32
    %52 = arith.index_cast %c1_i32 : i32 to index
    %c0_25 = arith.constant 0 : index
    %c0_26 = arith.constant 0 : index
    %53 = vector.load %arg10[%52, %c0_25, %c0_26] : memref<8x8x512xf32, #tpu.memory_space<vmem>>, vector<1x8x512xf32>
    %54 = vector.shape_cast %53 : vector<1x8x512xf32> to vector<8x512xf32>
    %55 = arith.truncf %47 : vector<8x128xf32> to vector<8x128xbf16>
    %cst_27 = arith.constant dense<0.000000e+00> : vector<8x512xf32>
    %56 = tpu.matmul %55, %14, %cst_27 {dimension_numbers = #tpu.dot_dimension_numbers<[1], [0], [0], [1], [0, 0, 1, 1], [], []>} : vector<8x128xbf16>, vector<128x512xbf16>, vector<8x512xf32> -> vector<8x512xf32>
    %57 = arith.addf %54, %56 : vector<8x512xf32>
    %58 = vector.extract_strided_slice %57 {offsets = [0, 0], sizes = [8, 128], strides = [1, 1]} : vector<8x512xf32> to vector<8x128xf32>
    %59 = arith.negf %58 : vector<8x128xf32>
    %60 = math.exp %59 : vector<8x128xf32>
    %cst_28 = arith.constant 1.000000e+00 : f32
    %61 = vector.broadcast %cst_28 : f32 to vector<8x128xf32>
    %62 = arith.addf %61, %60 : vector<8x128xf32>
    %63 = arith.divf %61, %62 : vector<8x128xf32>
    %64 = vector.extract_strided_slice %57 {offsets = [0, 128], sizes = [8, 128], strides = [1, 1]} : vector<8x512xf32> to vector<8x128xf32>
    %65 = arith.negf %64 : vector<8x128xf32>
    %66 = math.exp %65 : vector<8x128xf32>
    %cst_29 = arith.constant 1.000000e+00 : f32
    %67 = vector.broadcast %cst_29 : f32 to vector<8x128xf32>
    %68 = arith.addf %67, %66 : vector<8x128xf32>
    %69 = arith.divf %67, %68 : vector<8x128xf32>
    %70 = vector.extract_strided_slice %57 {offsets = [0, 256], sizes = [8, 128], strides = [1, 1]} : vector<8x512xf32> to vector<8x128xf32>
    %71 = math.tanh %70 : vector<8x128xf32>
    %72 = vector.extract_strided_slice %57 {offsets = [0, 384], sizes = [8, 128], strides = [1, 1]} : vector<8x512xf32> to vector<8x128xf32>
    %73 = arith.negf %72 : vector<8x128xf32>
    %74 = math.exp %73 : vector<8x128xf32>
    %cst_30 = arith.constant 1.000000e+00 : f32
    %75 = vector.broadcast %cst_30 : f32 to vector<8x128xf32>
    %76 = arith.addf %75, %74 : vector<8x128xf32>
    %77 = arith.divf %75, %76 : vector<8x128xf32>
    %78 = arith.mulf %69, %45 : vector<8x128xf32>
    %79 = arith.mulf %63, %71 : vector<8x128xf32>
    %80 = arith.addf %78, %79 : vector<8x128xf32>
    %81 = math.tanh %80 : vector<8x128xf32>
    %82 = arith.mulf %77, %81 : vector<8x128xf32>
    %83 = arith.index_cast %c1_i32 : i32 to index
    %c0_31 = arith.constant 0 : index
    %c0_32 = arith.constant 0 : index
    %84 = vector.load %arg7[%83, %c0_31, %c0_32] : memref<8x8x128xf32, #tpu.memory_space<vmem>>, vector<1x8x128xf32>
    %85 = vector.shape_cast %84 : vector<1x8x128xf32> to vector<8x128xf32>
    %86 = vector.shape_cast %82 : vector<8x128xf32> to vector<1x8x128xf32>
    tpu.vector_store %arg7[%83, %c0_31, %c0_32], %86 {strides = array<i32>} : memref<8x8x128xf32, #tpu.memory_space<vmem>>, vector<1x8x128xf32>,
    %c2_i32 = arith.constant 2 : i32
    %87 = arith.index_cast %c2_i32 : i32 to index
    %c0_33 = arith.constant 0 : index
    %c0_34 = arith.constant 0 : index
    %88 = vector.load %arg10[%87, %c0_33, %c0_34] : memref<8x8x512xf32, #tpu.memory_space<vmem>>, vector<1x8x512xf32>
    %89 = vector.shape_cast %88 : vector<1x8x512xf32> to vector<8x512xf32>
    %90 = arith.truncf %82 : vector<8x128xf32> to vector<8x128xbf16>
    %cst_35 = arith.constant dense<0.000000e+00> : vector<8x512xf32>
    %91 = tpu.matmul %90, %14, %cst_35 {dimension_numbers = #tpu.dot_dimension_numbers<[1], [0], [0], [1], [0, 0, 1, 1], [], []>} : vector<8x128xbf16>, vector<128x512xbf16>, vector<8x512xf32> -> vector<8x512xf32>
    %92 = arith.addf %89, %91 : vector<8x512xf32>
    %93 = vector.extract_strided_slice %92 {offsets = [0, 0], sizes = [8, 128], strides = [1, 1]} : vector<8x512xf32> to vector<8x128xf32>
    %94 = arith.negf %93 : vector<8x128xf32>
    %95 = math.exp %94 : vector<8x128xf32>
    %cst_36 = arith.constant 1.000000e+00 : f32
    %96 = vector.broadcast %cst_36 : f32 to vector<8x128xf32>
    %97 = arith.addf %96, %95 : vector<8x128xf32>
    %98 = arith.divf %96, %97 : vector<8x128xf32>
    %99 = vector.extract_strided_slice %92 {offsets = [0, 128], sizes = [8, 128], strides = [1, 1]} : vector<8x512xf32> to vector<8x128xf32>
    %100 = arith.negf %99 : vector<8x128xf32>
    %101 = math.exp %100 : vector<8x128xf32>
    %cst_37 = arith.constant 1.000000e+00 : f32
    %102 = vector.broadcast %cst_37 : f32 to vector<8x128xf32>
    %103 = arith.addf %102, %101 : vector<8x128xf32>
    %104 = arith.divf %102, %103 : vector<8x128xf32>
    %105 = vector.extract_strided_slice %92 {offsets = [0, 256], sizes = [8, 128], strides = [1, 1]} : vector<8x512xf32> to vector<8x128xf32>
    %106 = math.tanh %105 : vector<8x128xf32>
    %107 = vector.extract_strided_slice %92 {offsets = [0, 384], sizes = [8, 128], strides = [1, 1]} : vector<8x512xf32> to vector<8x128xf32>
    %108 = arith.negf %107 : vector<8x128xf32>
    %109 = math.exp %108 : vector<8x128xf32>
    %cst_38 = arith.constant 1.000000e+00 : f32
    %110 = vector.broadcast %cst_38 : f32 to vector<8x128xf32>
    %111 = arith.addf %110, %109 : vector<8x128xf32>
    %112 = arith.divf %110, %111 : vector<8x128xf32>
    %113 = arith.mulf %104, %80 : vector<8x128xf32>
    %114 = arith.mulf %98, %106 : vector<8x128xf32>
    %115 = arith.addf %113, %114 : vector<8x128xf32>
    %116 = math.tanh %115 : vector<8x128xf32>
    %117 = arith.mulf %112, %116 : vector<8x128xf32>
    %118 = arith.index_cast %c2_i32 : i32 to index
    %c0_39 = arith.constant 0 : index
    %c0_40 = arith.constant 0 : index
    %119 = vector.load %arg7[%118, %c0_39, %c0_40] : memref<8x8x128xf32, #tpu.memory_space<vmem>>, vector<1x8x128xf32>
    %120 = vector.shape_cast %119 : vector<1x8x128xf32> to vector<8x128xf32>
    %121 = vector.shape_cast %117 : vector<8x128xf32> to vector<1x8x128xf32>
    tpu.vector_store %arg7[%118, %c0_39, %c0_40], %121 {strides = array<i32>} : memref<8x8x128xf32, #tpu.memory_space<vmem>>, vector<1x8x128xf32>,
    %c3_i32 = arith.constant 3 : i32
    %122 = arith.index_cast %c3_i32 : i32 to index
    %c0_41 = arith.constant 0 : index
    %c0_42 = arith.constant 0 : index
    %123 = vector.load %arg10[%122, %c0_41, %c0_42] : memref<8x8x512xf32, #tpu.memory_space<vmem>>, vector<1x8x512xf32>
    %124 = vector.shape_cast %123 : vector<1x8x512xf32> to vector<8x512xf32>
    %125 = arith.truncf %117 : vector<8x128xf32> to vector<8x128xbf16>
    %cst_43 = arith.constant dense<0.000000e+00> : vector<8x512xf32>
    %126 = tpu.matmul %125, %14, %cst_43 {dimension_numbers = #tpu.dot_dimension_numbers<[1], [0], [0], [1], [0, 0, 1, 1], [], []>} : vector<8x128xbf16>, vector<128x512xbf16>, vector<8x512xf32> -> vector<8x512xf32>
    %127 = arith.addf %124, %126 : vector<8x512xf32>
    %128 = vector.extract_strided_slice %127 {offsets = [0, 0], sizes = [8, 128], strides = [1, 1]} : vector<8x512xf32> to vector<8x128xf32>
    %129 = arith.negf %128 : vector<8x128xf32>
    %130 = math.exp %129 : vector<8x128xf32>
    %cst_44 = arith.constant 1.000000e+00 : f32
    %131 = vector.broadcast %cst_44 : f32 to vector<8x128xf32>
    %132 = arith.addf %131, %130 : vector<8x128xf32>
    %133 = arith.divf %131, %132 : vector<8x128xf32>
    %134 = vector.extract_strided_slice %127 {offsets = [0, 128], sizes = [8, 128], strides = [1, 1]} : vector<8x512xf32> to vector<8x128xf32>
    %135 = arith.negf %134 : vector<8x128xf32>
    %136 = math.exp %135 : vector<8x128xf32>
    %cst_45 = arith.constant 1.000000e+00 : f32
    %137 = vector.broadcast %cst_45 : f32 to vector<8x128xf32>
    %138 = arith.addf %137, %136 : vector<8x128xf32>
    %139 = arith.divf %137, %138 : vector<8x128xf32>
    %140 = vector.extract_strided_slice %127 {offsets = [0, 256], sizes = [8, 128], strides = [1, 1]} : vector<8x512xf32> to vector<8x128xf32>
    %141 = math.tanh %140 : vector<8x128xf32>
    %142 = vector.extract_strided_slice %127 {offsets = [0, 384], sizes = [8, 128], strides = [1, 1]} : vector<8x512xf32> to vector<8x128xf32>
    %143 = arith.negf %142 : vector<8x128xf32>
    %144 = math.exp %143 : vector<8x128xf32>
    %cst_46 = arith.constant 1.000000e+00 : f32
    %145 = vector.broadcast %cst_46 : f32 to vector<8x128xf32>
    %146 = arith.addf %145, %144 : vector<8x128xf32>
    %147 = arith.divf %145, %146 : vector<8x128xf32>
    %148 = arith.mulf %139, %115 : vector<8x128xf32>
    %149 = arith.mulf %133, %141 : vector<8x128xf32>
    %150 = arith.addf %148, %149 : vector<8x128xf32>
    %151 = math.tanh %150 : vector<8x128xf32>
    %152 = arith.mulf %147, %151 : vector<8x128xf32>
    %153 = arith.index_cast %c3_i32 : i32 to index
    %c0_47 = arith.constant 0 : index
    %c0_48 = arith.constant 0 : index
    %154 = vector.load %arg7[%153, %c0_47, %c0_48] : memref<8x8x128xf32, #tpu.memory_space<vmem>>, vector<1x8x128xf32>
    %155 = vector.shape_cast %154 : vector<1x8x128xf32> to vector<8x128xf32>
    %156 = vector.shape_cast %152 : vector<8x128xf32> to vector<1x8x128xf32>
    tpu.vector_store %arg7[%153, %c0_47, %c0_48], %156 {strides = array<i32>} : memref<8x8x128xf32, #tpu.memory_space<vmem>>, vector<1x8x128xf32>,
    %c4_i32 = arith.constant 4 : i32
    %157 = arith.index_cast %c4_i32 : i32 to index
    %c0_49 = arith.constant 0 : index
    %c0_50 = arith.constant 0 : index
    %158 = vector.load %arg10[%157, %c0_49, %c0_50] : memref<8x8x512xf32, #tpu.memory_space<vmem>>, vector<1x8x512xf32>
    %159 = vector.shape_cast %158 : vector<1x8x512xf32> to vector<8x512xf32>
    %160 = arith.truncf %152 : vector<8x128xf32> to vector<8x128xbf16>
    %cst_51 = arith.constant dense<0.000000e+00> : vector<8x512xf32>
    %161 = tpu.matmul %160, %14, %cst_51 {dimension_numbers = #tpu.dot_dimension_numbers<[1], [0], [0], [1], [0, 0, 1, 1], [], []>} : vector<8x128xbf16>, vector<128x512xbf16>, vector<8x512xf32> -> vector<8x512xf32>
    %162 = arith.addf %159, %161 : vector<8x512xf32>
    %163 = vector.extract_strided_slice %162 {offsets = [0, 0], sizes = [8, 128], strides = [1, 1]} : vector<8x512xf32> to vector<8x128xf32>
    %164 = arith.negf %163 : vector<8x128xf32>
    %165 = math.exp %164 : vector<8x128xf32>
    %cst_52 = arith.constant 1.000000e+00 : f32
    %166 = vector.broadcast %cst_52 : f32 to vector<8x128xf32>
    %167 = arith.addf %166, %165 : vector<8x128xf32>
    %168 = arith.divf %166, %167 : vector<8x128xf32>
    %169 = vector.extract_strided_slice %162 {offsets = [0, 128], sizes = [8, 128], strides = [1, 1]} : vector<8x512xf32> to vector<8x128xf32>
    %170 = arith.negf %169 : vector<8x128xf32>
    %171 = math.exp %170 : vector<8x128xf32>
    %cst_53 = arith.constant 1.000000e+00 : f32
    %172 = vector.broadcast %cst_53 : f32 to vector<8x128xf32>
    %173 = arith.addf %172, %171 : vector<8x128xf32>
    %174 = arith.divf %172, %173 : vector<8x128xf32>
    %175 = vector.extract_strided_slice %162 {offsets = [0, 256], sizes = [8, 128], strides = [1, 1]} : vector<8x512xf32> to vector<8x128xf32>
    %176 = math.tanh %175 : vector<8x128xf32>
    %177 = vector.extract_strided_slice %162 {offsets = [0, 384], sizes = [8, 128], strides = [1, 1]} : vector<8x512xf32> to vector<8x128xf32>
    %178 = arith.negf %177 : vector<8x128xf32>
    %179 = math.exp %178 : vector<8x128xf32>
    %cst_54 = arith.constant 1.000000e+00 : f32
    %180 = vector.broadcast %cst_54 : f32 to vector<8x128xf32>
    %181 = arith.addf %180, %179 : vector<8x128xf32>
    %182 = arith.divf %180, %181 : vector<8x128xf32>
    %183 = arith.mulf %174, %150 : vector<8x128xf32>
    %184 = arith.mulf %168, %176 : vector<8x128xf32>
    %185 = arith.addf %183, %184 : vector<8x128xf32>
    %186 = math.tanh %185 : vector<8x128xf32>
    %187 = arith.mulf %182, %186 : vector<8x128xf32>
    %188 = arith.index_cast %c4_i32 : i32 to index
    %c0_55 = arith.constant 0 : index
    %c0_56 = arith.constant 0 : index
    %189 = vector.load %arg7[%188, %c0_55, %c0_56] : memref<8x8x128xf32, #tpu.memory_space<vmem>>, vector<1x8x128xf32>
    %190 = vector.shape_cast %189 : vector<1x8x128xf32> to vector<8x128xf32>
    %191 = vector.shape_cast %187 : vector<8x128xf32> to vector<1x8x128xf32>
    tpu.vector_store %arg7[%188, %c0_55, %c0_56], %191 {strides = array<i32>} : memref<8x8x128xf32, #tpu.memory_space<vmem>>, vector<1x8x128xf32>,
    %c5_i32 = arith.constant 5 : i32
    %192 = arith.index_cast %c5_i32 : i32 to index
    %c0_57 = arith.constant 0 : index
    %c0_58 = arith.constant 0 : index
    %193 = vector.load %arg10[%192, %c0_57, %c0_58] : memref<8x8x512xf32, #tpu.memory_space<vmem>>, vector<1x8x512xf32>
    %194 = vector.shape_cast %193 : vector<1x8x512xf32> to vector<8x512xf32>
    %195 = arith.truncf %187 : vector<8x128xf32> to vector<8x128xbf16>
    %cst_59 = arith.constant dense<0.000000e+00> : vector<8x512xf32>
    %196 = tpu.matmul %195, %14, %cst_59 {dimension_numbers = #tpu.dot_dimension_numbers<[1], [0], [0], [1], [0, 0, 1, 1], [], []>} : vector<8x128xbf16>, vector<128x512xbf16>, vector<8x512xf32> -> vector<8x512xf32>
    %197 = arith.addf %194, %196 : vector<8x512xf32>
    %198 = vector.extract_strided_slice %197 {offsets = [0, 0], sizes = [8, 128], strides = [1, 1]} : vector<8x512xf32> to vector<8x128xf32>
    %199 = arith.negf %198 : vector<8x128xf32>
    %200 = math.exp %199 : vector<8x128xf32>
    %cst_60 = arith.constant 1.000000e+00 : f32
    %201 = vector.broadcast %cst_60 : f32 to vector<8x128xf32>
    %202 = arith.addf %201, %200 : vector<8x128xf32>
    %203 = arith.divf %201, %202 : vector<8x128xf32>
    %204 = vector.extract_strided_slice %197 {offsets = [0, 128], sizes = [8, 128], strides = [1, 1]} : vector<8x512xf32> to vector<8x128xf32>
    %205 = arith.negf %204 : vector<8x128xf32>
    %206 = math.exp %205 : vector<8x128xf32>
    %cst_61 = arith.constant 1.000000e+00 : f32
    %207 = vector.broadcast %cst_61 : f32 to vector<8x128xf32>
    %208 = arith.addf %207, %206 : vector<8x128xf32>
    %209 = arith.divf %207, %208 : vector<8x128xf32>
    %210 = vector.extract_strided_slice %197 {offsets = [0, 256], sizes = [8, 128], strides = [1, 1]} : vector<8x512xf32> to vector<8x128xf32>
    %211 = math.tanh %210 : vector<8x128xf32>
    %212 = vector.extract_strided_slice %197 {offsets = [0, 384], sizes = [8, 128], strides = [1, 1]} : vector<8x512xf32> to vector<8x128xf32>
    %213 = arith.negf %212 : vector<8x128xf32>
    %214 = math.exp %213 : vector<8x128xf32>
    %cst_62 = arith.constant 1.000000e+00 : f32
    %215 = vector.broadcast %cst_62 : f32 to vector<8x128xf32>
    %216 = arith.addf %215, %214 : vector<8x128xf32>
    %217 = arith.divf %215, %216 : vector<8x128xf32>
    %218 = arith.mulf %209, %185 : vector<8x128xf32>
    %219 = arith.mulf %203, %211 : vector<8x128xf32>
    %220 = arith.addf %218, %219 : vector<8x128xf32>
    %221 = math.tanh %220 : vector<8x128xf32>
    %222 = arith.mulf %217, %221 : vector<8x128xf32>
    %223 = arith.index_cast %c5_i32 : i32 to index
    %c0_63 = arith.constant 0 : index
    %c0_64 = arith.constant 0 : index
    %224 = vector.load %arg7[%223, %c0_63, %c0_64] : memref<8x8x128xf32, #tpu.memory_space<vmem>>, vector<1x8x128xf32>
    %225 = vector.shape_cast %224 : vector<1x8x128xf32> to vector<8x128xf32>
    %226 = vector.shape_cast %222 : vector<8x128xf32> to vector<1x8x128xf32>
    tpu.vector_store %arg7[%223, %c0_63, %c0_64], %226 {strides = array<i32>} : memref<8x8x128xf32, #tpu.memory_space<vmem>>, vector<1x8x128xf32>,
    %c6_i32 = arith.constant 6 : i32
    %227 = arith.index_cast %c6_i32 : i32 to index
    %c0_65 = arith.constant 0 : index
    %c0_66 = arith.constant 0 : index
    %228 = vector.load %arg10[%227, %c0_65, %c0_66] : memref<8x8x512xf32, #tpu.memory_space<vmem>>, vector<1x8x512xf32>
    %229 = vector.shape_cast %228 : vector<1x8x512xf32> to vector<8x512xf32>
    %230 = arith.truncf %222 : vector<8x128xf32> to vector<8x128xbf16>
    %cst_67 = arith.constant dense<0.000000e+00> : vector<8x512xf32>
    %231 = tpu.matmul %230, %14, %cst_67 {dimension_numbers = #tpu.dot_dimension_numbers<[1], [0], [0], [1], [0, 0, 1, 1], [], []>} : vector<8x128xbf16>, vector<128x512xbf16>, vector<8x512xf32> -> vector<8x512xf32>
    %232 = arith.addf %229, %231 : vector<8x512xf32>
    %233 = vector.extract_strided_slice %232 {offsets = [0, 0], sizes = [8, 128], strides = [1, 1]} : vector<8x512xf32> to vector<8x128xf32>
    %234 = arith.negf %233 : vector<8x128xf32>
    %235 = math.exp %234 : vector<8x128xf32>
    %cst_68 = arith.constant 1.000000e+00 : f32
    %236 = vector.broadcast %cst_68 : f32 to vector<8x128xf32>
    %237 = arith.addf %236, %235 : vector<8x128xf32>
    %238 = arith.divf %236, %237 : vector<8x128xf32>
    %239 = vector.extract_strided_slice %232 {offsets = [0, 128], sizes = [8, 128], strides = [1, 1]} : vector<8x512xf32> to vector<8x128xf32>
    %240 = arith.negf %239 : vector<8x128xf32>
    %241 = math.exp %240 : vector<8x128xf32>
    %cst_69 = arith.constant 1.000000e+00 : f32
    %242 = vector.broadcast %cst_69 : f32 to vector<8x128xf32>
    %243 = arith.addf %242, %241 : vector<8x128xf32>
    %244 = arith.divf %242, %243 : vector<8x128xf32>
    %245 = vector.extract_strided_slice %232 {offsets = [0, 256], sizes = [8, 128], strides = [1, 1]} : vector<8x512xf32> to vector<8x128xf32>
    %246 = math.tanh %245 : vector<8x128xf32>
    %247 = vector.extract_strided_slice %232 {offsets = [0, 384], sizes = [8, 128], strides = [1, 1]} : vector<8x512xf32> to vector<8x128xf32>
    %248 = arith.negf %247 : vector<8x128xf32>
    %249 = math.exp %248 : vector<8x128xf32>
    %cst_70 = arith.constant 1.000000e+00 : f32
    %250 = vector.broadcast %cst_70 : f32 to vector<8x128xf32>
    %251 = arith.addf %250, %249 : vector<8x128xf32>
    %252 = arith.divf %250, %251 : vector<8x128xf32>
    %253 = arith.mulf %244, %220 : vector<8x128xf32>
    %254 = arith.mulf %238, %246 : vector<8x128xf32>
    %255 = arith.addf %253, %254 : vector<8x128xf32>
    %256 = math.tanh %255 : vector<8x128xf32>
    %257 = arith.mulf %252, %256 : vector<8x128xf32>
    %258 = arith.index_cast %c6_i32 : i32 to index
    %c0_71 = arith.constant 0 : index
    %c0_72 = arith.constant 0 : index
    %259 = vector.load %arg7[%258, %c0_71, %c0_72] : memref<8x8x128xf32, #tpu.memory_space<vmem>>, vector<1x8x128xf32>
    %260 = vector.shape_cast %259 : vector<1x8x128xf32> to vector<8x128xf32>
    %261 = vector.shape_cast %257 : vector<8x128xf32> to vector<1x8x128xf32>
    tpu.vector_store %arg7[%258, %c0_71, %c0_72], %261 {strides = array<i32>} : memref<8x8x128xf32, #tpu.memory_space<vmem>>, vector<1x8x128xf32>,
    %c7_i32 = arith.constant 7 : i32
    %262 = arith.index_cast %c7_i32 : i32 to index
    %c0_73 = arith.constant 0 : index
    %c0_74 = arith.constant 0 : index
    %263 = vector.load %arg10[%262, %c0_73, %c0_74] : memref<8x8x512xf32, #tpu.memory_space<vmem>>, vector<1x8x512xf32>
    %264 = vector.shape_cast %263 : vector<1x8x512xf32> to vector<8x512xf32>
    %265 = arith.truncf %257 : vector<8x128xf32> to vector<8x128xbf16>
    %cst_75 = arith.constant dense<0.000000e+00> : vector<8x512xf32>
    %266 = tpu.matmul %265, %14, %cst_75 {dimension_numbers = #tpu.dot_dimension_numbers<[1], [0], [0], [1], [0, 0, 1, 1], [], []>} : vector<8x128xbf16>, vector<128x512xbf16>, vector<8x512xf32> -> vector<8x512xf32>
    %267 = arith.addf %264, %266 : vector<8x512xf32>
    %268 = vector.extract_strided_slice %267 {offsets = [0, 0], sizes = [8, 128], strides = [1, 1]} : vector<8x512xf32> to vector<8x128xf32>
    %269 = arith.negf %268 : vector<8x128xf32>
    %270 = math.exp %269 : vector<8x128xf32>
    %cst_76 = arith.constant 1.000000e+00 : f32
    %271 = vector.broadcast %cst_76 : f32 to vector<8x128xf32>
    %272 = arith.addf %271, %270 : vector<8x128xf32>
    %273 = arith.divf %271, %272 : vector<8x128xf32>
    %274 = vector.extract_strided_slice %267 {offsets = [0, 128], sizes = [8, 128], strides = [1, 1]} : vector<8x512xf32> to vector<8x128xf32>
    %275 = arith.negf %274 : vector<8x128xf32>
    %276 = math.exp %275 : vector<8x128xf32>
    %cst_77 = arith.constant 1.000000e+00 : f32
    %277 = vector.broadcast %cst_77 : f32 to vector<8x128xf32>
    %278 = arith.addf %277, %276 : vector<8x128xf32>
    %279 = arith.divf %277, %278 : vector<8x128xf32>
    %280 = vector.extract_strided_slice %267 {offsets = [0, 256], sizes = [8, 128], strides = [1, 1]} : vector<8x512xf32> to vector<8x128xf32>
    %281 = math.tanh %280 : vector<8x128xf32>
    %282 = vector.extract_strided_slice %267 {offsets = [0, 384], sizes = [8, 128], strides = [1, 1]} : vector<8x512xf32> to vector<8x128xf32>
    %283 = arith.negf %282 : vector<8x128xf32>
    %284 = math.exp %283 : vector<8x128xf32>
    %cst_78 = arith.constant 1.000000e+00 : f32
    %285 = vector.broadcast %cst_78 : f32 to vector<8x128xf32>
    %286 = arith.addf %285, %284 : vector<8x128xf32>
    %287 = arith.divf %285, %286 : vector<8x128xf32>
    %288 = arith.mulf %279, %255 : vector<8x128xf32>
    %289 = arith.mulf %273, %281 : vector<8x128xf32>
    %290 = arith.addf %288, %289 : vector<8x128xf32>
    %291 = math.tanh %290 : vector<8x128xf32>
    %292 = arith.mulf %287, %291 : vector<8x128xf32>
    %293 = arith.index_cast %c7_i32 : i32 to index
    %c0_79 = arith.constant 0 : index
    %c0_80 = arith.constant 0 : index
    %294 = vector.load %arg7[%293, %c0_79, %c0_80] : memref<8x8x128xf32, #tpu.memory_space<vmem>>, vector<1x8x128xf32>
    %295 = vector.shape_cast %294 : vector<1x8x128xf32> to vector<8x128xf32>
    %296 = vector.shape_cast %292 : vector<8x128xf32> to vector<1x8x128xf32>
    tpu.vector_store %arg7[%293, %c0_79, %c0_80], %296 {strides = array<i32>} : memref<8x8x128xf32, #tpu.memory_space<vmem>>, vector<1x8x128xf32>,
    %c8_i32 = arith.constant 8 : i32
    %c0_81 = arith.constant 0 : index
    %c0_82 = arith.constant 0 : index
    %297 = vector.load %arg11[%c0_81, %c0_82] : memref<8x128xf32, #tpu.memory_space<vmem>>, vector<8x128xf32>
    tpu.vector_store %arg11[%c0_81, %c0_82], %292 {strides = array<i32>} : memref<8x128xf32, #tpu.memory_space<vmem>>, vector<8x128xf32>,
    %c0_83 = arith.constant 0 : index
    %c0_84 = arith.constant 0 : index
    %298 = vector.load %arg12[%c0_83, %c0_84] : memref<8x128xf32, #tpu.memory_space<vmem>>, vector<8x128xf32>
    tpu.vector_store %arg12[%c0_83, %c0_84], %290 {strides = array<i32>} : memref<8x128xf32, #tpu.memory_space<vmem>>, vector<8x128xf32>,
    %c0_i32_85 = arith.constant 0 : i32
    %299 = arith.cmpi eq, %arg0, %c0_i32_85 : i32
    %300 = arith.extui %299 : i1 to i32
    %c0_i32_86 = arith.constant 0 : i32
    %301 = arith.cmpi ne, %300, %c0_i32_86 : i32
    scf.if %301 {
      %c0_87 = arith.constant 0 : index
      %c0_88 = arith.constant 0 : index
      %302 = vector.load %arg8[%c0_87, %c0_88] : memref<8x128xf32, #tpu.memory_space<vmem>>, vector<8x128xf32>
      tpu.vector_store %arg8[%c0_87, %c0_88], %292 {strides = array<i32>} : memref<8x128xf32, #tpu.memory_space<vmem>>, vector<8x128xf32>,
      %c0_89 = arith.constant 0 : index
      %c0_90 = arith.constant 0 : index
      %303 = vector.load %arg9[%c0_89, %c0_90] : memref<8x128xf32, #tpu.memory_space<vmem>>, vector<8x128xf32>
      tpu.vector_store %arg9[%c0_89, %c0_90], %290 {strides = array<i32>} : memref<8x128xf32, #tpu.memory_space<vmem>>, vector<8x128xf32>,
    } else {
    }
    return
  }
  func.func @transform_0(%arg0: i32) -> (i32, i32, i32) {
    %c0_i32 = arith.constant 0 : i32
    %c0_i32_0 = arith.constant 0 : i32
    %c0_i32_1 = arith.constant 0 : i32
    return %arg0, %c0_i32, %c0_i32_0 : i32, i32, i32
  }
  func.func @transform_1(%arg0: i32) -> (i32, i32) {
    %c0_i32 = arith.constant 0 : i32
    %c0_i32_0 = arith.constant 0 : i32
    %c0_i32_1 = arith.constant 0 : i32
    return %c0_i32, %c0_i32_0 : i32, i32
  }
  func.func @transform_2(%arg0: i32) -> (i32, i32) {
    %c0_i32 = arith.constant 0 : i32
    %c0_i32_0 = arith.constant 0 : i32
    %c0_i32_1 = arith.constant 0 : i32
    return %c0_i32, %c0_i32_0 : i32, i32
  }
  func.func @transform_3(%arg0: i32) -> (i32, i32) {
    %c0_i32 = arith.constant 0 : i32
    %c0_i32_0 = arith.constant 0 : i32
    %c0_i32_1 = arith.constant 0 : i32
    return %c0_i32, %c0_i32_0 : i32, i32
  }
  func.func @transform_4(%arg0: i32) -> (i32, i32) {
    %c0_i32 = arith.constant 0 : i32
    %c0_i32_0 = arith.constant 0 : i32
    %c0_i32_1 = arith.constant 0 : i32
    return %c0_i32, %c0_i32_0 : i32, i32
  }
  func.func @transform_5(%arg0: i32) -> (i32, i32) {
    %c0_i32 = arith.constant 0 : i32
    %c0_i32_0 = arith.constant 0 : i32
    %c0_i32_1 = arith.constant 0 : i32
    return %c0_i32, %c0_i32_0 : i32, i32
  }
  func.func @transform_6(%arg0: i32) -> (i32, i32, i32) {
    %c0_i32 = arith.constant 0 : i32
    %c0_i32_0 = arith.constant 0 : i32
    %c0_i32_1 = arith.constant 0 : i32
    return %arg0, %c0_i32, %c0_i32_0 : i32, i32, i32
  }
  func.func @transform_7(%arg0: i32) -> (i32, i32) {
    %c0_i32 = arith.constant 0 : i32
    %c0_i32_0 = arith.constant 0 : i32
    %c0_i32_1 = arith.constant 0 : i32
    return %c0_i32, %c0_i32_0 : i32, i32
  }
  func.func @transform_8(%arg0: i32) -> (i32, i32) {
    %c0_i32 = arith.constant 0 : i32
    %c0_i32_0 = arith.constant 0 : i32
    %c0_i32_1 = arith.constant 0 : i32
    return %c0_i32, %c0_i32_0 : i32, i32
  }
}

module attributes {stable_mosaic.version = 11 : i64} {
  func.func @_lstm_layer_kernel(%arg0: i32, %arg1: memref<8x8x128xf32, #tpu.memory_space<vmem>>, %arg2: memref<128x512xbf16, #tpu.memory_space<vmem>>, %arg3: memref<128x512xbf16, #tpu.memory_space<vmem>>, %arg4: memref<1x512xf32, #tpu.memory_space<vmem>>, %arg5: memref<8x128xf32, #tpu.memory_space<vmem>>, %arg6: memref<8x128xf32, #tpu.memory_space<vmem>>, %arg7: memref<8x8x128xf32, #tpu.memory_space<vmem>>, %arg8: memref<8x128xf32, #tpu.memory_space<vmem>>, %arg9: memref<8x128xf32, #tpu.memory_space<vmem>>, %arg10: memref<8x8x512xf32, #tpu.memory_space<vmem>>, %arg11: memref<8x128xf32, #tpu.memory_space<vmem>>, %arg12: memref<8x128xf32, #tpu.memory_space<vmem>>) attributes {dimension_semantics = [#tpu.dimension_semantics<arbitrary>], iteration_bounds = array<i64: 1>, scalar_prefetch = 0 : i64, scratch_operands = 3 : i64, tpu.core_type = #tpu.core_type<tc>, window_params = [{transform_indices = @transform_0, window_bounds = array<i64: 8, 8, 128>}, {pipeline_mode = #tpu.pipeline_mode<synchronous>, transform_indices = @transform_1, window_bounds = array<i64: 128, 512>}, {pipeline_mode = #tpu.pipeline_mode<synchronous>, transform_indices = @transform_2, window_bounds = array<i64: 128, 512>}, {pipeline_mode = #tpu.pipeline_mode<synchronous>, transform_indices = @transform_3, window_bounds = array<i64: 1, 512>}, {pipeline_mode = #tpu.pipeline_mode<synchronous>, transform_indices = @transform_4, window_bounds = array<i64: 8, 128>}, {pipeline_mode = #tpu.pipeline_mode<synchronous>, transform_indices = @transform_5, window_bounds = array<i64: 8, 128>}, {transform_indices = @transform_6, window_bounds = array<i64: 8, 8, 128>}, {pipeline_mode = #tpu.pipeline_mode<synchronous>, transform_indices = @transform_7, window_bounds = array<i64: 8, 128>}, {pipeline_mode = #tpu.pipeline_mode<synchronous>, transform_indices = @transform_8, window_bounds = array<i64: 8, 128>}]} {
    %c0_i32 = arith.constant 0 : i32
    %0 = arith.cmpi eq, %arg0, %c0_i32 : i32
    %1 = arith.extui %0 : i1 to i32
    %c0_i32_0 = arith.constant 0 : i32
    %2 = arith.cmpi ne, %1, %c0_i32_0 : i32
    scf.if %2 {
      %c0_87 = arith.constant 0 : index
      %c0_88 = arith.constant 0 : index
      %302 = vector.load %arg5[%c0_87, %c0_88] : memref<8x128xf32, #tpu.memory_space<vmem>>, vector<8x128xf32>
      %c0_89 = arith.constant 0 : index
      %c0_90 = arith.constant 0 : index
      %303 = vector.load %arg11[%c0_89, %c0_90] : memref<8x128xf32, #tpu.memory_space<vmem>>, vector<8x128xf32>
      tpu.vector_store %arg11[%c0_89, %c0_90], %302 {strides = array<i32>} : memref<8x128xf32, #tpu.memory_space<vmem>>, vector<8x128xf32>,
      %c0_91 = arith.constant 0 : index
      %c0_92 = arith.constant 0 : index
      %304 = vector.load %arg6[%c0_91, %c0_92] : memref<8x128xf32, #tpu.memory_space<vmem>>, vector<8x128xf32>
      %c0_93 = arith.constant 0 : index
      %c0_94 = arith.constant 0 : index
      %305 = vector.load %arg12[%c0_93, %c0_94] : memref<8x128xf32, #tpu.memory_space<vmem>>, vector<8x128xf32>
      tpu.vector_store %arg12[%c0_93, %c0_94], %304 {strides = array<i32>} : memref<8x128xf32, #tpu.memory_space<vmem>>, vector<8x128xf32>,
    } else {
    }
    %c0 = arith.constant 0 : index
    %c0_1 = arith.constant 0 : index
    %c0_2 = arith.constant 0 : index
    %3 = vector.load %arg1[%c0, %c0_1, %c0_2] : memref<8x8x128xf32, #tpu.memory_space<vmem>>, vector<8x8x128xf32>
    %4 = vector.shape_cast %3 : vector<8x8x128xf32> to vector<64x128xf32>
    %5 = arith.truncf %4 : vector<64x128xf32> to vector<64x128xbf16>
    %c0_3 = arith.constant 0 : index
    %c0_4 = arith.constant 0 : index
    %6 = vector.load %arg2[%c0_3, %c0_4] : memref<128x512xbf16, #tpu.memory_space<vmem>>, vector<128x512xbf16>
    %cst = arith.constant dense<0.000000e+00> : vector<64x512xf32>
    %7 = tpu.matmul %5, %6, %cst {dimension_numbers = #tpu.dot_dimension_numbers<[1], [0], [0], [1], [0, 0, 1, 1], [], []>} : vector<64x128xbf16>, vector<128x512xbf16>, vector<64x512xf32> -> vector<64x512xf32>
    %8 = vector.shape_cast %7 : vector<64x512xf32> to vector<8x8x512xf32>
    %c0_5 = arith.constant 0 : index
    %c0_6 = arith.constant 0 : index
    %9 = vector.load %arg4[%c0_5, %c0_6] : memref<1x512xf32, #tpu.memory_space<vmem>>, vector<1x512xf32>
    %10 = vector.shape_cast %9 : vector<1x512xf32> to vector<1x1x512xf32>
    %11 = vector.broadcast %10 : vector<1x1x512xf32> to vector<8x8x512xf32>
    %12 = arith.addf %8, %11 : vector<8x8x512xf32>
    %c0_7 = arith.constant 0 : index
    %c0_8 = arith.constant 0 : index
    %c0_9 = arith.constant 0 : index
    %13 = vector.load %arg10[%c0_7, %c0_8, %c0_9] : memref<8x8x512xf32, #tpu.memory_space<vmem>>, vector<8x8x512xf32>
    tpu.vector_store %arg10[%c0_7, %c0_8, %c0_9], %12 {strides = array<i32>} : memref<8x8x512xf32, #tpu.memory_space<vmem>>, vector<8x8x512xf32>,
    %c0_10 = arith.constant 0 : index
    %c0_11 = arith.constant 0 : index
    %14 = vector.load %arg3[%c0_10, %c0_11] : memref<128x512xbf16, #tpu.memory_space<vmem>>, vector<128x512xbf16>
    %c0_12 = arith.constant 0 : index
    %c0_13 = arith.constant 0 : index
    %15 = vector.load %arg11[%c0_12, %c0_13] : memref<8x128xf32, #tpu.memory_space<vmem>>, vector<8x128xf32>
    %c0_14 = arith.constant 0 : index
    %c0_15 = arith.constant 0 : index
    %16 = vector.load %arg12[%c0_14, %c0_15] : memref<8x128xf32, #tpu.memory_space<vmem>>, vector<8x128xf32>
    %c0_i32_16 = arith.constant 0 : i32
    %17 = arith.index_cast %c0_i32_16 : i32 to index
    %c0_17 = arith.constant 0 : index
    %c0_18 = arith.constant 0 : index
    %18 = vector.load %arg10[%17, %c0_17, %c0_18] : memref<8x8x512xf32, #tpu.memory_space<vmem>>, vector<1x8x512xf32>
    %19 = vector.shape_cast %18 : vector<1x8x512xf32> to vector<8x512xf32>
    %20 = arith.truncf %15 : vector<8x128xf32> to vector<8x128xbf16>
    %cst_19 = arith.constant dense<0.000000e+00> : vector<8x512xf32>
    %21 = tpu.matmul %20, %14, %cst_19 {dimension_numbers = #tpu.dot_dimension_numbers<[1], [0], [0], [1], [0, 0, 1, 1], [], []>} : vector<8x128xbf16>, vector<128x512xbf16>, vector<8x512xf32> -> vector<8x512xf32>
    %22 = arith.addf %19, %21 : vector<8x512xf32>
    %23 = vector.extract_strided_slice %22 {offsets = [0, 0], sizes = [8, 128], strides = [1, 1]} : vector<8x512xf32> to vector<8x128xf32>
    %24 = arith.negf %23 : vector<8x128xf32>
    %25 = math.exp %24 : vector<8x128xf32>
    %cst_20 = arith.constant 1.000000e+00 : f32
    %26 = vector.broadcast %cst_20 : f32 to vector<8x128xf32>
    %27 = arith.addf %26, %25 : vector<8x128xf32>
    %28 = arith.divf %26, %27 : vector<8x128xf32>
    %29 = vector.extract_strided_slice %22 {offsets = [0, 128], sizes = [8, 128], strides = [1, 1]} : vector<8x512xf32> to vector<8x128xf32>
    %30 = arith.negf %29 : vector<8x128xf32>
    %31 = math.exp %30 : vector<8x128xf32>
    %cst_21 = arith.constant 1.000000e+00 : f32
    %32 = vector.broadcast %cst_21 : f32 to vector<8x128xf32>
    %33 = arith.addf %32, %31 : vector<8x128xf32>
    %34 = arith.divf %32, %33 : vector<8x128xf32>
    %35 = vector.extract_strided_slice %22 {offsets = [0, 256], sizes = [8, 128], strides = [1, 1]} : vector<8x512xf32> to vector<8x128xf32>
    %36 = math.tanh %35 : vector<8x128xf32>
    %37 = vector.extract_strided_slice %22 {offsets = [0, 384], sizes = [8, 128], strides = [1, 1]} : vector<8x512xf32> to vector<8x128xf32>
    %38 = arith.negf %37 : vector<8x128xf32>
    %39 = math.exp %38 : vector<8x128xf32>
    %cst_22 = arith.constant 1.000000e+00 : f32
    %40 = vector.broadcast %cst_22 : f32 to vector<8x128xf32>
    %41 = arith.addf %40, %39 : vector<8x128xf32>
    %42 = arith.divf %40, %41 : vector<8x128xf32>
    %43 = arith.mulf %34, %16 : vector<8x128xf32>
    %44 = arith.mulf %28, %36 : vector<8x128xf32>
    %45 = arith.addf %43, %44 : vector<8x128xf32>
    %46 = math.tanh %45 : vector<8x128xf32>
    %47 = arith.mulf %42, %46 : vector<8x128xf32>
    %48 = arith.index_cast %c0_i32_16 : i32 to index
    %c0_23 = arith.constant 0 : index
    %c0_24 = arith.constant 0 : index
    %49 = vector.load %arg7[%48, %c0_23, %c0_24] : memref<8x8x128xf32, #tpu.memory_space<vmem>>, vector<1x8x128xf32>
    %50 = vector.shape_cast %49 : vector<1x8x128xf32> to vector<8x128xf32>
    %51 = vector.shape_cast %47 : vector<8x128xf32> to vector<1x8x128xf32>
    tpu.vector_store %arg7[%48, %c0_23, %c0_24], %51 {strides = array<i32>} : memref<8x8x128xf32, #tpu.memory_space<vmem>>, vector<1x8x128xf32>,
    %c1_i32 = arith.constant 1 : i32
    %52 = arith.index_cast %c1_i32 : i32 to index
    %c0_25 = arith.constant 0 : index
    %c0_26 = arith.constant 0 : index
    %53 = vector.load %arg10[%52, %c0_25, %c0_26] : memref<8x8x512xf32, #tpu.memory_space<vmem>>, vector<1x8x512xf32>
    %54 = vector.shape_cast %53 : vector<1x8x512xf32> to vector<8x512xf32>
    %55 = arith.truncf %47 : vector<8x128xf32> to vector<8x128xbf16>
    %cst_27 = arith.constant dense<0.000000e+00> : vector<8x512xf32>
    %56 = tpu.matmul %55, %14, %cst_27 {dimension_numbers = #tpu.dot_dimension_numbers<[1], [0], [0], [1], [0, 0, 1, 1], [], []>} : vector<8x128xbf16>, vector<128x512xbf16>, vector<8x512xf32> -> vector<8x512xf32>
    %57 = arith.addf %54, %56 : vector<8x512xf32>
    %58 = vector.extract_strided_slice %57 {offsets = [0, 0], sizes = [8, 128], strides = [1, 1]} : vector<8x512xf32> to vector<8x128xf32>
    %59 = arith.negf %58 : vector<8x128xf32>
    %60 = math.exp %59 : vector<8x128xf32>
    %cst_28 = arith.constant 1.000000e+00 : f32
    %61 = vector.broadcast %cst_28 : f32 to vector<8x128xf32>
    %62 = arith.addf %61, %60 : vector<8x128xf32>
    %63 = arith.divf %61, %62 : vector<8x128xf32>
    %64 = vector.extract_strided_slice %57 {offsets = [0, 128], sizes = [8, 128], strides = [1, 1]} : vector<8x512xf32> to vector<8x128xf32>
    %65 = arith.negf %64 : vector<8x128xf32>
    %66 = math.exp %65 : vector<8x128xf32>
    %cst_29 = arith.constant 1.000000e+00 : f32
    %67 = vector.broadcast %cst_29 : f32 to vector<8x128xf32>
    %68 = arith.addf %67, %66 : vector<8x128xf32>
    %69 = arith.divf %67, %68 : vector<8x128xf32>
    %70 = vector.extract_strided_slice %57 {offsets = [0, 256], sizes = [8, 128], strides = [1, 1]} : vector<8x512xf32> to vector<8x128xf32>
    %71 = math.tanh %70 : vector<8x128xf32>
    %72 = vector.extract_strided_slice %57 {offsets = [0, 384], sizes = [8, 128], strides = [1, 1]} : vector<8x512xf32> to vector<8x128xf32>
    %73 = arith.negf %72 : vector<8x128xf32>
    %74 = math.exp %73 : vector<8x128xf32>
    %cst_30 = arith.constant 1.000000e+00 : f32
    %75 = vector.broadcast %cst_30 : f32 to vector<8x128xf32>
    %76 = arith.addf %75, %74 : vector<8x128xf32>
    %77 = arith.divf %75, %76 : vector<8x128xf32>
    %78 = arith.mulf %69, %45 : vector<8x128xf32>
    %79 = arith.mulf %63, %71 : vector<8x128xf32>
    %80 = arith.addf %78, %79 : vector<8x128xf32>
    %81 = math.tanh %80 : vector<8x128xf32>
    %82 = arith.mulf %77, %81 : vector<8x128xf32>
    %83 = arith.index_cast %c1_i32 : i32 to index
    %c0_31 = arith.constant 0 : index
    %c0_32 = arith.constant 0 : index
    %84 = vector.load %arg7[%83, %c0_31, %c0_32] : memref<8x8x128xf32, #tpu.memory_space<vmem>>, vector<1x8x128xf32>
    %85 = vector.shape_cast %84 : vector<1x8x128xf32> to vector<8x128xf32>
    %86 = vector.shape_cast %82 : vector<8x128xf32> to vector<1x8x128xf32>
    tpu.vector_store %arg7[%83, %c0_31, %c0_32], %86 {strides = array<i32>} : memref<8x8x128xf32, #tpu.memory_space<vmem>>, vector<1x8x128xf32>,
    %c2_i32 = arith.constant 2 : i32
    %87 = arith.index_cast %c2_i32 : i32 to index
    %c0_33 = arith.constant 0 : index
    %c0_34 = arith.constant 0 : index
    %88 = vector.load %arg10[%87, %c0_33, %c0_34] : memref<8x8x512xf32, #tpu.memory_space<vmem>>, vector<1x8x512xf32>
    %89 = vector.shape_cast %88 : vector<1x8x512xf32> to vector<8x512xf32>
    %90 = arith.truncf %82 : vector<8x128xf32> to vector<8x128xbf16>
    %cst_35 = arith.constant dense<0.000000e+00> : vector<8x512xf32>
    %91 = tpu.matmul %90, %14, %cst_35 {dimension_numbers = #tpu.dot_dimension_numbers<[1], [0], [0], [1], [0, 0, 1, 1], [], []>} : vector<8x128xbf16>, vector<128x512xbf16>, vector<8x512xf32> -> vector<8x512xf32>
    %92 = arith.addf %89, %91 : vector<8x512xf32>
    %93 = vector.extract_strided_slice %92 {offsets = [0, 0], sizes = [8, 128], strides = [1, 1]} : vector<8x512xf32> to vector<8x128xf32>
    %94 = arith.negf %93 : vector<8x128xf32>
    %95 = math.exp %94 : vector<8x128xf32>
    %cst_36 = arith.constant 1.000000e+00 : f32
    %96 = vector.broadcast %cst_36 : f32 to vector<8x128xf32>
    %97 = arith.addf %96, %95 : vector<8x128xf32>
    %98 = arith.divf %96, %97 : vector<8x128xf32>
    %99 = vector.extract_strided_slice %92 {offsets = [0, 128], sizes = [8, 128], strides = [1, 1]} : vector<8x512xf32> to vector<8x128xf32>
    %100 = arith.negf %99 : vector<8x128xf32>
    %101 = math.exp %100 : vector<8x128xf32>
    %cst_37 = arith.constant 1.000000e+00 : f32
    %102 = vector.broadcast %cst_37 : f32 to vector<8x128xf32>
    %103 = arith.addf %102, %101 : vector<8x128xf32>
    %104 = arith.divf %102, %103 : vector<8x128xf32>
    %105 = vector.extract_strided_slice %92 {offsets = [0, 256], sizes = [8, 128], strides = [1, 1]} : vector<8x512xf32> to vector<8x128xf32>
    %106 = math.tanh %105 : vector<8x128xf32>
    %107 = vector.extract_strided_slice %92 {offsets = [0, 384], sizes = [8, 128], strides = [1, 1]} : vector<8x512xf32> to vector<8x128xf32>
    %108 = arith.negf %107 : vector<8x128xf32>
    %109 = math.exp %108 : vector<8x128xf32>
    %cst_38 = arith.constant 1.000000e+00 : f32
    %110 = vector.broadcast %cst_38 : f32 to vector<8x128xf32>
    %111 = arith.addf %110, %109 : vector<8x128xf32>
    %112 = arith.divf %110, %111 : vector<8x128xf32>
    %113 = arith.mulf %104, %80 : vector<8x128xf32>
    %114 = arith.mulf %98, %106 : vector<8x128xf32>
    %115 = arith.addf %113, %114 : vector<8x128xf32>
    %116 = math.tanh %115 : vector<8x128xf32>
    %117 = arith.mulf %112, %116 : vector<8x128xf32>
    %118 = arith.index_cast %c2_i32 : i32 to index
    %c0_39 = arith.constant 0 : index
    %c0_40 = arith.constant 0 : index
    %119 = vector.load %arg7[%118, %c0_39, %c0_40] : memref<8x8x128xf32, #tpu.memory_space<vmem>>, vector<1x8x128xf32>
    %120 = vector.shape_cast %119 : vector<1x8x128xf32> to vector<8x128xf32>
    %121 = vector.shape_cast %117 : vector<8x128xf32> to vector<1x8x128xf32>
    tpu.vector_store %arg7[%118, %c0_39, %c0_40], %121 {strides = array<i32>} : memref<8x8x128xf32, #tpu.memory_space<vmem>>, vector<1x8x128xf32>,
    %c3_i32 = arith.constant 3 : i32
    %122 = arith.index_cast %c3_i32 : i32 to index
    %c0_41 = arith.constant 0 : index
    %c0_42 = arith.constant 0 : index
    %123 = vector.load %arg10[%122, %c0_41, %c0_42] : memref<8x8x512xf32, #tpu.memory_space<vmem>>, vector<1x8x512xf32>
    %124 = vector.shape_cast %123 : vector<1x8x512xf32> to vector<8x512xf32>
    %125 = arith.truncf %117 : vector<8x128xf32> to vector<8x128xbf16>
    %cst_43 = arith.constant dense<0.000000e+00> : vector<8x512xf32>
    %126 = tpu.matmul %125, %14, %cst_43 {dimension_numbers = #tpu.dot_dimension_numbers<[1], [0], [0], [1], [0, 0, 1, 1], [], []>} : vector<8x128xbf16>, vector<128x512xbf16>, vector<8x512xf32> -> vector<8x512xf32>
    %127 = arith.addf %124, %126 : vector<8x512xf32>
    %128 = vector.extract_strided_slice %127 {offsets = [0, 0], sizes = [8, 128], strides = [1, 1]} : vector<8x512xf32> to vector<8x128xf32>
    %129 = arith.negf %128 : vector<8x128xf32>
    %130 = math.exp %129 : vector<8x128xf32>
    %cst_44 = arith.constant 1.000000e+00 : f32
    %131 = vector.broadcast %cst_44 : f32 to vector<8x128xf32>
    %132 = arith.addf %131, %130 : vector<8x128xf32>
    %133 = arith.divf %131, %132 : vector<8x128xf32>
    %134 = vector.extract_strided_slice %127 {offsets = [0, 128], sizes = [8, 128], strides = [1, 1]} : vector<8x512xf32> to vector<8x128xf32>
    %135 = arith.negf %134 : vector<8x128xf32>
    %136 = math.exp %135 : vector<8x128xf32>
    %cst_45 = arith.constant 1.000000e+00 : f32
    %137 = vector.broadcast %cst_45 : f32 to vector<8x128xf32>
    %138 = arith.addf %137, %136 : vector<8x128xf32>
    %139 = arith.divf %137, %138 : vector<8x128xf32>
    %140 = vector.extract_strided_slice %127 {offsets = [0, 256], sizes = [8, 128], strides = [1, 1]} : vector<8x512xf32> to vector<8x128xf32>
    %141 = math.tanh %140 : vector<8x128xf32>
    %142 = vector.extract_strided_slice %127 {offsets = [0, 384], sizes = [8, 128], strides = [1, 1]} : vector<8x512xf32> to vector<8x128xf32>
    %143 = arith.negf %142 : vector<8x128xf32>
    %144 = math.exp %143 : vector<8x128xf32>
    %cst_46 = arith.constant 1.000000e+00 : f32
    %145 = vector.broadcast %cst_46 : f32 to vector<8x128xf32>
    %146 = arith.addf %145, %144 : vector<8x128xf32>
    %147 = arith.divf %145, %146 : vector<8x128xf32>
    %148 = arith.mulf %139, %115 : vector<8x128xf32>
    %149 = arith.mulf %133, %141 : vector<8x128xf32>
    %150 = arith.addf %148, %149 : vector<8x128xf32>
    %151 = math.tanh %150 : vector<8x128xf32>
    %152 = arith.mulf %147, %151 : vector<8x128xf32>
    %153 = arith.index_cast %c3_i32 : i32 to index
    %c0_47 = arith.constant 0 : index
    %c0_48 = arith.constant 0 : index
    %154 = vector.load %arg7[%153, %c0_47, %c0_48] : memref<8x8x128xf32, #tpu.memory_space<vmem>>, vector<1x8x128xf32>
    %155 = vector.shape_cast %154 : vector<1x8x128xf32> to vector<8x128xf32>
    %156 = vector.shape_cast %152 : vector<8x128xf32> to vector<1x8x128xf32>
    tpu.vector_store %arg7[%153, %c0_47, %c0_48], %156 {strides = array<i32>} : memref<8x8x128xf32, #tpu.memory_space<vmem>>, vector<1x8x128xf32>,
    %c4_i32 = arith.constant 4 : i32
    %157 = arith.index_cast %c4_i32 : i32 to index
    %c0_49 = arith.constant 0 : index
    %c0_50 = arith.constant 0 : index
    %158 = vector.load %arg10[%157, %c0_49, %c0_50] : memref<8x8x512xf32, #tpu.memory_space<vmem>>, vector<1x8x512xf32>
    %159 = vector.shape_cast %158 : vector<1x8x512xf32> to vector<8x512xf32>
    %160 = arith.truncf %152 : vector<8x128xf32> to vector<8x128xbf16>
    %cst_51 = arith.constant dense<0.000000e+00> : vector<8x512xf32>
    %161 = tpu.matmul %160, %14, %cst_51 {dimension_numbers = #tpu.dot_dimension_numbers<[1], [0], [0], [1], [0, 0, 1, 1], [], []>} : vector<8x128xbf16>, vector<128x512xbf16>, vector<8x512xf32> -> vector<8x512xf32>
    %162 = arith.addf %159, %161 : vector<8x512xf32>
    %163 = vector.extract_strided_slice %162 {offsets = [0, 0], sizes = [8, 128], strides = [1, 1]} : vector<8x512xf32> to vector<8x128xf32>
    %164 = arith.negf %163 : vector<8x128xf32>
    %165 = math.exp %164 : vector<8x128xf32>
    %cst_52 = arith.constant 1.000000e+00 : f32
    %166 = vector.broadcast %cst_52 : f32 to vector<8x128xf32>
    %167 = arith.addf %166, %165 : vector<8x128xf32>
    %168 = arith.divf %166, %167 : vector<8x128xf32>
    %169 = vector.extract_strided_slice %162 {offsets = [0, 128], sizes = [8, 128], strides = [1, 1]} : vector<8x512xf32> to vector<8x128xf32>
    %170 = arith.negf %169 : vector<8x128xf32>
    %171 = math.exp %170 : vector<8x128xf32>
    %cst_53 = arith.constant 1.000000e+00 : f32
    %172 = vector.broadcast %cst_53 : f32 to vector<8x128xf32>
    %173 = arith.addf %172, %171 : vector<8x128xf32>
    %174 = arith.divf %172, %173 : vector<8x128xf32>
    %175 = vector.extract_strided_slice %162 {offsets = [0, 256], sizes = [8, 128], strides = [1, 1]} : vector<8x512xf32> to vector<8x128xf32>
    %176 = math.tanh %175 : vector<8x128xf32>
    %177 = vector.extract_strided_slice %162 {offsets = [0, 384], sizes = [8, 128], strides = [1, 1]} : vector<8x512xf32> to vector<8x128xf32>
    %178 = arith.negf %177 : vector<8x128xf32>
    %179 = math.exp %178 : vector<8x128xf32>
    %cst_54 = arith.constant 1.000000e+00 : f32
    %180 = vector.broadcast %cst_54 : f32 to vector<8x128xf32>
    %181 = arith.addf %180, %179 : vector<8x128xf32>
    %182 = arith.divf %180, %181 : vector<8x128xf32>
    %183 = arith.mulf %174, %150 : vector<8x128xf32>
    %184 = arith.mulf %168, %176 : vector<8x128xf32>
    %185 = arith.addf %183, %184 : vector<8x128xf32>
    %186 = math.tanh %185 : vector<8x128xf32>
    %187 = arith.mulf %182, %186 : vector<8x128xf32>
    %188 = arith.index_cast %c4_i32 : i32 to index
    %c0_55 = arith.constant 0 : index
    %c0_56 = arith.constant 0 : index
    %189 = vector.load %arg7[%188, %c0_55, %c0_56] : memref<8x8x128xf32, #tpu.memory_space<vmem>>, vector<1x8x128xf32>
    %190 = vector.shape_cast %189 : vector<1x8x128xf32> to vector<8x128xf32>
    %191 = vector.shape_cast %187 : vector<8x128xf32> to vector<1x8x128xf32>
    tpu.vector_store %arg7[%188, %c0_55, %c0_56], %191 {strides = array<i32>} : memref<8x8x128xf32, #tpu.memory_space<vmem>>, vector<1x8x128xf32>,
    %c5_i32 = arith.constant 5 : i32
    %192 = arith.index_cast %c5_i32 : i32 to index
    %c0_57 = arith.constant 0 : index
    %c0_58 = arith.constant 0 : index
    %193 = vector.load %arg10[%192, %c0_57, %c0_58] : memref<8x8x512xf32, #tpu.memory_space<vmem>>, vector<1x8x512xf32>
    %194 = vector.shape_cast %193 : vector<1x8x512xf32> to vector<8x512xf32>
    %195 = arith.truncf %187 : vector<8x128xf32> to vector<8x128xbf16>
    %cst_59 = arith.constant dense<0.000000e+00> : vector<8x512xf32>
    %196 = tpu.matmul %195, %14, %cst_59 {dimension_numbers = #tpu.dot_dimension_numbers<[1], [0], [0], [1], [0, 0, 1, 1], [], []>} : vector<8x128xbf16>, vector<128x512xbf16>, vector<8x512xf32> -> vector<8x512xf32>
    %197 = arith.addf %194, %196 : vector<8x512xf32>
    %198 = vector.extract_strided_slice %197 {offsets = [0, 0], sizes = [8, 128], strides = [1, 1]} : vector<8x512xf32> to vector<8x128xf32>
    %199 = arith.negf %198 : vector<8x128xf32>
    %200 = math.exp %199 : vector<8x128xf32>
    %cst_60 = arith.constant 1.000000e+00 : f32
    %201 = vector.broadcast %cst_60 : f32 to vector<8x128xf32>
    %202 = arith.addf %201, %200 : vector<8x128xf32>
    %203 = arith.divf %201, %202 : vector<8x128xf32>
    %204 = vector.extract_strided_slice %197 {offsets = [0, 128], sizes = [8, 128], strides = [1, 1]} : vector<8x512xf32> to vector<8x128xf32>
    %205 = arith.negf %204 : vector<8x128xf32>
    %206 = math.exp %205 : vector<8x128xf32>
    %cst_61 = arith.constant 1.000000e+00 : f32
    %207 = vector.broadcast %cst_61 : f32 to vector<8x128xf32>
    %208 = arith.addf %207, %206 : vector<8x128xf32>
    %209 = arith.divf %207, %208 : vector<8x128xf32>
    %210 = vector.extract_strided_slice %197 {offsets = [0, 256], sizes = [8, 128], strides = [1, 1]} : vector<8x512xf32> to vector<8x128xf32>
    %211 = math.tanh %210 : vector<8x128xf32>
    %212 = vector.extract_strided_slice %197 {offsets = [0, 384], sizes = [8, 128], strides = [1, 1]} : vector<8x512xf32> to vector<8x128xf32>
    %213 = arith.negf %212 : vector<8x128xf32>
    %214 = math.exp %213 : vector<8x128xf32>
    %cst_62 = arith.constant 1.000000e+00 : f32
    %215 = vector.broadcast %cst_62 : f32 to vector<8x128xf32>
    %216 = arith.addf %215, %214 : vector<8x128xf32>
    %217 = arith.divf %215, %216 : vector<8x128xf32>
    %218 = arith.mulf %209, %185 : vector<8x128xf32>
    %219 = arith.mulf %203, %211 : vector<8x128xf32>
    %220 = arith.addf %218, %219 : vector<8x128xf32>
    %221 = math.tanh %220 : vector<8x128xf32>
    %222 = arith.mulf %217, %221 : vector<8x128xf32>
    %223 = arith.index_cast %c5_i32 : i32 to index
    %c0_63 = arith.constant 0 : index
    %c0_64 = arith.constant 0 : index
    %224 = vector.load %arg7[%223, %c0_63, %c0_64] : memref<8x8x128xf32, #tpu.memory_space<vmem>>, vector<1x8x128xf32>
    %225 = vector.shape_cast %224 : vector<1x8x128xf32> to vector<8x128xf32>
    %226 = vector.shape_cast %222 : vector<8x128xf32> to vector<1x8x128xf32>
    tpu.vector_store %arg7[%223, %c0_63, %c0_64], %226 {strides = array<i32>} : memref<8x8x128xf32, #tpu.memory_space<vmem>>, vector<1x8x128xf32>,
    %c6_i32 = arith.constant 6 : i32
    %227 = arith.index_cast %c6_i32 : i32 to index
    %c0_65 = arith.constant 0 : index
    %c0_66 = arith.constant 0 : index
    %228 = vector.load %arg10[%227, %c0_65, %c0_66] : memref<8x8x512xf32, #tpu.memory_space<vmem>>, vector<1x8x512xf32>
    %229 = vector.shape_cast %228 : vector<1x8x512xf32> to vector<8x512xf32>
    %230 = arith.truncf %222 : vector<8x128xf32> to vector<8x128xbf16>
    %cst_67 = arith.constant dense<0.000000e+00> : vector<8x512xf32>
    %231 = tpu.matmul %230, %14, %cst_67 {dimension_numbers = #tpu.dot_dimension_numbers<[1], [0], [0], [1], [0, 0, 1, 1], [], []>} : vector<8x128xbf16>, vector<128x512xbf16>, vector<8x512xf32> -> vector<8x512xf32>
    %232 = arith.addf %229, %231 : vector<8x512xf32>
    %233 = vector.extract_strided_slice %232 {offsets = [0, 0], sizes = [8, 128], strides = [1, 1]} : vector<8x512xf32> to vector<8x128xf32>
    %234 = arith.negf %233 : vector<8x128xf32>
    %235 = math.exp %234 : vector<8x128xf32>
    %cst_68 = arith.constant 1.000000e+00 : f32
    %236 = vector.broadcast %cst_68 : f32 to vector<8x128xf32>
    %237 = arith.addf %236, %235 : vector<8x128xf32>
    %238 = arith.divf %236, %237 : vector<8x128xf32>
    %239 = vector.extract_strided_slice %232 {offsets = [0, 128], sizes = [8, 128], strides = [1, 1]} : vector<8x512xf32> to vector<8x128xf32>
    %240 = arith.negf %239 : vector<8x128xf32>
    %241 = math.exp %240 : vector<8x128xf32>
    %cst_69 = arith.constant 1.000000e+00 : f32
    %242 = vector.broadcast %cst_69 : f32 to vector<8x128xf32>
    %243 = arith.addf %242, %241 : vector<8x128xf32>
    %244 = arith.divf %242, %243 : vector<8x128xf32>
    %245 = vector.extract_strided_slice %232 {offsets = [0, 256], sizes = [8, 128], strides = [1, 1]} : vector<8x512xf32> to vector<8x128xf32>
    %246 = math.tanh %245 : vector<8x128xf32>
    %247 = vector.extract_strided_slice %232 {offsets = [0, 384], sizes = [8, 128], strides = [1, 1]} : vector<8x512xf32> to vector<8x128xf32>
    %248 = arith.negf %247 : vector<8x128xf32>
    %249 = math.exp %248 : vector<8x128xf32>
    %cst_70 = arith.constant 1.000000e+00 : f32
    %250 = vector.broadcast %cst_70 : f32 to vector<8x128xf32>
    %251 = arith.addf %250, %249 : vector<8x128xf32>
    %252 = arith.divf %250, %251 : vector<8x128xf32>
    %253 = arith.mulf %244, %220 : vector<8x128xf32>
    %254 = arith.mulf %238, %246 : vector<8x128xf32>
    %255 = arith.addf %253, %254 : vector<8x128xf32>
    %256 = math.tanh %255 : vector<8x128xf32>
    %257 = arith.mulf %252, %256 : vector<8x128xf32>
    %258 = arith.index_cast %c6_i32 : i32 to index
    %c0_71 = arith.constant 0 : index
    %c0_72 = arith.constant 0 : index
    %259 = vector.load %arg7[%258, %c0_71, %c0_72] : memref<8x8x128xf32, #tpu.memory_space<vmem>>, vector<1x8x128xf32>
    %260 = vector.shape_cast %259 : vector<1x8x128xf32> to vector<8x128xf32>
    %261 = vector.shape_cast %257 : vector<8x128xf32> to vector<1x8x128xf32>
    tpu.vector_store %arg7[%258, %c0_71, %c0_72], %261 {strides = array<i32>} : memref<8x8x128xf32, #tpu.memory_space<vmem>>, vector<1x8x128xf32>,
    %c7_i32 = arith.constant 7 : i32
    %262 = arith.index_cast %c7_i32 : i32 to index
    %c0_73 = arith.constant 0 : index
    %c0_74 = arith.constant 0 : index
    %263 = vector.load %arg10[%262, %c0_73, %c0_74] : memref<8x8x512xf32, #tpu.memory_space<vmem>>, vector<1x8x512xf32>
    %264 = vector.shape_cast %263 : vector<1x8x512xf32> to vector<8x512xf32>
    %265 = arith.truncf %257 : vector<8x128xf32> to vector<8x128xbf16>
    %cst_75 = arith.constant dense<0.000000e+00> : vector<8x512xf32>
    %266 = tpu.matmul %265, %14, %cst_75 {dimension_numbers = #tpu.dot_dimension_numbers<[1], [0], [0], [1], [0, 0, 1, 1], [], []>} : vector<8x128xbf16>, vector<128x512xbf16>, vector<8x512xf32> -> vector<8x512xf32>
    %267 = arith.addf %264, %266 : vector<8x512xf32>
    %268 = vector.extract_strided_slice %267 {offsets = [0, 0], sizes = [8, 128], strides = [1, 1]} : vector<8x512xf32> to vector<8x128xf32>
    %269 = arith.negf %268 : vector<8x128xf32>
    %270 = math.exp %269 : vector<8x128xf32>
    %cst_76 = arith.constant 1.000000e+00 : f32
    %271 = vector.broadcast %cst_76 : f32 to vector<8x128xf32>
    %272 = arith.addf %271, %270 : vector<8x128xf32>
    %273 = arith.divf %271, %272 : vector<8x128xf32>
    %274 = vector.extract_strided_slice %267 {offsets = [0, 128], sizes = [8, 128], strides = [1, 1]} : vector<8x512xf32> to vector<8x128xf32>
    %275 = arith.negf %274 : vector<8x128xf32>
    %276 = math.exp %275 : vector<8x128xf32>
    %cst_77 = arith.constant 1.000000e+00 : f32
    %277 = vector.broadcast %cst_77 : f32 to vector<8x128xf32>
    %278 = arith.addf %277, %276 : vector<8x128xf32>
    %279 = arith.divf %277, %278 : vector<8x128xf32>
    %280 = vector.extract_strided_slice %267 {offsets = [0, 256], sizes = [8, 128], strides = [1, 1]} : vector<8x512xf32> to vector<8x128xf32>
    %281 = math.tanh %280 : vector<8x128xf32>
    %282 = vector.extract_strided_slice %267 {offsets = [0, 384], sizes = [8, 128], strides = [1, 1]} : vector<8x512xf32> to vector<8x128xf32>
    %283 = arith.negf %282 : vector<8x128xf32>
    %284 = math.exp %283 : vector<8x128xf32>
    %cst_78 = arith.constant 1.000000e+00 : f32
    %285 = vector.broadcast %cst_78 : f32 to vector<8x128xf32>
    %286 = arith.addf %285, %284 : vector<8x128xf32>
    %287 = arith.divf %285, %286 : vector<8x128xf32>
    %288 = arith.mulf %279, %255 : vector<8x128xf32>
    %289 = arith.mulf %273, %281 : vector<8x128xf32>
    %290 = arith.addf %288, %289 : vector<8x128xf32>
    %291 = math.tanh %290 : vector<8x128xf32>
    %292 = arith.mulf %287, %291 : vector<8x128xf32>
    %293 = arith.index_cast %c7_i32 : i32 to index
    %c0_79 = arith.constant 0 : index
    %c0_80 = arith.constant 0 : index
    %294 = vector.load %arg7[%293, %c0_79, %c0_80] : memref<8x8x128xf32, #tpu.memory_space<vmem>>, vector<1x8x128xf32>
    %295 = vector.shape_cast %294 : vector<1x8x128xf32> to vector<8x128xf32>
    %296 = vector.shape_cast %292 : vector<8x128xf32> to vector<1x8x128xf32>
    tpu.vector_store %arg7[%293, %c0_79, %c0_80], %296 {strides = array<i32>} : memref<8x8x128xf32, #tpu.memory_space<vmem>>, vector<1x8x128xf32>,
    %c8_i32 = arith.constant 8 : i32
    %c0_81 = arith.constant 0 : index
    %c0_82 = arith.constant 0 : index
    %297 = vector.load %arg11[%c0_81, %c0_82] : memref<8x128xf32, #tpu.memory_space<vmem>>, vector<8x128xf32>
    tpu.vector_store %arg11[%c0_81, %c0_82], %292 {strides = array<i32>} : memref<8x128xf32, #tpu.memory_space<vmem>>, vector<8x128xf32>,
    %c0_83 = arith.constant 0 : index
    %c0_84 = arith.constant 0 : index
    %298 = vector.load %arg12[%c0_83, %c0_84] : memref<8x128xf32, #tpu.memory_space<vmem>>, vector<8x128xf32>
    tpu.vector_store %arg12[%c0_83, %c0_84], %290 {strides = array<i32>} : memref<8x128xf32, #tpu.memory_space<vmem>>, vector<8x128xf32>,
    %c0_i32_85 = arith.constant 0 : i32
    %299 = arith.cmpi eq, %arg0, %c0_i32_85 : i32
    %300 = arith.extui %299 : i1 to i32
    %c0_i32_86 = arith.constant 0 : i32
    %301 = arith.cmpi ne, %300, %c0_i32_86 : i32
    scf.if %301 {
      %c0_87 = arith.constant 0 : index
      %c0_88 = arith.constant 0 : index
      %302 = vector.load %arg8[%c0_87, %c0_88] : memref<8x128xf32, #tpu.memory_space<vmem>>, vector<8x128xf32>
      tpu.vector_store %arg8[%c0_87, %c0_88], %292 {strides = array<i32>} : memref<8x128xf32, #tpu.memory_space<vmem>>, vector<8x128xf32>,
      %c0_89 = arith.constant 0 : index
      %c0_90 = arith.constant 0 : index
      %303 = vector.load %arg9[%c0_89, %c0_90] : memref<8x128xf32, #tpu.memory_space<vmem>>, vector<8x128xf32>
      tpu.vector_store %arg9[%c0_89, %c0_90], %290 {strides = array<i32>} : memref<8x128xf32, #tpu.memory_space<vmem>>, vector<8x128xf32>,
    } else {
    }
    return
  }
  func.func @transform_0(%arg0: i32) -> (i32, i32, i32) {
    %c0_i32 = arith.constant 0 : i32
    %c0_i32_0 = arith.constant 0 : i32
    %c0_i32_1 = arith.constant 0 : i32
    return %arg0, %c0_i32, %c0_i32_0 : i32, i32, i32
  }
  func.func @transform_1(%arg0: i32) -> (i32, i32) {
    %c0_i32 = arith.constant 0 : i32
    %c0_i32_0 = arith.constant 0 : i32
    %c0_i32_1 = arith.constant 0 : i32
    return %c0_i32, %c0_i32_0 : i32, i32
  }
  func.func @transform_2(%arg0: i32) -> (i32, i32) {
    %c0_i32 = arith.constant 0 : i32
    %c0_i32_0 = arith.constant 0 : i32
    %c0_i32_1 = arith.constant 0 : i32
    return %c0_i32, %c0_i32_0 : i32, i32
  }
  func.func @transform_3(%arg0: i32) -> (i32, i32) {
    %c0_i32 = arith.constant 0 : i32
    %c0_i32_0 = arith.constant 0 : i32
    %c0_i32_1 = arith.constant 0 : i32
    return %c0_i32, %c0_i32_0 : i32, i32
  }
  func.func @transform_4(%arg0: i32) -> (i32, i32) {
    %c0_i32 = arith.constant 0 : i32
    %c0_i32_0 = arith.constant 0 : i32
    %c0_i32_1 = arith.constant 0 : i32
    return %c0_i32, %c0_i32_0 : i32, i32
  }
  func.func @transform_5(%arg0: i32) -> (i32, i32) {
    %c0_i32 = arith.constant 0 : i32
    %c0_i32_0 = arith.constant 0 : i32
    %c0_i32_1 = arith.constant 0 : i32
    return %c0_i32, %c0_i32_0 : i32, i32
  }
  func.func @transform_6(%arg0: i32) -> (i32, i32, i32) {
    %c0_i32 = arith.constant 0 : i32
    %c0_i32_0 = arith.constant 0 : i32
    %c0_i32_1 = arith.constant 0 : i32
    return %arg0, %c0_i32, %c0_i32_0 : i32, i32, i32
  }
  func.func @transform_7(%arg0: i32) -> (i32, i32) {
    %c0_i32 = arith.constant 0 : i32
    %c0_i32_0 = arith.constant 0 : i32
    %c0_i32_1 = arith.constant 0 : i32
    return %c0_i32, %c0_i32_0 : i32, i32
  }
  func.func @transform_8(%arg0: i32) -> (i32, i32) {
    %c0_i32 = arith.constant 0 : i32
    %c0_i32_0 = arith.constant 0 : i32
    %c0_i32_1 = arith.constant 0 : i32
    return %c0_i32, %c0_i32_0 : i32, i32
  }
}

</mosaic_0001>

<bundles_post_ra>
// kernel: lstm_forward.7
= control target key start
LH: loop header
LB: loop body
LE: loop exit
PB: predicated region body
PF: predicated region fallthrough
CT: control target
= control target key end

     0   :  { %s339_s1 = inlined_call_operand.vmem [shape: bf16[128,128], index: 1, kind: input, shape index: {}]   ;;  %s340_s0 = inlined_call_operand.vmem [shape: f32[64,128], index: 0, kind: input, shape index: {}]   ;;  %s341_s2 = inlined_call_operand.vmem [shape: f32[1,128], index: 2, kind: input, shape index: {}]   ;;  %s342_s3 = inlined_call_operand.vmem [shape: f32[64,128], index: 3, kind: output, shape index: {}]  }
   0x1   :  { %v236_v0 = vld [vmem:[%s339_s1] sm:$0xff]   ;;  %v237_v1 = vld [vmem:[%s339_s1 + $0x8] sm:$0xff]   ;;  %v238_v2 = vld [vmem:[%s339_s1 + $0x10] sm:$0xff]  }
   0x2   :  { %196 = vmatprep.subr.bf16.mxu0 %v236_v0  ;;  %220 = vmatprep.subr.bf16.mxu1 %v236_v0  ;;  %v239_v3 = vld [vmem:[%s339_s1 + $0x18] sm:$0xff]   ;;  %v15_v4 = vld [vmem:[%s340_s0] sm:$0xff]  ;;  %v16_v5 = vld [vmem:[%s340_s0 + $0x8] sm:$0xff] }
   0x3   :  { %197 = vmatpush3.bf16.msra.mxu0 %v236_v0  ;;  %228 = vmatpush3.bf16.msra.mxu1 %v236_v0  ;;  %v19_v6 = vld [vmem:[%s340_s0 + $0x20] sm:$0xff]  ;;  %v23_v7 = vpack.c.bf16 %v16_v5, %v15_v4  ;;  %v20_v8 = vld [vmem:[%s340_s0 + $0x28] sm:$0xff]  ;;  %v242_v12 = vld [vmem:[%s339_s1 + $0x30] sm:$0xff]  }
   0x4   :  { %198 = vmatprep.subr.bf16.mxu0 %v237_v1  ;;  %221 = vmatprep.subr.bf16.mxu1 %v237_v1  ;;  %v25_v9 = vpack.c.bf16 %v20_v8, %v19_v6  ;;  %v240_v10 = vld [vmem:[%s339_s1 + $0x20] sm:$0xff]   ;;  %v241_v11 = vld [vmem:[%s339_s1 + $0x28] sm:$0xff]   ;;  %v243_v13 = vld [vmem:[%s339_s1 + $0x38] sm:$0xff]  }
   0x5   :  { %212 = vmatprep.mubr.bf16.mxu0 %v23_v7  ;;  %v17_v14 = vld [vmem:[%s340_s0 + $0x10] sm:$0xff]  ;;  %v18_v15 = vld [vmem:[%s340_s0 + $0x18] sm:$0xff]  ;;  %v175_v20 = vld [vmem:[%s341_s2] ss:$0 sm:$0xff] }
   0x6   :  { %216 = vmatprep.mubr.bf16.mxu1 %v25_v9  ;;  %v21_v16 = vld [vmem:[%s340_s0 + $0x30] sm:$0xff]  ;;  %v22_v17 = vld [vmem:[%s340_s0 + $0x38] sm:$0xff]  ;;  %v24_v18 = vpack.c.bf16 %v18_v15, %v17_v14 }
   0x7   :  { %199 = vmatpush3.bf16.msra.mxu0 %v237_v1  ;;  %229 = vmatpush3.bf16.msra.mxu1 %v237_v1  ;;  %v26_v19 = vpack.c.bf16 %v22_v17, %v21_v16 }
   0x8   :  { %200 = vmatprep.subr.bf16.mxu0 %v238_v2  ;;  %222 = vmatprep.subr.bf16.mxu1 %v238_v2 }
   0xb   :  { %201 = vmatpush3.bf16.msra.mxu0 %v238_v2  ;;  %230 = vmatpush3.bf16.msra.mxu1 %v238_v2 }
   0xc   :  { %202 = vmatprep.subr.bf16.mxu0 %v239_v3  ;;  %223 = vmatprep.subr.bf16.mxu1 %v239_v3 }
   0xf   :  { %203 = vmatpush3.bf16.msra.mxu0 %v239_v3  ;;  %231 = vmatpush3.bf16.msra.mxu1 %v239_v3 }
  0x10   :  { %204 = vmatprep.subr.bf16.mxu0 %v240_v10  ;;  %224 = vmatprep.subr.bf16.mxu1 %v240_v10 }
  0x13   :  { %205 = vmatpush3.bf16.msra.mxu0 %v240_v10  ;;  %232 = vmatpush3.bf16.msra.mxu1 %v240_v10 }
  0x14   :  { %206 = vmatprep.subr.bf16.mxu0 %v241_v11  ;;  %225 = vmatprep.subr.bf16.mxu1 %v241_v11 }
  0x17   :  { %207 = vmatpush3.bf16.msra.mxu0 %v241_v11  ;;  %233 = vmatpush3.bf16.msra.mxu1 %v241_v11 }
  0x18   :  { %208 = vmatprep.subr.bf16.mxu0 %v242_v12  ;;  %226 = vmatprep.subr.bf16.mxu1 %v242_v12 }
  0x1b   :  { %209 = vmatpush3.bf16.msra.mxu0 %v242_v12  ;;  %234 = vmatpush3.bf16.msra.mxu1 %v242_v12 }
  0x1c   :  { %210 = vmatprep.subr.bf16.mxu0 %v243_v13  ;;  %227 = vmatprep.subr.bf16.mxu1 %v243_v13 }
  0x1f   :  { %211 = vmatpush3.bf16.msra.mxu0 %v243_v13  ;;  %235 = vmatpush3.bf16.msra.mxu1 %v243_v13 }
  0x22   :  { %213 = vmatmul.mubr.bf16.vlgmr.msra.gmra.mrb[0].mxu0 %v24_v18  ;;  %217 = vmatmul.mubr.bf16.vlgmr.msra.gmra.mrb[0].mxu1 %v26_v19 }
  0xf5   :  { %v214_v21 = vpop.f32.mrb[0].mxu0  ;;  %v218_v22 = vpop.f32.mrb[0].mxu1 }
  0xf6   :  { %v141_v23 = vadd.f32 %v214_v21, %v175_v20  ;;  %v157_v24 = vadd.f32 %v218_v22, %v175_v20  ;;  %v132_v25 = vpop.f32.mrb[1].mxu0  ;;  %v148_v26 = vpop.f32.mrb[1].mxu1 }
  0xf7   :  { %v133_v27 = vadd.f32 %v175_v20, %v132_v25  ;;  %v149_v28 = vadd.f32 %v175_v20, %v148_v26  ;;  %v215_v29 = vpop.f32.mrb[2].mxu0  ;;  %v219_v30 = vpop.f32.mrb[2].mxu1 }
  0xf8   :  { %165 = vst [vmem:[%s342_s3 + $0x10] sm:$0xff] %v141_v23  ;;  %169 = vst [vmem:[%s342_s3 + $0x30] sm:$0xff] %v157_v24  ;;  %v144_v31 = vadd.f32 %v215_v29, %v175_v20  ;;  %v160_v32 = vadd.f32 %v219_v30, %v175_v20  ;;  %v135_v33 = vpop.f32.mrb[3].mxu0  ;;  %v151_v34 = vpop.f32.mrb[3].mxu1 }
  0xf9   :  { %163 = vst [vmem:[%s342_s3] sm:$0xff] %v133_v27  ;;  %167 = vst [vmem:[%s342_s3 + $0x20] sm:$0xff] %v149_v28  ;;  %v136_v35 = vadd.f32 %v175_v20, %v135_v33  ;;  %v152_v36 = vadd.f32 %v175_v20, %v151_v34 }
  0xfa   :  { %166 = vst [vmem:[%s342_s3 + $0x18] sm:$0xff] %v144_v31  ;;  %170 = vst [vmem:[%s342_s3 + $0x38] sm:$0xff] %v160_v32 }
  0xfb   :  { %164 = vst [vmem:[%s342_s3 + $0x8] sm:$0xff] %v136_v35  ;;  %168 = vst [vmem:[%s342_s3 + $0x28] sm:$0xff] %v152_v36 }

// kernel: lstm_forward.4
= control target key start
LH: loop header
LB: loop body
LE: loop exit
PB: predicated region body
PF: predicated region fallthrough
CT: control target
= control target key end

     0   :  { %14 = vsyncpa [#allocation6], 0  ;;  %s2020_s27 = smov [#allocation5]   ;;  %s2758_s0 = inlined_call_operand.vmem [shape: f32[8,8,128], index: 0, kind: input, shape index: {}]   ;;  %s2759_s1 = inlined_call_operand.vmem [shape: bf16[128,512], index: 1, kind: input, shape index: {}]   ;;  %s2760_s2 = inlined_call_operand.hbm [shape: bf16[128,512], index: 2, kind: input, shape index: {}]   ;;  %s2761_s3 = inlined_call_operand.vmem [shape: f32[1,512], index: 3, kind: input, shape index: {}]   ;;  %s2762_s4 = inlined_call_operand.vmem [shape: f32[8,128], index: 4, kind: input, shape index: {}]   ;;  %s2763_s5 = inlined_call_operand.vmem [shape: f32[8,128], index: 5, kind: input, shape index: {}]   ;;  %s2764_s6 = inlined_call_operand.vmem [shape: f32[8,8,128], index: 6, kind: output, shape index: {0}]   ;;  %s2765_s7 = inlined_call_operand.vmem [shape: f32[8,128], index: 7, kind: output, shape index: {1}]   ;;  %s2766_s8 = inlined_call_operand.vmem [shape: f32[8,128], index: 8, kind: output, shape index: {2}]  }
   0x1   :  { %s24_s28 = sshll.u32 %s2020_s27, 4  ;;  %s1996_s9 = scalar_lea.hbm %s2760_s2, 4096  ;;  %s25_s28 = int_to_ptr.vmem [resolvable:$true] %s24_s28 }
   0x2   :  { %p1997_p0 = scmp.ne.s32.totalorder %s2760_s2, %s1996_s9  ;;  %p2000_p1 = scmp.lt.u32.totalorder %s1996_s9, %s2760_s2 }
   0x4   :  { %p2002_p2 = pnand %p2000_p1, %p1997_p0 }
   0x6   :  { %2005 = shalt.err (!%p2002_p2)
}
   0x7   :  { %s2006_s14 = scalar_lea.vmem %s25_s28, 4096  ;;  %p2011_p4 = scmp.lt.s32.totalorder %s25_s28, %s25_s28 }
   0x8   :  { %p2007_p3 = scmp.ne.s32.totalorder %s25_s28, %s2006_s14  ;;  %p2012_p5 = scmp.lt.s32.totalorder %s2006_s14, %s2006_s14 }
   0xa   :  { %p2013_p6 = por %p2012_p5, %p2011_p4 }
   0xc   :  { %p2014_p7 = pnand %p2013_p6, %p2007_p3 }
   0xe   :  { %2017 = shalt.err (!%p2014_p7)
}
   0xf   :  { %s2021_s15 = smov 256   ;;  %s2022_s16 = smov 16  }
  0x10   :  { %30 = dma.hbm_to_vmem [thread:$0]  %s2760_s2, 4096, %s25_s28, [#allocation6], %s2021_s15, %s2021_s15, %s2022_s16  }
  0x11   :  { %2018 = dma.done.wait [#allocation6], 4096  }
  0x12   :  { %2019 = vsyncadd [#allocation6], 4294963200  ;;  %v2767_v0 = vmov 0   ;;  %v1740_v1 = vld [vmem:[%s2759_s1 + $0x4] ss:$16 sps:$4 sm:$0xff]   ;;  %v50_v34 = vld [vmem:[%s2758_s0 + $0x8] sm:$0xff] }
  0x13   :  { %285 = vmatprep.mubr.bf16.mxu0 %v2767_v0  ;;  %358 = vmatprep.mubr.bf16.mxu1 %v2767_v0  ;;  %v1742_v2 = vld [vmem:[%s2759_s1 + $0xc] ss:$16 sps:$4 sm:$0xff]   ;;  %v1744_v3 = vld [vmem:[%s2759_s1] ss:$16 sps:$4 sm:$0xff]   ;;  %v1745_v4 = vld [vmem:[%s2759_s1 + $0x8] ss:$16 sps:$4 sm:$0xff]  }
  0x14   :  { %253 = vmatprep.subr.bf16.mxu0 %v1740_v1  ;;  %326 = vmatprep.subr.bf16.mxu1 %v1742_v2  ;;  %v1746_v5 = vld [vmem:[%s2759_s1 + $0x24] ss:$16 sps:$4 sm:$0xff]   ;;  %v1748_v6 = vld [vmem:[%s2759_s1 + $0x2c] ss:$16 sps:$4 sm:$0xff]   ;;  %v1750_v7 = vld [vmem:[%s2759_s1 + $0x20] ss:$16 sps:$4 sm:$0xff]  }
  0x15   :  { %254 = vmatpush1.bf16.msra.mxu0 %v1744_v3  ;;  %327 = vmatpush1.bf16.msra.mxu1 %v1745_v4  ;;  %v1751_v8 = vld [vmem:[%s2759_s1 + $0x28] ss:$16 sps:$4 sm:$0xff]   ;;  %v1752_v9 = vld [vmem:[%s2759_s1 + $0x44] ss:$16 sps:$4 sm:$0xff]   ;;  %v1754_v10 = vld [vmem:[%s2759_s1 + $0x4c] ss:$16 sps:$4 sm:$0xff]  }
  0x16   :  { %255 = vmatprep.subr.bf16.mxu0 %v1746_v5  ;;  %328 = vmatprep.subr.bf16.mxu1 %v1748_v6  ;;  %v1756_v11 = vld [vmem:[%s2759_s1 + $0x40] ss:$16 sps:$4 sm:$0xff]   ;;  %v1757_v12 = vld [vmem:[%s2759_s1 + $0x48] ss:$16 sps:$4 sm:$0xff]   ;;  %v1758_v13 = vld [vmem:[%s2759_s1 + $0x64] ss:$16 sps:$4 sm:$0xff]  }
  0x17   :  { %v1760_v14 = vld [vmem:[%s2759_s1 + $0x6c] ss:$16 sps:$4 sm:$0xff]   ;;  %v1762_v15 = vld [vmem:[%s2759_s1 + $0x60] ss:$16 sps:$4 sm:$0xff]   ;;  %v1763_v16 = vld [vmem:[%s2759_s1 + $0x68] ss:$16 sps:$4 sm:$0xff]  }
  0x18   :  { %v1764_v17 = vld [vmem:[%s2759_s1 + $0x84] ss:$16 sps:$4 sm:$0xff]   ;;  %v1766_v18 = vld [vmem:[%s2759_s1 + $0x8c] ss:$16 sps:$4 sm:$0xff]   ;;  %v1768_v19 = vld [vmem:[%s2759_s1 + $0x80] ss:$16 sps:$4 sm:$0xff]  }
  0x19   :  { %256 = vmatpush1.bf16.msra.mxu0 %v1750_v7  ;;  %329 = vmatpush1.bf16.msra.mxu1 %v1751_v8  ;;  %v1769_v20 = vld [vmem:[%s2759_s1 + $0x88] ss:$16 sps:$4 sm:$0xff]   ;;  %v1770_v21 = vld [vmem:[%s2759_s1 + $0xa4] ss:$16 sps:$4 sm:$0xff]   ;;  %v1772_v22 = vld [vmem:[%s2759_s1 + $0xac] ss:$16 sps:$4 sm:$0xff]  }
  0x1a   :  { %257 = vmatprep.subr.bf16.mxu0 %v1752_v9  ;;  %330 = vmatprep.subr.bf16.mxu1 %v1754_v10  ;;  %v1774_v23 = vld [vmem:[%s2759_s1 + $0xa0] ss:$16 sps:$4 sm:$0xff]   ;;  %v1775_v24 = vld [vmem:[%s2759_s1 + $0xa8] ss:$16 sps:$4 sm:$0xff]   ;;  %v1776_v25 = vld [vmem:[%s2759_s1 + $0xc4] ss:$16 sps:$4 sm:$0xff]  }
  0x1b   :  { %v1778_v26 = vld [vmem:[%s2759_s1 + $0xcc] ss:$16 sps:$4 sm:$0xff]   ;;  %v1780_v27 = vld [vmem:[%s2759_s1 + $0xc0] ss:$16 sps:$4 sm:$0xff]   ;;  %v1781_v28 = vld [vmem:[%s2759_s1 + $0xc8] ss:$16 sps:$4 sm:$0xff]  }
  0x1c   :  { %v1782_v29 = vld [vmem:[%s2759_s1 + $0xe4] ss:$16 sps:$4 sm:$0xff]   ;;  %v1784_v30 = vld [vmem:[%s2759_s1 + $0xec] ss:$16 sps:$4 sm:$0xff]   ;;  %v1786_v31 = vld [vmem:[%s2759_s1 + $0xe0] ss:$16 sps:$4 sm:$0xff]  }
  0x1d   :  { %258 = vmatpush1.bf16.msra.mxu0 %v1756_v11  ;;  %331 = vmatpush1.bf16.msra.mxu1 %v1757_v12  ;;  %v1787_v32 = vld [vmem:[%s2759_s1 + $0xe8] ss:$16 sps:$4 sm:$0xff]   ;;  %v49_v33 = vld [vmem:[%s2758_s0] sm:$0xff]  ;;  %v2187_v36 = vld [vmem:[#allocation5 + $0xc] ss:$16 sps:$4 sm:$0xff]  }
  0x1e   :  { %259 = vmatprep.subr.bf16.mxu0 %v1758_v13  ;;  %332 = vmatprep.subr.bf16.mxu1 %v1760_v14  ;;  %v2185_v35 = vld [vmem:[#allocation5 + $0x4] ss:$16 sps:$4 sm:$0xff]   ;;  %v57_v37 = vpack.c.bf16 %v50_v34, %v49_v33  ;;  %v2189_v38 = vld [vmem:[#allocation5] ss:$16 sps:$4 sm:$0xff]   ;;  %v2191_v39 = vld [vmem:[#allocation5 + $0x8] ss:$16 sps:$4 sm:$0xff]  }
  0x1f   :  { %v2195_v40 = vld [vmem:[#allocation5 + $0x24] ss:$16 sps:$4 sm:$0xff]   ;;  %v2197_v41 = vld [vmem:[#allocation5 + $0x2c] ss:$16 sps:$4 sm:$0xff]   ;;  %v2199_v42 = vld [vmem:[#allocation5 + $0x20] ss:$16 sps:$4 sm:$0xff]  }
  0x20   :  { %v2201_v43 = vld [vmem:[#allocation5 + $0x28] ss:$16 sps:$4 sm:$0xff]   ;;  %v51_v44 = vld [vmem:[%s2758_s0 + $0x10] sm:$0xff]  ;;  %v2215_v47 = vld [vmem:[#allocation5 + $0x4c] ss:$16 sps:$4 sm:$0xff]  }
  0x21   :  { %260 = vmatpush1.bf16.msra.mxu0 %v1762_v15  ;;  %333 = vmatpush1.bf16.msra.mxu1 %v1763_v16  ;;  %v52_v45 = vld [vmem:[%s2758_s0 + $0x18] sm:$0xff]  ;;  %v2211_v46 = vld [vmem:[#allocation5 + $0x44] ss:$16 sps:$4 sm:$0xff]   ;;  %v2219_v49 = vld [vmem:[#allocation5 + $0x40] ss:$16 sps:$4 sm:$0xff]   ;;  %v401_v16 = vlaneseq }
  0x22   :  { %261 = vmatprep.subr.bf16.mxu0 %v1764_v17  ;;  %334 = vmatprep.subr.bf16.mxu1 %v1766_v18  ;;  %v58_v48 = vpack.c.bf16 %v52_v45, %v51_v44  ;;  %v2221_v50 = vld [vmem:[#allocation5 + $0x48] ss:$16 sps:$4 sm:$0xff]   ;;  %v2225_v51 = vld [vmem:[#allocation5 + $0x64] ss:$16 sps:$4 sm:$0xff]   ;;  %v2229_v52 = vld [vmem:[#allocation5 + $0x6c] ss:$16 sps:$4 sm:$0xff]  }
  0x23   :  { %v2231_v53 = vld [vmem:[#allocation5 + $0x60] ss:$16 sps:$4 sm:$0xff]   ;;  %v2233_v54 = vld [vmem:[#allocation5 + $0x68] ss:$16 sps:$4 sm:$0xff]   ;;  %v2245_v57 = vld [vmem:[#allocation5 + $0x84] ss:$16 sps:$4 sm:$0xff]  }
  0x24   :  { %v53_v55 = vld [vmem:[%s2758_s0 + $0x20] sm:$0xff]  ;;  %v54_v56 = vld [vmem:[%s2758_s0 + $0x28] sm:$0xff]  ;;  %v55_v3 = vld [vmem:[%s2758_s0 + $0x30] sm:$0xff]  ;;  %v402_v17 = vshrl.u32 %v401_v16, 7 }
  0x25   :  { %262 = vmatpush1.bf16.msra.mxu0 %v1768_v19  ;;  %335 = vmatpush1.bf16.msra.mxu1 %v1769_v20  ;;  %v2247_v58 = vld [vmem:[#allocation5 + $0x8c] ss:$16 sps:$4 sm:$0xff]   ;;  %v59_v59 = vpack.c.bf16 %v54_v56, %v53_v55  ;;  %v2253_v60 = vld [vmem:[#allocation5 + $0x80] ss:$16 sps:$4 sm:$0xff]   ;;  %v2255_v61 = vld [vmem:[#allocation5 + $0x88] ss:$16 sps:$4 sm:$0xff]  }
  0x26   :  { %263 = vmatprep.subr.bf16.mxu0 %v1770_v21  ;;  %336 = vmatprep.subr.bf16.mxu1 %v1772_v22  ;;  %v2259_v62 = vld [vmem:[#allocation5 + $0xa4] ss:$16 sps:$4 sm:$0xff]   ;;  %v2261_v63 = vld [vmem:[#allocation5 + $0xac] ss:$16 sps:$4 sm:$0xff]   ;;  %v2263_v1 = vld [vmem:[#allocation5 + $0xa0] ss:$16 sps:$4 sm:$0xff]  }
  0x27   :  { %v2267_v2 = vld [vmem:[#allocation5 + $0xa8] ss:$16 sps:$4 sm:$0xff]   ;;  %v2277_v5 = vld [vmem:[#allocation5 + $0xc4] ss:$16 sps:$4 sm:$0xff]   ;;  %v2279_v6 = vld [vmem:[#allocation5 + $0xcc] ss:$16 sps:$4 sm:$0xff]  }
  0x28   :  { %v56_v4 = vld [vmem:[%s2758_s0 + $0x38] sm:$0xff]  ;;  %v2285_v8 = vld [vmem:[#allocation5 + $0xc0] ss:$16 sps:$4 sm:$0xff]   ;;  %v2291_v10 = vld [vmem:[#allocation5 + $0xe4] ss:$16 sps:$4 sm:$0xff]   ;;  %v411_v18 = vsub.s32 2, %v402_v17 }
  0x29   :  { %264 = vmatpush1.bf16.msra.mxu0 %v1774_v23  ;;  %337 = vmatpush1.bf16.msra.mxu1 %v1775_v24  ;;  %v60_v7 = vpack.c.bf16 %v56_v4, %v55_v3  ;;  %v2287_v9 = vld [vmem:[#allocation5 + $0xc8] ss:$16 sps:$4 sm:$0xff]   ;;  %v2293_v11 = vld [vmem:[#allocation5 + $0xec] ss:$16 sps:$4 sm:$0xff]   ;;  %v2297_v12 = vld [vmem:[#allocation5 + $0xe0] ss:$16 sps:$4 sm:$0xff]  }
  0x2a   :  { %265 = vmatprep.subr.bf16.mxu0 %v1776_v25  ;;  %338 = vmatprep.subr.bf16.mxu1 %v1778_v26  ;;  %v2299_v13 = vld [vmem:[#allocation5 + $0xe8] ss:$16 sps:$4 sm:$0xff]   ;;  %v45_v14 = vld [vmem:[%s2762_s4] sm:$0xff]  ;;  %v415_v19 = vsub.s32 3, %v402_v17  ;;  %v403_v20 = vsub.s32 0, %v402_v17  ;;  %v407_v22 = vsub.s32 1, %v402_v17 }
  0x2b   :  { %v523_v15 = vpack.c.bf16 %v45_v14, %v45_v14  ;;  %v399_v21 = vld [vmem:[%s2761_s3] sm:$0xf] }
  0x2c   :  { %v2349_v23 = vrot.slane %v399_v21, %v411_v18  ;;  %v2355_v26 = vrot.slane %v399_v21, %v415_v19 }
  0x2d   :  { %266 = vmatpush1.bf16.msra.mxu0 %v1780_v27  ;;  %339 = vmatpush1.bf16.msra.mxu1 %v1781_v28  ;;  %v404_v27 = vrot.slane %v399_v21, %v403_v20 }
  0x2e   :  { %267 = vmatprep.subr.bf16.mxu0 %v1782_v29  ;;  %340 = vmatprep.subr.bf16.mxu1 %v1784_v30  ;;  %v408_v30 = vrot.slane %v399_v21, %v407_v22 }
  0x31   :  { %268 = vmatpush1.bf16.msra.mxu0 %v1786_v31  ;;  %341 = vmatpush1.bf16.msra.mxu1 %v1787_v32 }
  0x32   :  { %684 = vmatprep.subr.bf16.mxu0 %v2185_v35  ;;  %725 = vmatprep.subr.bf16.mxu1 %v2187_v36 }
  0x34   :  { %286 = vmatmul.mubr.bf16.vlgmr.msra.gmra.mrb[0].mxu0 %v57_v37  ;;  %359 = vmatmul.mubr.bf16.vlgmr.msra.gmra.mrb[0].mxu1 %v57_v37 }
  0x35   :  { %685 = vmatpush1.bf16.msra.mxu0 %v2189_v38  ;;  %726 = vmatpush1.bf16.msra.mxu1 %v2191_v39 }
  0x36   :  { %686 = vmatprep.subr.bf16.mxu0 %v2195_v40  ;;  %727 = vmatprep.subr.bf16.mxu1 %v2197_v41 }
  0x37   :  { %295 = vmatprep.mubr.bf16.mxu0 %v2767_v0  ;;  %368 = vmatprep.mubr.bf16.mxu1 %v2767_v0 }
  0x39   :  { %687 = vmatpush1.bf16.msra.mxu0 %v2199_v42  ;;  %728 = vmatpush1.bf16.msra.mxu1 %v2201_v43 }
  0x3a   :  { %688 = vmatprep.subr.bf16.mxu0 %v2211_v46  ;;  %729 = vmatprep.subr.bf16.mxu1 %v2215_v47 }
  0x3c   :  { %296 = vmatmul.mubr.bf16.gmra.mrb[4].mxu0 %v58_v48  ;;  %369 = vmatmul.mubr.bf16.gmra.mrb[4].mxu1 %v58_v48 }
  0x3d   :  { %689 = vmatpush1.bf16.msra.mxu0 %v2219_v49  ;;  %730 = vmatpush1.bf16.msra.mxu1 %v2221_v50 }
  0x3e   :  { %690 = vmatprep.subr.bf16.mxu0 %v2225_v51  ;;  %731 = vmatprep.subr.bf16.mxu1 %v2229_v52 }
  0x3f   :  { %305 = vmatprep.mubr.bf16.mxu0 %v2767_v0  ;;  %378 = vmatprep.mubr.bf16.mxu1 %v2767_v0 }
  0x41   :  { %691 = vmatpush1.bf16.msra.mxu0 %v2231_v53  ;;  %732 = vmatpush1.bf16.msra.mxu1 %v2233_v54 }
  0x42   :  { %692 = vmatprep.subr.bf16.mxu0 %v2245_v57  ;;  %733 = vmatprep.subr.bf16.mxu1 %v2247_v58 }
  0x44   :  { %306 = vmatmul.mubr.bf16.gmra.mrb[8].mxu0 %v59_v59  ;;  %379 = vmatmul.mubr.bf16.gmra.mrb[8].mxu1 %v59_v59 }
  0x45   :  { %693 = vmatpush1.bf16.msra.mxu0 %v2253_v60  ;;  %734 = vmatpush1.bf16.msra.mxu1 %v2255_v61 }
  0x46   :  { %694 = vmatprep.subr.bf16.mxu0 %v2259_v62  ;;  %735 = vmatprep.subr.bf16.mxu1 %v2261_v63 }
  0x47   :  { %315 = vmatprep.mubr.bf16.mxu0 %v2767_v0  ;;  %388 = vmatprep.mubr.bf16.mxu1 %v2767_v0 }
  0x49   :  { %695 = vmatpush1.bf16.msra.mxu0 %v2263_v1  ;;  %736 = vmatpush1.bf16.msra.mxu1 %v2267_v2 }
  0x4a   :  { %696 = vmatprep.subr.bf16.mxu0 %v2277_v5  ;;  %737 = vmatprep.subr.bf16.mxu1 %v2279_v6 }
  0x4c   :  { %316 = vmatmul.mubr.bf16.gmra.mrb[12].mxu0 %v60_v7  ;;  %389 = vmatmul.mubr.bf16.gmra.mrb[12].mxu1 %v60_v7 }
  0x4d   :  { %697 = vmatpush1.bf16.msra.mxu0 %v2285_v8  ;;  %738 = vmatpush1.bf16.msra.mxu1 %v2287_v9 }
  0x4e   :  { %698 = vmatprep.subr.bf16.mxu0 %v2291_v10  ;;  %739 = vmatprep.subr.bf16.mxu1 %v2293_v11 }
  0x4f   :  { %716 = vmatprep.mubr.bf16.mxu0 %v2767_v0  ;;  %757 = vmatprep.mubr.bf16.mxu1 %v2767_v0 }
  0x51   :  { %699 = vmatpush1.bf16.msra.mxu0 %v2297_v12  ;;  %740 = vmatpush1.bf16.msra.mxu1 %v2299_v13 }
  0x52   :  { %801 = vmatprep.subr.bf16.mxu0 %v2185_v35  ;;  %842 = vmatprep.subr.bf16.mxu1 %v2187_v36 }
  0x54   :  { %717 = vmatmul.mubr.bf16.vlgmr.msra.gmra.mrb[16].mxu0 %v523_v15  ;;  %758 = vmatmul.mubr.bf16.vlgmr.msra.gmra.mrb[16].mxu1 %v523_v15 }
  0x55   :  { %802 = vmatpush1.bf16.msra.mxu0 %v2189_v38  ;;  %843 = vmatpush1.bf16.msra.mxu1 %v2191_v39 }
  0x56   :  { %803 = vmatprep.subr.bf16.mxu0 %v2195_v40  ;;  %844 = vmatprep.subr.bf16.mxu1 %v2197_v41 }
  0x57   :  { %833 = vmatprep.mubr.bf16.mxu0 %v2767_v0  ;;  %874 = vmatprep.mubr.bf16.mxu1 %v2767_v0 }
  0x59   :  { %804 = vmatpush1.bf16.msra.mxu0 %v2199_v42  ;;  %845 = vmatpush1.bf16.msra.mxu1 %v2201_v43 }
  0x5a   :  { %805 = vmatprep.subr.bf16.mxu0 %v2211_v46  ;;  %846 = vmatprep.subr.bf16.mxu1 %v2215_v47 }
  0x5d   :  { %806 = vmatpush1.bf16.msra.mxu0 %v2219_v49  ;;  %847 = vmatpush1.bf16.msra.mxu1 %v2221_v50 }
  0x5e   :  { %807 = vmatprep.subr.bf16.mxu0 %v2225_v51  ;;  %848 = vmatprep.subr.bf16.mxu1 %v2229_v52 }
  0x61   :  { %808 = vmatpush1.bf16.msra.mxu0 %v2231_v53  ;;  %849 = vmatpush1.bf16.msra.mxu1 %v2233_v54 }
  0x62   :  { %809 = vmatprep.subr.bf16.mxu0 %v2245_v57  ;;  %850 = vmatprep.subr.bf16.mxu1 %v2247_v58 }
  0x65   :  { %810 = vmatpush1.bf16.msra.mxu0 %v2253_v60  ;;  %851 = vmatpush1.bf16.msra.mxu1 %v2255_v61 }
  0x66   :  { %811 = vmatprep.subr.bf16.mxu0 %v2259_v62  ;;  %852 = vmatprep.subr.bf16.mxu1 %v2261_v63 }
  0x69   :  { %812 = vmatpush1.bf16.msra.mxu0 %v2263_v1  ;;  %853 = vmatpush1.bf16.msra.mxu1 %v2267_v2 }
  0x6a   :  { %813 = vmatprep.subr.bf16.mxu0 %v2277_v5  ;;  %854 = vmatprep.subr.bf16.mxu1 %v2279_v6 }
  0x6d   :  { %814 = vmatpush1.bf16.msra.mxu0 %v2285_v8  ;;  %855 = vmatpush1.bf16.msra.mxu1 %v2287_v9 }
  0x6e   :  { %815 = vmatprep.subr.bf16.mxu0 %v2291_v10  ;;  %856 = vmatprep.subr.bf16.mxu1 %v2293_v11 }
  0x71   :  { %816 = vmatpush1.bf16.msra.mxu0 %v2297_v12  ;;  %857 = vmatpush1.bf16.msra.mxu1 %v2299_v13 }
  0x72   :  { %919 = vmatprep.subr.bf16.mxu0 %v2185_v35  ;;  %960 = vmatprep.subr.bf16.mxu1 %v2187_v36 }
 0x107   :  { %v2351_v24 = vpop.f32.mrb[0].mxu0  ;;  %v2353_v25 = vpop.f32.mrb[0].mxu1 }
 0x108   :  { %v289_v28 = vpop.f32.mrb[1].mxu0  ;;  %v362_v29 = vpop.f32.mrb[1].mxu1 }
 0x109   :  { %v291_v31 = vpop.f32.mrb[2].mxu0  ;;  %v364_v32 = vpop.f32.mrb[2].mxu1 }
 0x10a   :  { %v2357_v33 = vadd.f32 %v404_v27, %v291_v31  ;;  %v293_v34 = vpop.f32.mrb[3].mxu0  ;;  %v2360_v37 = vadd.f32 %v2349_v23, %v364_v32  ;;  %v366_v44 = vpop.f32.mrb[3].mxu1 }
 0x10b   :  { %v2362_v45 = vadd.f32 %v408_v30, %v293_v34  ;;  %v2365_v48 = vadd.f32 %v2355_v26, %v366_v44 }
 0x10f   :  { %v297_v55 = vpop.f32.mrb[4].mxu0  ;;  %v370_v56 = vpop.f32.mrb[4].mxu1 }
 0x110   :  { %v2367_v59 = vadd.f32 %v404_v27, %v297_v55  ;;  %v299_v3 = vpop.f32.mrb[5].mxu0  ;;  %v2370_v4 = vadd.f32 %v2349_v23, %v370_v56  ;;  %v372_v7 = vpop.f32.mrb[5].mxu1 }
 0x111   :  { %v2372_v14 = vadd.f32 %v408_v30, %v299_v3  ;;  %v301_v15 = vpop.f32.mrb[6].mxu0  ;;  %v2375_v16 = vadd.f32 %v2355_v26, %v372_v7  ;;  %v374_v17 = vpop.f32.mrb[6].mxu1 }
 0x112   :  { %v2377_v18 = vadd.f32 %v404_v27, %v301_v15  ;;  %v303_v19 = vpop.f32.mrb[7].mxu0  ;;  %v2380_v20 = vadd.f32 %v2349_v23, %v374_v17  ;;  %v376_v21 = vpop.f32.mrb[7].mxu1 }
 0x113   :  { %2769 = vst [vmem:[#allocation8_spill] sm:$0xff] %v2375_v16  ;;  %v2382_v22 = vadd.f32 %v408_v30, %v303_v19  ;;  %v2385_v31 = vadd.f32 %v2355_v26, %v376_v21 }
 0x114   :  { %2770 = vst [vmem:[#allocation9_spill] sm:$0xff] %v2377_v18  ;;  %2771 = vst [vmem:[#allocation10_spill] sm:$0xff] %v2380_v20 }
 0x115   :  { %2772 = vst [vmem:[#allocation11_spill] sm:$0xff] %v2382_v22  ;;  %2773 = vst [vmem:[#allocation12_spill] sm:$0xff] %v2385_v31 }
 0x117   :  { %v307_v32 = vpop.f32.mrb[8].mxu0  ;;  %v380_v34 = vpop.f32.mrb[8].mxu1 }
 0x118   :  { %v2387_v44 = vadd.f32 %v404_v27, %v307_v32  ;;  %v309_v55 = vpop.f32.mrb[9].mxu0  ;;  %v2390_v56 = vadd.f32 %v2349_v23, %v380_v34  ;;  %v382_v3 = vpop.f32.mrb[9].mxu1 }
 0x119   :  { %v2392_v7 = vadd.f32 %v408_v30, %v309_v55  ;;  %v311_v15 = vpop.f32.mrb[10].mxu0  ;;  %v2395_v17 = vadd.f32 %v2355_v26, %v382_v3  ;;  %v384_v19 = vpop.f32.mrb[10].mxu1 }
 0x11a   :  { %2774 = vst [vmem:[#allocation13_spill] sm:$0xff] %v2387_v44  ;;  %2775 = vst [vmem:[#allocation14_spill] sm:$0xff] %v2390_v56  ;;  %v2397_v0 = vadd.f32 %v404_v27, %v311_v15  ;;  %v313_v21 = vpop.f32.mrb[11].mxu0  ;;  %v2400_v31 = vadd.f32 %v2349_v23, %v384_v19  ;;  %v386_v32 = vpop.f32.mrb[11].mxu1 }
 0x11b   :  { %2776 = vst [vmem:[#allocation15_spill] sm:$0xff] %v2392_v7  ;;  %2777 = vst [vmem:[#allocation16_spill] sm:$0xff] %v2395_v17  ;;  %v2402_v44 = vadd.f32 %v408_v30, %v313_v21  ;;  %v2405_v34 = vadd.f32 %v2355_v26, %v386_v32 }
 0x11c   :  { %2778 = vst [vmem:[#allocation17_spill] sm:$0xff] %v2397_v0  ;;  %2779 = vst [vmem:[#allocation18_spill] sm:$0xff] %v2400_v31 }
 0x11d   :  { %2780 = vst [vmem:[#allocation19_spill] sm:$0xff] %v2402_v44  ;;  %2781 = vst [vmem:[#allocation20_spill] sm:$0xff] %v2405_v34 }
 0x11f   :  { %v317_v56 = vpop.f32.mrb[12].mxu0  ;;  %v390_v55 = vpop.f32.mrb[12].mxu1 }
 0x120   :  { %v2407_v7 = vadd.f32 %v404_v27, %v317_v56  ;;  %v319_v22 = vpop.f32.mrb[13].mxu0  ;;  %v2410_v3 = vadd.f32 %v2349_v23, %v390_v55  ;;  %v392_v15 = vpop.f32.mrb[13].mxu1 }
 0x121   :  { %v2412_v0 = vadd.f32 %v408_v30, %v319_v22  ;;  %v321_v17 = vpop.f32.mrb[14].mxu0  ;;  %v2415_v19 = vadd.f32 %v2355_v26, %v392_v15  ;;  %v394_v21 = vpop.f32.mrb[14].mxu1  ;;  %v421_v22 = vadd.f32 %v404_v27, %v2351_v24  ;;  %v422_v15 = vadd.f32 %v408_v30, %v289_v28 }
 0x122   :  { %2782 = vst [vmem:[#allocation21_spill] sm:$0xff] %v2407_v7  ;;  %2783 = vst [vmem:[#allocation22_spill] sm:$0xff] %v2410_v3  ;;  %v2417_v44 = vadd.f32 %v404_v27, %v321_v17  ;;  %v323_v32 = vpop.f32.mrb[15].mxu0  ;;  %v2420_v34 = vadd.f32 %v2349_v23, %v394_v21  ;;  %v396_v56 = vpop.f32.mrb[15].mxu1 }
 0x123   :  { %2784 = vst [vmem:[#allocation23_spill] sm:$0xff] %v2412_v0  ;;  %2785 = vst [vmem:[#allocation24_spill] sm:$0xff] %v2415_v19  ;;  %v2422_v7 = vadd.f32 %v408_v30, %v323_v32  ;;  %v2425_v55 = vadd.f32 %v2355_v26, %v396_v56  ;;  %v423_v0 = vadd.f32 %v2349_v23, %v2353_v25  ;;  %v47_v30 = vld [vmem:[%s2763_s5] sm:$0xff] }
 0x124   :  { %2786 = vst [vmem:[#allocation25_spill] sm:$0xff] %v2417_v44  ;;  %2787 = vst [vmem:[#allocation26_spill] sm:$0xff] %v2420_v34  ;;  %v424_v19 = vadd.f32 %v2355_v26, %v362_v29 }
 0x125   :  { %2788 = vst [vmem:[#allocation27_spill] sm:$0xff] %v2422_v7  ;;  %2789 = vst [vmem:[#allocation28_spill] sm:$0xff] %v2425_v55 }
 0x127   :  { %v718_v17 = vpop.f32.mrb[16].mxu0  ;;  %v759_v44 = vpop.f32.mrb[16].mxu1 }
 0x128   :  { %v766_v3 = vadd.f32 %v718_v17, %v421_v22  ;;  %v768_v31 = vadd.f32 %v759_v44, %v423_v0  ;;  %v720_v21 = vpop.f32.mrb[17].mxu0  ;;  %v761_v34 = vpop.f32.mrb[17].mxu1  ;;  %v2790_v22 = vmov 0  }
 0x129   :  { %v767_v20 = vadd.f32 %v720_v21, %v422_v15  ;;  %v769_v32 = vadd.f32 %v761_v34, %v424_v19  ;;  %v722_v7 = vpop.f32.mrb[18].mxu0  ;;  %v763_v18 = vpop.f32.mrb[18].mxu1 }
 0x12a   :  { %v1705_v56 = vmul.f32 -1.442695, %v766_v3  ;;  %v723_v55 = vpop.f32.mrb[19].mxu0  ;;  %v764_v16 = vpop.f32.mrb[19].mxu1 }
 0x12b   :  { %v1706_v24 = vmul.f32 -1.442695, %v767_v20  ;;  %v1707_v23 = vmul.f32 -1.442695, %v769_v32 }
 0x12c   :  { %1836 = vpow2.f32 %v1705_v56 }
 0x12d   :  { %1838 = vpow2.f32 %v1706_v24 }
 0x12e   :  { %1840 = vpow2.f32 %v1707_v23 }
 0x12f   :  { %1842 = vtanh.f32 %v768_v31 }
 0x136   :  { %v1837_v25 = vpop.eup %1836 }
 0x137   :  { %v1839_v27 = vpop.eup %1838  ;;  %v773_v26 = vadd.f32 1.0, %v1837_v25 }
 0x138   :  { %v779_v28 = vadd.f32 1.0, %v1839_v27  ;;  %v1841_v0 = vpop.eup %1840 }
 0x139   :  { %1844 = vrcp.f32 %v773_v26  ;;  %v1843_v29 = vpop.eup %1842  ;;  %v786_v44 = vadd.f32 1.0, %v1841_v0 }
 0x13a   :  { %1846 = vrcp.f32 %v779_v28 }
 0x13b   :  { %1848 = vrcp.f32 %v786_v44 }
 0x143   :  { %v1845_v18 = vpop.eup %1844 }
 0x144   :  { %v1847_v16 = vpop.eup %1846  ;;  %v790_v20 = vmul.f32 %v1845_v18, %v1843_v29 }
 0x145   :  { %v789_v7 = vmul.f32 %v1847_v16, %v47_v30  ;;  %v1849_v31 = vpop.eup %1848 }
 0x147   :  { %v2434_v34 = vadd.f32 %v790_v20, %v789_v7 }
 0x149   :  { %1850 = vtanh.f32 %v2434_v34 }
 0x153   :  { %v1851_v3 = vpop.eup %1850 }
 0x154   :  { %v793_v19 = vmul.f32 %v1851_v3, %v1849_v31 }
 0x156   :  { %794 = vst [vmem:[%s2764_s6] sm:$0xff] %v793_v19  ;;  %v800_v55 = vpack.c.bf16 %v793_v19, %v793_v19 }
 0x158   :  { %834 = vmatmul.mubr.bf16.vlgmr.msra.gmra.mrb[20].mxu0 %v800_v55  ;;  %875 = vmatmul.mubr.bf16.vlgmr.msra.gmra.mrb[20].mxu1 %v800_v55 }
 0x159   :  { %920 = vmatpush1.bf16.msra.mxu0 %v2189_v38  ;;  %961 = vmatpush1.bf16.msra.mxu1 %v2191_v39 }
 0x15a   :  { %921 = vmatprep.subr.bf16.mxu0 %v2195_v40  ;;  %962 = vmatprep.subr.bf16.mxu1 %v2197_v41 }
 0x15b   :  { %951 = vmatprep.mubr.bf16.mxu0 %v2790_v22  ;;  %992 = vmatprep.mubr.bf16.mxu1 %v2790_v22 }
 0x15d   :  { %922 = vmatpush1.bf16.msra.mxu0 %v2199_v42  ;;  %963 = vmatpush1.bf16.msra.mxu1 %v2201_v43 }
 0x15e   :  { %923 = vmatprep.subr.bf16.mxu0 %v2211_v46  ;;  %964 = vmatprep.subr.bf16.mxu1 %v2215_v47 }
 0x161   :  { %924 = vmatpush1.bf16.msra.mxu0 %v2219_v49  ;;  %965 = vmatpush1.bf16.msra.mxu1 %v2221_v50 }
 0x162   :  { %925 = vmatprep.subr.bf16.mxu0 %v2225_v51  ;;  %966 = vmatprep.subr.bf16.mxu1 %v2229_v52 }
 0x165   :  { %926 = vmatpush1.bf16.msra.mxu0 %v2231_v53  ;;  %967 = vmatpush1.bf16.msra.mxu1 %v2233_v54 }
 0x166   :  { %927 = vmatprep.subr.bf16.mxu0 %v2245_v57  ;;  %968 = vmatprep.subr.bf16.mxu1 %v2247_v58 }
 0x169   :  { %928 = vmatpush1.bf16.msra.mxu0 %v2253_v60  ;;  %969 = vmatpush1.bf16.msra.mxu1 %v2255_v61 }
 0x16a   :  { %929 = vmatprep.subr.bf16.mxu0 %v2259_v62  ;;  %970 = vmatprep.subr.bf16.mxu1 %v2261_v63 }
 0x16d   :  { %930 = vmatpush1.bf16.msra.mxu0 %v2263_v1  ;;  %971 = vmatpush1.bf16.msra.mxu1 %v2267_v2 }
 0x16e   :  { %931 = vmatprep.subr.bf16.mxu0 %v2277_v5  ;;  %972 = vmatprep.subr.bf16.mxu1 %v2279_v6 }
 0x171   :  { %932 = vmatpush1.bf16.msra.mxu0 %v2285_v8  ;;  %973 = vmatpush1.bf16.msra.mxu1 %v2287_v9 }
 0x172   :  { %933 = vmatprep.subr.bf16.mxu0 %v2291_v10  ;;  %974 = vmatprep.subr.bf16.mxu1 %v2293_v11 }
 0x175   :  { %934 = vmatpush1.bf16.msra.mxu0 %v2297_v12  ;;  %975 = vmatpush1.bf16.msra.mxu1 %v2299_v13 }
 0x176   :  { %1037 = vmatprep.subr.bf16.mxu0 %v2185_v35  ;;  %1078 = vmatprep.subr.bf16.mxu1 %v2187_v36 }
 0x22b   :  { %v835_v15 = vpop.f32.mrb[20].mxu0  ;;  %v876_v17 = vpop.f32.mrb[20].mxu1 }
 0x22c   :  { %v883_v21 = vadd.f32 %v835_v15, %v2357_v33  ;;  %v885_v32 = vadd.f32 %v876_v17, %v2360_v37  ;;  %v837_v56 = vpop.f32.mrb[21].mxu0  ;;  %v878_v24 = vpop.f32.mrb[21].mxu1 }
 0x22d   :  { %v884_v23 = vadd.f32 %v837_v56, %v2362_v45  ;;  %v886_v25 = vadd.f32 %v878_v24, %v2365_v48  ;;  %v839_v27 = vpop.f32.mrb[22].mxu0  ;;  %v880_v26 = vpop.f32.mrb[22].mxu1 }
 0x22e   :  { %v1708_v28 = vmul.f32 -1.442695, %v883_v21  ;;  %v840_v0 = vpop.f32.mrb[23].mxu0  ;;  %v881_v29 = vpop.f32.mrb[23].mxu1 }
 0x22f   :  { %v1709_v30 = vmul.f32 -1.442695, %v884_v23  ;;  %v1710_v18 = vmul.f32 -1.442695, %v886_v25 }
 0x230   :  { %1852 = vpow2.f32 %v1708_v28  ;;  %v2791_v28 = vld [vmem:[#allocation8_spill] sm:$0xff] }
 0x231   :  { %1854 = vpow2.f32 %v1709_v30 }
 0x232   :  { %1856 = vpow2.f32 %v1710_v18 }
 0x233   :  { %1858 = vtanh.f32 %v885_v32 }
 0x23a   :  { %v1853_v16 = vpop.eup %1852 }
 0x23b   :  { %v1855_v20 = vpop.eup %1854  ;;  %v890_v33 = vadd.f32 1.0, %v1853_v16 }
 0x23c   :  { %v896_v37 = vadd.f32 1.0, %v1855_v20  ;;  %v1857_v45 = vpop.eup %1856 }
 0x23d   :  { %1860 = vrcp.f32 %v890_v33  ;;  %v1859_v44 = vpop.eup %1858  ;;  %v903_v3 = vadd.f32 1.0, %v1857_v45 }
 0x23e   :  { %1862 = vrcp.f32 %v896_v37 }
 0x23f   :  { %1864 = vrcp.f32 %v903_v3 }
 0x247   :  { %v1861_v48 = vpop.eup %1860 }
 0x248   :  { %v1863_v7 = vpop.eup %1862  ;;  %v907_v31 = vmul.f32 %v1861_v48, %v1859_v44 }
 0x249   :  { %v906_v19 = vmul.f32 %v1863_v7, %v2434_v34  ;;  %v1865_v15 = vpop.eup %1864 }
 0x24b   :  { %v2479_v55 = vadd.f32 %v907_v31, %v906_v19 }
 0x24d   :  { %1866 = vtanh.f32 %v2479_v55 }
 0x257   :  { %v1867_v17 = vpop.eup %1866 }
 0x258   :  { %v910_v21 = vmul.f32 %v1867_v17, %v1865_v15 }
 0x25a   :  { %1711 = vst [vmem:[%s2764_s6 + $0x8] sm:$0xff] %v910_v21  ;;  %v918_v32 = vpack.c.bf16 %v910_v21, %v910_v21 }
 0x25c   :  { %952 = vmatmul.mubr.bf16.vlgmr.msra.gmra.mrb[24].mxu0 %v918_v32  ;;  %993 = vmatmul.mubr.bf16.vlgmr.msra.gmra.mrb[24].mxu1 %v918_v32 }
 0x25d   :  { %1038 = vmatpush1.bf16.msra.mxu0 %v2189_v38  ;;  %1079 = vmatpush1.bf16.msra.mxu1 %v2191_v39 }
 0x25e   :  { %1039 = vmatprep.subr.bf16.mxu0 %v2195_v40  ;;  %1080 = vmatprep.subr.bf16.mxu1 %v2197_v41 }
 0x25f   :  { %1069 = vmatprep.mubr.bf16.mxu0 %v2790_v22  ;;  %1110 = vmatprep.mubr.bf16.mxu1 %v2790_v22 }
 0x261   :  { %1040 = vmatpush1.bf16.msra.mxu0 %v2199_v42  ;;  %1081 = vmatpush1.bf16.msra.mxu1 %v2201_v43 }
 0x262   :  { %1041 = vmatprep.subr.bf16.mxu0 %v2211_v46  ;;  %1082 = vmatprep.subr.bf16.mxu1 %v2215_v47 }
 0x265   :  { %1042 = vmatpush1.bf16.msra.mxu0 %v2219_v49  ;;  %1083 = vmatpush1.bf16.msra.mxu1 %v2221_v50 }
 0x266   :  { %1043 = vmatprep.subr.bf16.mxu0 %v2225_v51  ;;  %1084 = vmatprep.subr.bf16.mxu1 %v2229_v52 }
 0x269   :  { %1044 = vmatpush1.bf16.msra.mxu0 %v2231_v53  ;;  %1085 = vmatpush1.bf16.msra.mxu1 %v2233_v54 }
 0x26a   :  { %1045 = vmatprep.subr.bf16.mxu0 %v2245_v57  ;;  %1086 = vmatprep.subr.bf16.mxu1 %v2247_v58 }
 0x26d   :  { %1046 = vmatpush1.bf16.msra.mxu0 %v2253_v60  ;;  %1087 = vmatpush1.bf16.msra.mxu1 %v2255_v61 }
 0x26e   :  { %1047 = vmatprep.subr.bf16.mxu0 %v2259_v62  ;;  %1088 = vmatprep.subr.bf16.mxu1 %v2261_v63 }
 0x271   :  { %1048 = vmatpush1.bf16.msra.mxu0 %v2263_v1  ;;  %1089 = vmatpush1.bf16.msra.mxu1 %v2267_v2 }
 0x272   :  { %1049 = vmatprep.subr.bf16.mxu0 %v2277_v5  ;;  %1090 = vmatprep.subr.bf16.mxu1 %v2279_v6 }
 0x275   :  { %1050 = vmatpush1.bf16.msra.mxu0 %v2285_v8  ;;  %1091 = vmatpush1.bf16.msra.mxu1 %v2287_v9 }
 0x276   :  { %1051 = vmatprep.subr.bf16.mxu0 %v2291_v10  ;;  %1092 = vmatprep.subr.bf16.mxu1 %v2293_v11 }
 0x279   :  { %1052 = vmatpush1.bf16.msra.mxu0 %v2297_v12  ;;  %1093 = vmatpush1.bf16.msra.mxu1 %v2299_v13 }
 0x27a   :  { %1155 = vmatprep.subr.bf16.mxu0 %v2185_v35  ;;  %1196 = vmatprep.subr.bf16.mxu1 %v2187_v36 }
 0x32f   :  { %v953_v34 = vpop.f32.mrb[24].mxu0  ;;  %v994_v56 = vpop.f32.mrb[24].mxu1 }
 0x330   :  { %v1001_v24 = vadd.f32 %v953_v34, %v2367_v59  ;;  %v1003_v23 = vadd.f32 %v994_v56, %v2370_v4  ;;  %v955_v25 = vpop.f32.mrb[25].mxu0  ;;  %v996_v27 = vpop.f32.mrb[25].mxu1 }
 0x331   :  { %v1002_v26 = vadd.f32 %v955_v25, %v2372_v14  ;;  %v1004_v0 = vadd.f32 %v996_v27, %v2791_v28  ;;  %v957_v29 = vpop.f32.mrb[26].mxu0  ;;  %v998_v30 = vpop.f32.mrb[26].mxu1  ;;  %v2793_v27 = vld [vmem:[#allocation10_spill] sm:$0xff] }
 0x332   :  { %v1712_v18 = vmul.f32 -1.442695, %v1001_v24  ;;  %v958_v16 = vpop.f32.mrb[27].mxu0  ;;  %v999_v20 = vpop.f32.mrb[27].mxu1  ;;  %v2794_v29 = vld [vmem:[#allocation11_spill] sm:$0xff] }
 0x333   :  { %v1713_v33 = vmul.f32 -1.442695, %v1002_v26  ;;  %v1714_v37 = vmul.f32 -1.442695, %v1004_v0 }
 0x334   :  { %1868 = vpow2.f32 %v1712_v18  ;;  %v2795_v18 = vld [vmem:[#allocation12_spill] sm:$0xff] }
 0x335   :  { %1870 = vpow2.f32 %v1713_v33 }
 0x336   :  { %1872 = vpow2.f32 %v1714_v37 }
 0x337   :  { %1874 = vtanh.f32 %v1003_v23  ;;  %v2792_v23 = vld [vmem:[#allocation9_spill] sm:$0xff] }
 0x33e   :  { %v1869_v45 = vpop.eup %1868 }
 0x33f   :  { %v1871_v44 = vpop.eup %1870  ;;  %v1008_v59 = vadd.f32 1.0, %v1869_v45 }
 0x340   :  { %v1014_v4 = vadd.f32 1.0, %v1871_v44  ;;  %v1873_v14 = vpop.eup %1872 }
 0x341   :  { %1876 = vrcp.f32 %v1008_v59  ;;  %v1875_v48 = vpop.eup %1874  ;;  %v1021_v19 = vadd.f32 1.0, %v1873_v14 }
 0x342   :  { %1878 = vrcp.f32 %v1014_v4 }
 0x343   :  { %1880 = vrcp.f32 %v1021_v19 }
 0x34b   :  { %v1877_v7 = vpop.eup %1876 }
 0x34c   :  { %v1879_v31 = vpop.eup %1878  ;;  %v1025_v3 = vmul.f32 %v1877_v7, %v1875_v48 }
 0x34d   :  { %v1024_v15 = vmul.f32 %v1879_v31, %v2479_v55  ;;  %v1881_v21 = vpop.eup %1880 }
 0x34f   :  { %v2524_v17 = vadd.f32 %v1025_v3, %v1024_v15 }
 0x351   :  { %1882 = vtanh.f32 %v2524_v17 }
 0x35b   :  { %v1883_v32 = vpop.eup %1882 }
 0x35c   :  { %v1028_v34 = vmul.f32 %v1883_v32, %v1881_v21 }
 0x35e   :  { %1715 = vst [vmem:[%s2764_s6 + $0x10] sm:$0xff] %v1028_v34  ;;  %v1036_v56 = vpack.c.bf16 %v1028_v34, %v1028_v34 }
 0x360   :  { %1070 = vmatmul.mubr.bf16.vlgmr.msra.gmra.mrb[28].mxu0 %v1036_v56  ;;  %1111 = vmatmul.mubr.bf16.vlgmr.msra.gmra.mrb[28].mxu1 %v1036_v56 }
 0x361   :  { %1156 = vmatpush1.bf16.msra.mxu0 %v2189_v38  ;;  %1197 = vmatpush1.bf16.msra.mxu1 %v2191_v39 }
 0x362   :  { %1157 = vmatprep.subr.bf16.mxu0 %v2195_v40  ;;  %1198 = vmatprep.subr.bf16.mxu1 %v2197_v41 }
 0x363   :  { %1187 = vmatprep.mubr.bf16.mxu0 %v2790_v22  ;;  %1228 = vmatprep.mubr.bf16.mxu1 %v2790_v22 }
 0x365   :  { %1158 = vmatpush1.bf16.msra.mxu0 %v2199_v42  ;;  %1199 = vmatpush1.bf16.msra.mxu1 %v2201_v43 }
 0x366   :  { %1159 = vmatprep.subr.bf16.mxu0 %v2211_v46  ;;  %1200 = vmatprep.subr.bf16.mxu1 %v2215_v47 }
 0x369   :  { %1160 = vmatpush1.bf16.msra.mxu0 %v2219_v49  ;;  %1201 = vmatpush1.bf16.msra.mxu1 %v2221_v50 }
 0x36a   :  { %1161 = vmatprep.subr.bf16.mxu0 %v2225_v51  ;;  %1202 = vmatprep.subr.bf16.mxu1 %v2229_v52 }
 0x36d   :  { %1162 = vmatpush1.bf16.msra.mxu0 %v2231_v53  ;;  %1203 = vmatpush1.bf16.msra.mxu1 %v2233_v54 }
 0x36e   :  { %1163 = vmatprep.subr.bf16.mxu0 %v2245_v57  ;;  %1204 = vmatprep.subr.bf16.mxu1 %v2247_v58 }
 0x371   :  { %1164 = vmatpush1.bf16.msra.mxu0 %v2253_v60  ;;  %1205 = vmatpush1.bf16.msra.mxu1 %v2255_v61 }
 0x372   :  { %1165 = vmatprep.subr.bf16.mxu0 %v2259_v62  ;;  %1206 = vmatprep.subr.bf16.mxu1 %v2261_v63 }
 0x375   :  { %1166 = vmatpush1.bf16.msra.mxu0 %v2263_v1  ;;  %1207 = vmatpush1.bf16.msra.mxu1 %v2267_v2 }
 0x376   :  { %1167 = vmatprep.subr.bf16.mxu0 %v2277_v5  ;;  %1208 = vmatprep.subr.bf16.mxu1 %v2279_v6 }
 0x379   :  { %1168 = vmatpush1.bf16.msra.mxu0 %v2285_v8  ;;  %1209 = vmatpush1.bf16.msra.mxu1 %v2287_v9 }
 0x37a   :  { %1169 = vmatprep.subr.bf16.mxu0 %v2291_v10  ;;  %1210 = vmatprep.subr.bf16.mxu1 %v2293_v11 }
 0x37d   :  { %1170 = vmatpush1.bf16.msra.mxu0 %v2297_v12  ;;  %1211 = vmatpush1.bf16.msra.mxu1 %v2299_v13 }
 0x37e   :  { %1273 = vmatprep.subr.bf16.mxu0 %v2185_v35  ;;  %1314 = vmatprep.subr.bf16.mxu1 %v2187_v36 }
 0x433   :  { %v1071_v55 = vpop.f32.mrb[28].mxu0  ;;  %v1112_v24 = vpop.f32.mrb[28].mxu1 }
 0x434   :  { %v1119_v25 = vadd.f32 %v1071_v55, %v2792_v23  ;;  %v1121_v26 = vadd.f32 %v1112_v24, %v2793_v27  ;;  %v1073_v28 = vpop.f32.mrb[29].mxu0  ;;  %v1114_v0 = vpop.f32.mrb[29].mxu1 }
 0x435   :  { %v1120_v30 = vadd.f32 %v1073_v28, %v2794_v29  ;;  %v1122_v16 = vadd.f32 %v1114_v0, %v2795_v18  ;;  %v1075_v20 = vpop.f32.mrb[30].mxu0  ;;  %v1116_v33 = vpop.f32.mrb[30].mxu1 }
 0x436   :  { %v1716_v37 = vmul.f32 -1.442695, %v1119_v25  ;;  %v1076_v45 = vpop.f32.mrb[31].mxu0  ;;  %v1117_v44 = vpop.f32.mrb[31].mxu1 }
 0x437   :  { %v1717_v35 = vmul.f32 -1.442695, %v1120_v30  ;;  %v1718_v36 = vmul.f32 -1.442695, %v1122_v16 }
 0x438   :  { %1884 = vpow2.f32 %v1716_v37 }
 0x439   :  { %1886 = vpow2.f32 %v1717_v35  ;;  %v2624_v35 = vld [vmem:[#allocation5] ss:$16 sps:$4 sm:$0xff]  }
 0x43a   :  { %1888 = vpow2.f32 %v1718_v36  ;;  %v2627_v36 = vld [vmem:[#allocation5 + $0x8] ss:$16 sps:$4 sm:$0xff]  }
 0x43b   :  { %1890 = vtanh.f32 %v1121_v26 }
 0x442   :  { %v1885_v59 = vpop.eup %1884 }
 0x443   :  { %v1887_v4 = vpop.eup %1886  ;;  %v1126_v14 = vadd.f32 1.0, %v1885_v59  ;;  %v2630_v59 = vld [vmem:[#allocation5 + $0x24] ss:$16 sps:$4 sm:$0xff]  }
 0x444   :  { %v1132_v48 = vadd.f32 1.0, %v1887_v4  ;;  %v1889_v7 = vpop.eup %1888  ;;  %v2633_v4 = vld [vmem:[#allocation5 + $0x2c] ss:$16 sps:$4 sm:$0xff]  }
 0x445   :  { %1892 = vrcp.f32 %v1126_v14  ;;  %v1891_v31 = vpop.eup %1890  ;;  %v1139_v21 = vadd.f32 1.0, %v1889_v7  ;;  %v2638_v14 = vld [vmem:[#allocation5 + $0x20] ss:$16 sps:$4 sm:$0xff]   ;;  %v2644_v7 = vld [vmem:[#allocation5 + $0x44] ss:$16 sps:$4 sm:$0xff]  }
 0x446   :  { %1894 = vrcp.f32 %v1132_v48  ;;  %v2641_v48 = vld [vmem:[#allocation5 + $0x28] ss:$16 sps:$4 sm:$0xff]  }
 0x447   :  { %1896 = vrcp.f32 %v1139_v21  ;;  %v2659_v21 = vld [vmem:[#allocation5 + $0x6c] ss:$16 sps:$4 sm:$0xff]  }
 0x44f   :  { %v1893_v3 = vpop.eup %1892 }
 0x450   :  { %v1895_v19 = vpop.eup %1894  ;;  %v1143_v15 = vmul.f32 %v1893_v3, %v1891_v31  ;;  %v2647_v31 = vld [vmem:[#allocation5 + $0x4c] ss:$16 sps:$4 sm:$0xff]   ;;  %v2650_v3 = vld [vmem:[#allocation5 + $0x40] ss:$16 sps:$4 sm:$0xff]  }
 0x451   :  { %v1142_v32 = vmul.f32 %v1895_v19, %v2524_v17  ;;  %v1897_v56 = vpop.eup %1896  ;;  %v2653_v19 = vld [vmem:[#allocation5 + $0x48] ss:$16 sps:$4 sm:$0xff]  }
 0x453   :  { %v2569_v34 = vadd.f32 %v1143_v15, %v1142_v32  ;;  %v2656_v15 = vld [vmem:[#allocation5 + $0x64] ss:$16 sps:$4 sm:$0xff]   ;;  %v2662_v32 = vld [vmem:[#allocation5 + $0x60] ss:$16 sps:$4 sm:$0xff]  }
 0x455   :  { %1898 = vtanh.f32 %v2569_v34 }
 0x45f   :  { %v1899_v55 = vpop.eup %1898 }
 0x460   :  { %v1146_v24 = vmul.f32 %v1899_v55, %v1897_v56  ;;  %v2668_v56 = vld [vmem:[#allocation5 + $0x84] ss:$16 sps:$4 sm:$0xff]   ;;  %v2671_v55 = vld [vmem:[#allocation5 + $0x8c] ss:$16 sps:$4 sm:$0xff]  }
 0x462   :  { %1719 = vst [vmem:[%s2764_s6 + $0x18] sm:$0xff] %v1146_v24  ;;  %v1154_v23 = vpack.c.bf16 %v1146_v24, %v1146_v24  ;;  %v2674_v24 = vld [vmem:[#allocation5 + $0x80] ss:$16 sps:$4 sm:$0xff]  }
 0x464   :  { %1188 = vmatmul.mubr.bf16.vlgmr.msra.gmra.mrb[32].mxu0 %v1154_v23  ;;  %1229 = vmatmul.mubr.bf16.vlgmr.msra.gmra.mrb[32].mxu1 %v1154_v23  ;;  %v2677_v23 = vld [vmem:[#allocation5 + $0x88] ss:$16 sps:$4 sm:$0xff]  }
 0x465   :  { %1274 = vmatpush1.bf16.msra.mxu0 %v2189_v38  ;;  %1315 = vmatpush1.bf16.msra.mxu1 %v2191_v39  ;;  %v2607_v38 = vld [vmem:[#allocation5 + $0x4] ss:$16 sps:$4 sm:$0xff]   ;;  %v2610_v39 = vld [vmem:[#allocation5 + $0xc] ss:$16 sps:$4 sm:$0xff]  }
 0x466   :  { %1275 = vmatprep.subr.bf16.mxu0 %v2195_v40  ;;  %1316 = vmatprep.subr.bf16.mxu1 %v2197_v41 }
 0x467   :  { %1305 = vmatprep.mubr.bf16.mxu0 %v2790_v22  ;;  %1346 = vmatprep.mubr.bf16.mxu1 %v2790_v22 }
 0x469   :  { %1276 = vmatpush1.bf16.msra.mxu0 %v2199_v42  ;;  %1317 = vmatpush1.bf16.msra.mxu1 %v2201_v43  ;;  %v2796_v42 = vld [vmem:[#allocation13_spill] sm:$0xff] }
 0x46a   :  { %1277 = vmatprep.subr.bf16.mxu0 %v2211_v46  ;;  %1318 = vmatprep.subr.bf16.mxu1 %v2215_v47  ;;  %v2797_v46 = vld [vmem:[#allocation14_spill] sm:$0xff] }
 0x46d   :  { %1278 = vmatpush1.bf16.msra.mxu0 %v2219_v49  ;;  %1319 = vmatpush1.bf16.msra.mxu1 %v2221_v50 }
 0x46e   :  { %1279 = vmatprep.subr.bf16.mxu0 %v2225_v51  ;;  %1320 = vmatprep.subr.bf16.mxu1 %v2229_v52  ;;  %v2798_v51 = vld [vmem:[#allocation15_spill] sm:$0xff] }
 0x471   :  { %1280 = vmatpush1.bf16.msra.mxu0 %v2231_v53  ;;  %1321 = vmatpush1.bf16.msra.mxu1 %v2233_v54  ;;  %v2799_v53 = vld [vmem:[#allocation16_spill] sm:$0xff] }
 0x472   :  { %1281 = vmatprep.subr.bf16.mxu0 %v2245_v57  ;;  %1322 = vmatprep.subr.bf16.mxu1 %v2247_v58 }
 0x475   :  { %1282 = vmatpush1.bf16.msra.mxu0 %v2253_v60  ;;  %1323 = vmatpush1.bf16.msra.mxu1 %v2255_v61 }
 0x476   :  { %1283 = vmatprep.subr.bf16.mxu0 %v2259_v62  ;;  %1324 = vmatprep.subr.bf16.mxu1 %v2261_v63 }
 0x479   :  { %1284 = vmatpush1.bf16.msra.mxu0 %v2263_v1  ;;  %1325 = vmatpush1.bf16.msra.mxu1 %v2267_v2 }
 0x47a   :  { %1285 = vmatprep.subr.bf16.mxu0 %v2277_v5  ;;  %1326 = vmatprep.subr.bf16.mxu1 %v2279_v6 }
 0x47d   :  { %1286 = vmatpush1.bf16.msra.mxu0 %v2285_v8  ;;  %1327 = vmatpush1.bf16.msra.mxu1 %v2287_v9 }
 0x47e   :  { %1287 = vmatprep.subr.bf16.mxu0 %v2291_v10  ;;  %1328 = vmatprep.subr.bf16.mxu1 %v2293_v11 }
 0x481   :  { %1288 = vmatpush1.bf16.msra.mxu0 %v2297_v12  ;;  %1329 = vmatpush1.bf16.msra.mxu1 %v2299_v13 }
 0x482   :  { %1391 = vmatprep.subr.bf16.mxu0 %v2607_v38  ;;  %1432 = vmatprep.subr.bf16.mxu1 %v2610_v39 }
 0x537   :  { %v1189_v40 = vpop.f32.mrb[32].mxu0  ;;  %v1230_v41 = vpop.f32.mrb[32].mxu1 }
 0x538   :  { %v1237_v43 = vadd.f32 %v1189_v40, %v2796_v42  ;;  %v1239_v47 = vadd.f32 %v1230_v41, %v2797_v46  ;;  %v1191_v49 = vpop.f32.mrb[33].mxu0  ;;  %v1232_v50 = vpop.f32.mrb[33].mxu1  ;;  %v2680_v40 = vld [vmem:[#allocation5 + $0xa4] ss:$16 sps:$4 sm:$0xff]   ;;  %v2683_v41 = vld [vmem:[#allocation5 + $0xac] ss:$16 sps:$4 sm:$0xff]  }
 0x539   :  { %v1238_v52 = vadd.f32 %v1191_v49, %v2798_v51  ;;  %v1240_v54 = vadd.f32 %v1232_v50, %v2799_v53  ;;  %v1193_v57 = vpop.f32.mrb[34].mxu0  ;;  %v1234_v58 = vpop.f32.mrb[34].mxu1  ;;  %v2686_v42 = vld [vmem:[#allocation5 + $0xa0] ss:$16 sps:$4 sm:$0xff]   ;;  %v2802_v51 = vld [vmem:[#allocation19_spill] sm:$0xff] }
 0x53a   :  { %v1720_v60 = vmul.f32 -1.442695, %v1237_v43  ;;  %v1194_v61 = vpop.f32.mrb[35].mxu0  ;;  %v1235_v62 = vpop.f32.mrb[35].mxu1  ;;  %v2689_v43 = vld [vmem:[#allocation5 + $0xa8] ss:$16 sps:$4 sm:$0xff]  }
 0x53b   :  { %v1721_v63 = vmul.f32 -1.442695, %v1238_v52  ;;  %v1722_v1 = vmul.f32 -1.442695, %v1240_v54  ;;  %v2801_v49 = vld [vmem:[#allocation18_spill] sm:$0xff]  ;;  %v2803_v52 = vld [vmem:[#allocation20_spill] sm:$0xff] }
 0x53c   :  { %1900 = vpow2.f32 %v1720_v60 }
 0x53d   :  { %1902 = vpow2.f32 %v1721_v63 }
 0x53e   :  { %1904 = vpow2.f32 %v1722_v1 }
 0x53f   :  { %1906 = vtanh.f32 %v1239_v47  ;;  %v2800_v47 = vld [vmem:[#allocation17_spill] sm:$0xff] }
 0x546   :  { %v1901_v2 = vpop.eup %1900 }
 0x547   :  { %v1903_v17 = vpop.eup %1902  ;;  %v1244_v25 = vadd.f32 1.0, %v1901_v2 }
 0x548   :  { %v1250_v27 = vadd.f32 1.0, %v1903_v17  ;;  %v1905_v26 = vpop.eup %1904 }
 0x549   :  { %1908 = vrcp.f32 %v1244_v25  ;;  %v1907_v28 = vpop.eup %1906  ;;  %v1257_v18 = vadd.f32 1.0, %v1905_v26 }
 0x54a   :  { %1910 = vrcp.f32 %v1250_v27 }
 0x54b   :  { %1912 = vrcp.f32 %v1257_v18 }
 0x553   :  { %v1909_v0 = vpop.eup %1908 }
 0x554   :  { %v1911_v29 = vpop.eup %1910  ;;  %v1261_v30 = vmul.f32 %v1909_v0, %v1907_v28 }
 0x555   :  { %v1260_v16 = vmul.f32 %v1911_v29, %v2569_v34  ;;  %v1913_v33 = vpop.eup %1912  ;;  %v2665_v34 = vld [vmem:[#allocation5 + $0x68] ss:$16 sps:$4 sm:$0xff]  }
 0x557   :  { %v2618_v20 = vadd.f32 %v1261_v30, %v1260_v16  ;;  %v1989_v16 = vld [vmem:[#allocation5 + $0xcc] ss:$16 sps:$4 sm:$0xff]  }
 0x559   :  { %1914 = vtanh.f32 %v2618_v20 }
 0x563   :  { %v1915_v37 = vpop.eup %1914 }
 0x564   :  { %v1264_v45 = vmul.f32 %v1915_v37, %v1913_v33  ;;  %v1991_v33 = vld [vmem:[#allocation5 + $0xc8] ss:$16 sps:$4 sm:$0xff]   ;;  %v1992_v37 = vld [vmem:[#allocation5 + $0xe4] ss:$16 sps:$4 sm:$0xff]  }
 0x566   :  { %1723 = vst [vmem:[%s2764_s6 + $0x20] sm:$0xff] %v1264_v45  ;;  %v1272_v44 = vpack.c.bf16 %v1264_v45, %v1264_v45  ;;  %v1993_v45 = vld [vmem:[#allocation5 + $0xec] ss:$16 sps:$4 sm:$0xff]  }
 0x568   :  { %1306 = vmatmul.mubr.bf16.vlgmr.msra.gmra.mrb[36].mxu0 %v1272_v44  ;;  %1347 = vmatmul.mubr.bf16.vlgmr.msra.gmra.mrb[36].mxu1 %v1272_v44  ;;  %v1994_v44 = vld [vmem:[#allocation5 + $0xe0] ss:$16 sps:$4 sm:$0xff]  }
 0x569   :  { %1392 = vmatpush1.bf16.msra.mxu0 %v2624_v35  ;;  %1433 = vmatpush1.bf16.msra.mxu1 %v2627_v36 }
 0x56a   :  { %1393 = vmatprep.subr.bf16.mxu0 %v2630_v59  ;;  %1434 = vmatprep.subr.bf16.mxu1 %v2633_v4 }
 0x56b   :  { %1423 = vmatprep.mubr.bf16.mxu0 %v2790_v22  ;;  %1464 = vmatprep.mubr.bf16.mxu1 %v2790_v22 }
 0x56d   :  { %1394 = vmatpush1.bf16.msra.mxu0 %v2638_v14  ;;  %1435 = vmatpush1.bf16.msra.mxu1 %v2641_v48 }
 0x56e   :  { %1395 = vmatprep.subr.bf16.mxu0 %v2644_v7  ;;  %1436 = vmatprep.subr.bf16.mxu1 %v2647_v31 }
 0x571   :  { %1396 = vmatpush1.bf16.msra.mxu0 %v2650_v3  ;;  %1437 = vmatpush1.bf16.msra.mxu1 %v2653_v19 }
 0x572   :  { %1397 = vmatprep.subr.bf16.mxu0 %v2656_v15  ;;  %1438 = vmatprep.subr.bf16.mxu1 %v2659_v21 }
 0x575   :  { %1398 = vmatpush1.bf16.msra.mxu0 %v2662_v32  ;;  %1439 = vmatpush1.bf16.msra.mxu1 %v2665_v34 }
 0x576   :  { %1399 = vmatprep.subr.bf16.mxu0 %v2668_v56  ;;  %1440 = vmatprep.subr.bf16.mxu1 %v2671_v55 }
 0x579   :  { %1400 = vmatpush1.bf16.msra.mxu0 %v2674_v24  ;;  %1441 = vmatpush1.bf16.msra.mxu1 %v2677_v23 }
 0x57a   :  { %1401 = vmatprep.subr.bf16.mxu0 %v2680_v40  ;;  %1442 = vmatprep.subr.bf16.mxu1 %v2683_v41 }
 0x57d   :  { %1402 = vmatpush1.bf16.msra.mxu0 %v2686_v42  ;;  %1443 = vmatpush1.bf16.msra.mxu1 %v2689_v43 }
 0x57e   :  { %1403 = vmatprep.subr.bf16.mxu0 %v2277_v5  ;;  %1444 = vmatprep.subr.bf16.mxu1 %v2279_v6 }
 0x581   :  { %1404 = vmatpush1.bf16.msra.mxu0 %v2285_v8  ;;  %1445 = vmatpush1.bf16.msra.mxu1 %v2287_v9 }
 0x582   :  { %1405 = vmatprep.subr.bf16.mxu0 %v2291_v10  ;;  %1446 = vmatprep.subr.bf16.mxu1 %v2293_v11 }
 0x585   :  { %1406 = vmatpush1.bf16.msra.mxu0 %v2297_v12  ;;  %1447 = vmatpush1.bf16.msra.mxu1 %v2299_v13 }
 0x586   :  { %1509 = vmatprep.subr.bf16.mxu0 %v2607_v38  ;;  %1550 = vmatprep.subr.bf16.mxu1 %v2610_v39 }
 0x63b   :  { %v1307_v46 = vpop.f32.mrb[36].mxu0  ;;  %v1348_v5 = vpop.f32.mrb[36].mxu1 }
 0x63c   :  { %v1355_v6 = vadd.f32 %v1307_v46, %v2800_v47  ;;  %v1357_v8 = vadd.f32 %v1348_v5, %v2801_v49  ;;  %v1309_v50 = vpop.f32.mrb[37].mxu0  ;;  %v1350_v9 = vpop.f32.mrb[37].mxu1 }
 0x63d   :  { %v1356_v10 = vadd.f32 %v1309_v50, %v2802_v51  ;;  %v1358_v11 = vadd.f32 %v1350_v9, %v2803_v52  ;;  %v1311_v53 = vpop.f32.mrb[38].mxu0  ;;  %v1352_v12 = vpop.f32.mrb[38].mxu1 }
 0x63e   :  { %v1724_v54 = vmul.f32 -1.442695, %v1355_v6  ;;  %v1312_v13 = vpop.f32.mrb[39].mxu0  ;;  %v1353_v57 = vpop.f32.mrb[39].mxu1 }
 0x63f   :  { %v1725_v38 = vmul.f32 -1.442695, %v1356_v10  ;;  %v1726_v39 = vmul.f32 -1.442695, %v1358_v11  ;;  %v2808_v57 = vld [vmem:[#allocation25_spill] sm:$0xff] }
 0x640   :  { %1916 = vpow2.f32 %v1724_v54 }
 0x641   :  { %1918 = vpow2.f32 %v1725_v38 }
 0x642   :  { %1920 = vpow2.f32 %v1726_v39  ;;  %v2809_v39 = vld [vmem:[#allocation26_spill] sm:$0xff] }
 0x643   :  { %1922 = vtanh.f32 %v1357_v8 }
 0x64a   :  { %v1917_v58 = vpop.eup %1916 }
 0x64b   :  { %v1919_v60 = vpop.eup %1918  ;;  %v1362_v61 = vadd.f32 1.0, %v1917_v58 }
 0x64c   :  { %v1368_v62 = vadd.f32 1.0, %v1919_v60  ;;  %v1921_v63 = vpop.eup %1920 }
 0x64d   :  { %1924 = vrcp.f32 %v1362_v61  ;;  %v1923_v1 = vpop.eup %1922  ;;  %v1375_v27 = vadd.f32 1.0, %v1921_v63 }
 0x64e   :  { %1926 = vrcp.f32 %v1368_v62  ;;  %v2810_v62 = vld [vmem:[#allocation27_spill] sm:$0xff] }
 0x64f   :  { %1928 = vrcp.f32 %v1375_v27 }
 0x657   :  { %v1925_v2 = vpop.eup %1924 }
 0x658   :  { %v1927_v17 = vpop.eup %1926  ;;  %v1379_v25 = vmul.f32 %v1925_v2, %v1923_v1  ;;  %v2811_v1 = vld [vmem:[#allocation28_spill] sm:$0xff] }
 0x659   :  { %v1378_v26 = vmul.f32 %v1927_v17, %v2618_v20  ;;  %v1929_v0 = vpop.eup %1928  ;;  %v1990_v20 = vld [vmem:[#allocation5 + $0xc0] ss:$16 sps:$4 sm:$0xff]  }
 0x65b   :  { %v2707_v28 = vadd.f32 %v1379_v25, %v1378_v26 }
 0x65d   :  { %1930 = vtanh.f32 %v2707_v28 }
 0x667   :  { %v1931_v29 = vpop.eup %1930 }
 0x668   :  { %v1382_v30 = vmul.f32 %v1931_v29, %v1929_v0 }
 0x66a   :  { %1727 = vst [vmem:[%s2764_s6 + $0x28] sm:$0xff] %v1382_v30  ;;  %v1390_v18 = vpack.c.bf16 %v1382_v30, %v1382_v30 }
 0x66c   :  { %1424 = vmatmul.mubr.bf16.vlgmr.msra.gmra.mrb[40].mxu0 %v1390_v18  ;;  %1465 = vmatmul.mubr.bf16.vlgmr.msra.gmra.mrb[40].mxu1 %v1390_v18 }
 0x66d   :  { %1510 = vmatpush1.bf16.msra.mxu0 %v2624_v35  ;;  %1551 = vmatpush1.bf16.msra.mxu1 %v2627_v36  ;;  %v1995_v35 = vld [vmem:[#allocation5 + $0xe8] ss:$16 sps:$4 sm:$0xff]  }
 0x66e   :  { %1511 = vmatprep.subr.bf16.mxu0 %v2630_v59  ;;  %1552 = vmatprep.subr.bf16.mxu1 %v2633_v4  ;;  %v2804_v4 = vld [vmem:[#allocation21_spill] sm:$0xff] }
 0x66f   :  { %1541 = vmatprep.mubr.bf16.mxu0 %v2790_v22  ;;  %1582 = vmatprep.mubr.bf16.mxu1 %v2790_v22  ;;  %v1988_v22 = vld [vmem:[#allocation5 + $0xc4] ss:$16 sps:$4 sm:$0xff]  }
 0x671   :  { %1512 = vmatpush1.bf16.msra.mxu0 %v2638_v14  ;;  %1553 = vmatpush1.bf16.msra.mxu1 %v2641_v48  ;;  %v2805_v48 = vld [vmem:[#allocation22_spill] sm:$0xff] }
 0x672   :  { %1513 = vmatprep.subr.bf16.mxu0 %v2644_v7  ;;  %1554 = vmatprep.subr.bf16.mxu1 %v2647_v31 }
 0x675   :  { %1514 = vmatpush1.bf16.msra.mxu0 %v2650_v3  ;;  %1555 = vmatpush1.bf16.msra.mxu1 %v2653_v19  ;;  %v2806_v19 = vld [vmem:[#allocation23_spill] sm:$0xff] }
 0x676   :  { %1515 = vmatprep.subr.bf16.mxu0 %v2656_v15  ;;  %1556 = vmatprep.subr.bf16.mxu1 %v2659_v21  ;;  %v2807_v21 = vld [vmem:[#allocation24_spill] sm:$0xff] }
 0x679   :  { %1516 = vmatpush1.bf16.msra.mxu0 %v2662_v32  ;;  %1557 = vmatpush1.bf16.msra.mxu1 %v2665_v34 }
 0x67a   :  { %1517 = vmatprep.subr.bf16.mxu0 %v2668_v56  ;;  %1558 = vmatprep.subr.bf16.mxu1 %v2671_v55 }
 0x67d   :  { %1518 = vmatpush1.bf16.msra.mxu0 %v2674_v24  ;;  %1559 = vmatpush1.bf16.msra.mxu1 %v2677_v23 }
 0x67e   :  { %1519 = vmatprep.subr.bf16.mxu0 %v2680_v40  ;;  %1560 = vmatprep.subr.bf16.mxu1 %v2683_v41 }
 0x681   :  { %1520 = vmatpush1.bf16.msra.mxu0 %v2686_v42  ;;  %1561 = vmatpush1.bf16.msra.mxu1 %v2689_v43 }
 0x682   :  { %1521 = vmatprep.subr.bf16.mxu0 %v1988_v22  ;;  %1562 = vmatprep.subr.bf16.mxu1 %v1989_v16 }
 0x685   :  { %1522 = vmatpush1.bf16.msra.mxu0 %v1990_v20  ;;  %1563 = vmatpush1.bf16.msra.mxu1 %v1991_v33 }
 0x686   :  { %1523 = vmatprep.subr.bf16.mxu0 %v1992_v37  ;;  %1564 = vmatprep.subr.bf16.mxu1 %v1993_v45 }
 0x689   :  { %1524 = vmatpush1.bf16.msra.mxu0 %v1994_v44  ;;  %1565 = vmatpush1.bf16.msra.mxu1 %v1995_v35 }
 0x73f   :  { %v1425_v36 = vpop.f32.mrb[40].mxu0  ;;  %v1466_v59 = vpop.f32.mrb[40].mxu1 }
 0x740   :  { %v1473_v14 = vadd.f32 %v1425_v36, %v2804_v4  ;;  %v1475_v7 = vadd.f32 %v1466_v59, %v2805_v48  ;;  %v1427_v31 = vpop.f32.mrb[41].mxu0  ;;  %v1468_v3 = vpop.f32.mrb[41].mxu1 }
 0x741   :  { %v1474_v15 = vadd.f32 %v1427_v31, %v2806_v19  ;;  %v1476_v32 = vadd.f32 %v1468_v3, %v2807_v21  ;;  %v1429_v34 = vpop.f32.mrb[42].mxu0  ;;  %v1470_v56 = vpop.f32.mrb[42].mxu1 }
 0x742   :  { %v1728_v55 = vmul.f32 -1.442695, %v1473_v14  ;;  %v1430_v24 = vpop.f32.mrb[43].mxu0  ;;  %v1471_v23 = vpop.f32.mrb[43].mxu1 }
 0x743   :  { %v1729_v40 = vmul.f32 -1.442695, %v1474_v15  ;;  %v1730_v41 = vmul.f32 -1.442695, %v1476_v32 }
 0x744   :  { %1932 = vpow2.f32 %v1728_v55 }
 0x745   :  { %1934 = vpow2.f32 %v1729_v40 }
 0x746   :  { %1936 = vpow2.f32 %v1730_v41 }
 0x747   :  { %1938 = vtanh.f32 %v1475_v7 }
 0x74e   :  { %v1933_v42 = vpop.eup %1932 }
 0x74f   :  { %v1935_v43 = vpop.eup %1934  ;;  %v1480_v46 = vadd.f32 1.0, %v1933_v42 }
 0x750   :  { %v1486_v5 = vadd.f32 1.0, %v1935_v43  ;;  %v1937_v47 = vpop.eup %1936 }
 0x751   :  { %1940 = vrcp.f32 %v1480_v46  ;;  %v1939_v6 = vpop.eup %1938  ;;  %v1493_v9 = vadd.f32 1.0, %v1937_v47 }
 0x752   :  { %1942 = vrcp.f32 %v1486_v5 }
 0x753   :  { %1944 = vrcp.f32 %v1493_v9 }
 0x75b   :  { %v1941_v49 = vpop.eup %1940 }
 0x75c   :  { %v1943_v8 = vpop.eup %1942  ;;  %v1497_v50 = vmul.f32 %v1941_v49, %v1939_v6 }
 0x75d   :  { %v1496_v51 = vmul.f32 %v1943_v8, %v2707_v28  ;;  %v1945_v52 = vpop.eup %1944 }
 0x75f   :  { %v1498_v10 = vadd.f32 %v1497_v50, %v1496_v51 }
 0x761   :  { %1946 = vtanh.f32 %v1498_v10 }
 0x76b   :  { %v1947_v11 = vpop.eup %1946 }
 0x76c   :  { %v1500_v53 = vmul.f32 %v1947_v11, %v1945_v52 }
 0x76e   :  { %1731 = vst [vmem:[%s2764_s6 + $0x30] sm:$0xff] %v1500_v53  ;;  %v1508_v12 = vpack.c.bf16 %v1500_v53, %v1500_v53 }
 0x770   :  { %1542 = vmatmul.mubr.bf16.vlgmr.msra.gmra.mrb[44].mxu0 %v1508_v12  ;;  %1583 = vmatmul.mubr.bf16.vlgmr.msra.gmra.mrb[44].mxu1 %v1508_v12 }
 0x843   :  { %v1543_v54 = vpop.f32.mrb[44].mxu0  ;;  %v1584_v13 = vpop.f32.mrb[44].mxu1 }
 0x844   :  { %v1591_v38 = vadd.f32 %v1543_v54, %v2808_v57  ;;  %v1593_v58 = vadd.f32 %v1584_v13, %v2809_v39  ;;  %v1545_v60 = vpop.f32.mrb[45].mxu0  ;;  %v1586_v61 = vpop.f32.mrb[45].mxu1 }
 0x845   :  { %v1592_v63 = vadd.f32 %v1545_v60, %v2810_v62  ;;  %v1594_v2 = vadd.f32 %v1586_v61, %v2811_v1  ;;  %v1547_v17 = vpop.f32.mrb[46].mxu0  ;;  %v1588_v25 = vpop.f32.mrb[46].mxu1 }
 0x846   :  { %v1732_v27 = vmul.f32 -1.442695, %v1591_v38  ;;  %v1548_v26 = vpop.f32.mrb[47].mxu0  ;;  %v1589_v28 = vpop.f32.mrb[47].mxu1 }
 0x847   :  { %v1733_v0 = vmul.f32 -1.442695, %v1592_v63  ;;  %v1734_v29 = vmul.f32 -1.442695, %v1594_v2 }
 0x848   :  { %1948 = vpow2.f32 %v1732_v27 }
 0x849   :  { %1950 = vpow2.f32 %v1733_v0 }
 0x84a   :  { %1952 = vpow2.f32 %v1734_v29 }
 0x84b   :  { %1954 = vtanh.f32 %v1593_v58 }
 0x852   :  { %v1949_v30 = vpop.eup %1948 }
 0x853   :  { %v1951_v18 = vpop.eup %1950  ;;  %v1598_v22 = vadd.f32 1.0, %v1949_v30 }
 0x854   :  { %v1604_v16 = vadd.f32 1.0, %v1951_v18  ;;  %v1953_v20 = vpop.eup %1952 }
 0x855   :  { %1956 = vrcp.f32 %v1598_v22  ;;  %v1955_v33 = vpop.eup %1954  ;;  %v1611_v35 = vadd.f32 1.0, %v1953_v20 }
 0x856   :  { %1958 = vrcp.f32 %v1604_v16 }
 0x857   :  { %1960 = vrcp.f32 %v1611_v35 }
 0x85f   :  { %v1957_v37 = vpop.eup %1956 }
 0x860   :  { %v1959_v45 = vpop.eup %1958  ;;  %v1615_v44 = vmul.f32 %v1957_v37, %v1955_v33 }
 0x861   :  { %v1614_v36 = vmul.f32 %v1959_v45, %v1498_v10  ;;  %v1961_v4 = vpop.eup %1960 }
 0x863   :  { %v1616_v59 = vadd.f32 %v1615_v44, %v1614_v36 }
 0x865   :  { %1962 = vtanh.f32 %v1616_v59  ;;  %1627 = vst [vmem:[%s2766_s8] sm:$0xff] %v1616_v59 }
 0x86f   :  { %v1963_v14 = vpop.eup %1962 }
 0x870   :  { %v1618_v48 = vmul.f32 %v1963_v14, %v1961_v4 }
 0x872   :  { %1735 = vst [vmem:[%s2764_s6 + $0x38] sm:$0xff] %v1618_v48  ;;  %1626 = vst [vmem:[%s2765_s7] sm:$0xff] %v1618_v48 }
 0x873   :  { %1640 = vsyncpa [#allocation6], 1 }

// kernel: lstm_forward.5
= control target key start
LH: loop header
LB: loop body
LE: loop exit
PB: predicated region body
PF: predicated region fallthrough
CT: control target
= control target key end

     0   :  { %v2908_v1 = vmov 0   ;;  %s2899_s1 = inlined_call_operand.vmem [shape: bf16[128,512], index: 1, kind: input, shape index: {}]   ;;  %s2900_s2 = inlined_call_operand.vmem [shape: bf16[128,512], index: 2, kind: input, shape index: {}]   ;;  %s2901_s0 = inlined_call_operand.vmem [shape: f32[8,8,128], index: 0, kind: input, shape index: {}]   ;;  %s2902_s4 = inlined_call_operand.vmem [shape: f32[8,128], index: 4, kind: input, shape index: {}]   ;;  %s2903_s3 = inlined_call_operand.vmem [shape: f32[1,512], index: 3, kind: input, shape index: {}]   ;;  %s2904_s5 = inlined_call_operand.vmem [shape: f32[8,128], index: 5, kind: input, shape index: {}]   ;;  %s2905_s6 = inlined_call_operand.vmem [shape: f32[8,8,128], index: 6, kind: output, shape index: {0}]   ;;  %s2906_s8 = inlined_call_operand.vmem [shape: f32[8,128], index: 8, kind: output, shape index: {2}]   ;;  %s2907_s7 = inlined_call_operand.vmem [shape: f32[8,128], index: 7, kind: output, shape index: {1}]  }
   0x1   :  { %v1722_v0 = vld [vmem:[%s2899_s1 + $0x4] ss:$16 sps:$4 sm:$0xff]   ;;  %271 = vmatprep.mubr.bf16.mxu0 %v2908_v1  ;;  %344 = vmatprep.mubr.bf16.mxu1 %v2908_v1  ;;  %v1724_v2 = vld [vmem:[%s2899_s1 + $0xc] ss:$16 sps:$4 sm:$0xff]   ;;  %v1726_v3 = vld [vmem:[%s2899_s1] ss:$16 sps:$4 sm:$0xff]  }
   0x2   :  { %239 = vmatprep.subr.bf16.mxu0 %v1722_v0  ;;  %v1727_v4 = vld [vmem:[%s2899_s1 + $0x8] ss:$16 sps:$4 sm:$0xff]   ;;  %312 = vmatprep.subr.bf16.mxu1 %v1724_v2  ;;  %v1728_v5 = vld [vmem:[%s2899_s1 + $0x24] ss:$16 sps:$4 sm:$0xff]   ;;  %v1730_v6 = vld [vmem:[%s2899_s1 + $0x2c] ss:$16 sps:$4 sm:$0xff]  }
   0x3   :  { %240 = vmatpush1.bf16.msra.mxu0 %v1726_v3  ;;  %313 = vmatpush1.bf16.msra.mxu1 %v1727_v4  ;;  %v1732_v7 = vld [vmem:[%s2899_s1 + $0x20] ss:$16 sps:$4 sm:$0xff]   ;;  %v1733_v8 = vld [vmem:[%s2899_s1 + $0x28] ss:$16 sps:$4 sm:$0xff]   ;;  %v1734_v9 = vld [vmem:[%s2899_s1 + $0x44] ss:$16 sps:$4 sm:$0xff]  }
   0x4   :  { %241 = vmatprep.subr.bf16.mxu0 %v1728_v5  ;;  %314 = vmatprep.subr.bf16.mxu1 %v1730_v6  ;;  %v1736_v10 = vld [vmem:[%s2899_s1 + $0x4c] ss:$16 sps:$4 sm:$0xff]   ;;  %v1738_v11 = vld [vmem:[%s2899_s1 + $0x40] ss:$16 sps:$4 sm:$0xff]   ;;  %v1739_v12 = vld [vmem:[%s2899_s1 + $0x48] ss:$16 sps:$4 sm:$0xff]  }
   0x5   :  { %v1740_v13 = vld [vmem:[%s2899_s1 + $0x64] ss:$16 sps:$4 sm:$0xff]   ;;  %v1742_v14 = vld [vmem:[%s2899_s1 + $0x6c] ss:$16 sps:$4 sm:$0xff]   ;;  %v1744_v15 = vld [vmem:[%s2899_s1 + $0x60] ss:$16 sps:$4 sm:$0xff]  }
   0x6   :  { %v1745_v16 = vld [vmem:[%s2899_s1 + $0x68] ss:$16 sps:$4 sm:$0xff]   ;;  %v1746_v17 = vld [vmem:[%s2899_s1 + $0x84] ss:$16 sps:$4 sm:$0xff]   ;;  %v1748_v18 = vld [vmem:[%s2899_s1 + $0x8c] ss:$16 sps:$4 sm:$0xff]  }
   0x7   :  { %242 = vmatpush1.bf16.msra.mxu0 %v1732_v7  ;;  %315 = vmatpush1.bf16.msra.mxu1 %v1733_v8  ;;  %v1750_v19 = vld [vmem:[%s2899_s1 + $0x80] ss:$16 sps:$4 sm:$0xff]   ;;  %v1751_v20 = vld [vmem:[%s2899_s1 + $0x88] ss:$16 sps:$4 sm:$0xff]   ;;  %v1752_v21 = vld [vmem:[%s2899_s1 + $0xa4] ss:$16 sps:$4 sm:$0xff]  }
   0x8   :  { %243 = vmatprep.subr.bf16.mxu0 %v1734_v9  ;;  %316 = vmatprep.subr.bf16.mxu1 %v1736_v10  ;;  %v1754_v22 = vld [vmem:[%s2899_s1 + $0xac] ss:$16 sps:$4 sm:$0xff]   ;;  %v1756_v23 = vld [vmem:[%s2899_s1 + $0xa0] ss:$16 sps:$4 sm:$0xff]   ;;  %v1757_v24 = vld [vmem:[%s2899_s1 + $0xa8] ss:$16 sps:$4 sm:$0xff]  }
   0x9   :  { %v1758_v25 = vld [vmem:[%s2899_s1 + $0xc4] ss:$16 sps:$4 sm:$0xff]   ;;  %v1760_v26 = vld [vmem:[%s2899_s1 + $0xcc] ss:$16 sps:$4 sm:$0xff]   ;;  %v1762_v27 = vld [vmem:[%s2899_s1 + $0xc0] ss:$16 sps:$4 sm:$0xff]  }
   0xa   :  { %v1763_v28 = vld [vmem:[%s2899_s1 + $0xc8] ss:$16 sps:$4 sm:$0xff]   ;;  %v1764_v29 = vld [vmem:[%s2899_s1 + $0xe4] ss:$16 sps:$4 sm:$0xff]   ;;  %v1766_v30 = vld [vmem:[%s2899_s1 + $0xec] ss:$16 sps:$4 sm:$0xff]  }
   0xb   :  { %244 = vmatpush1.bf16.msra.mxu0 %v1738_v11  ;;  %317 = vmatpush1.bf16.msra.mxu1 %v1739_v12  ;;  %v1768_v31 = vld [vmem:[%s2899_s1 + $0xe0] ss:$16 sps:$4 sm:$0xff]   ;;  %v1769_v32 = vld [vmem:[%s2899_s1 + $0xe8] ss:$16 sps:$4 sm:$0xff]   ;;  %v2131_v35 = vld [vmem:[%s2900_s2 + $0x4] ss:$16 sps:$4 sm:$0xff]  }
   0xc   :  { %245 = vmatprep.subr.bf16.mxu0 %v1740_v13  ;;  %318 = vmatprep.subr.bf16.mxu1 %v1742_v14  ;;  %v35_v33 = vld [vmem:[%s2901_s0] sm:$0xff]  ;;  %v36_v34 = vld [vmem:[%s2901_s0 + $0x8] sm:$0xff]  ;;  %v37_v44 = vld [vmem:[%s2901_s0 + $0x10] sm:$0xff] }
   0xd   :  { %v2136_v36 = vld [vmem:[%s2900_s2 + $0xc] ss:$16 sps:$4 sm:$0xff]   ;;  %v43_v37 = vpack.c.bf16 %v36_v34, %v35_v33  ;;  %v2141_v38 = vld [vmem:[%s2900_s2] ss:$16 sps:$4 sm:$0xff]   ;;  %v2146_v39 = vld [vmem:[%s2900_s2 + $0x8] ss:$16 sps:$4 sm:$0xff]  }
   0xe   :  { %v2153_v40 = vld [vmem:[%s2900_s2 + $0x24] ss:$16 sps:$4 sm:$0xff]   ;;  %v2158_v41 = vld [vmem:[%s2900_s2 + $0x2c] ss:$16 sps:$4 sm:$0xff]   ;;  %v2163_v42 = vld [vmem:[%s2900_s2 + $0x20] ss:$16 sps:$4 sm:$0xff]  }
   0xf   :  { %246 = vmatpush1.bf16.msra.mxu0 %v1744_v15  ;;  %319 = vmatpush1.bf16.msra.mxu1 %v1745_v16  ;;  %v2168_v43 = vld [vmem:[%s2900_s2 + $0x28] ss:$16 sps:$4 sm:$0xff]   ;;  %v2181_v46 = vld [vmem:[%s2900_s2 + $0x44] ss:$16 sps:$4 sm:$0xff]   ;;  %v2188_v47 = vld [vmem:[%s2900_s2 + $0x4c] ss:$16 sps:$4 sm:$0xff]   ;;  %v387_v16 = vlaneseq }
  0x10   :  { %247 = vmatprep.subr.bf16.mxu0 %v1746_v17  ;;  %320 = vmatprep.subr.bf16.mxu1 %v1748_v18  ;;  %v38_v45 = vld [vmem:[%s2901_s0 + $0x18] sm:$0xff]  ;;  %v2195_v49 = vld [vmem:[%s2900_s2 + $0x40] ss:$16 sps:$4 sm:$0xff]   ;;  %v2207_v51 = vld [vmem:[%s2900_s2 + $0x64] ss:$16 sps:$4 sm:$0xff]  }
  0x11   :  { %v44_v48 = vpack.c.bf16 %v38_v45, %v37_v44  ;;  %v2200_v50 = vld [vmem:[%s2900_s2 + $0x48] ss:$16 sps:$4 sm:$0xff]   ;;  %v2214_v52 = vld [vmem:[%s2900_s2 + $0x6c] ss:$16 sps:$4 sm:$0xff]   ;;  %v2219_v53 = vld [vmem:[%s2900_s2 + $0x60] ss:$16 sps:$4 sm:$0xff]  }
  0x12   :  { %v2224_v54 = vld [vmem:[%s2900_s2 + $0x68] ss:$16 sps:$4 sm:$0xff]   ;;  %v39_v55 = vld [vmem:[%s2901_s0 + $0x20] sm:$0xff]  ;;  %v2244_v58 = vld [vmem:[%s2900_s2 + $0x8c] ss:$16 sps:$4 sm:$0xff]   ;;  %v388_v17 = vshrl.u32 %v387_v16, 7 }
  0x13   :  { %248 = vmatpush1.bf16.msra.mxu0 %v1750_v19  ;;  %321 = vmatpush1.bf16.msra.mxu1 %v1751_v20  ;;  %v40_v56 = vld [vmem:[%s2901_s0 + $0x28] sm:$0xff]  ;;  %v2239_v57 = vld [vmem:[%s2900_s2 + $0x84] ss:$16 sps:$4 sm:$0xff]   ;;  %v2253_v60 = vld [vmem:[%s2900_s2 + $0x80] ss:$16 sps:$4 sm:$0xff]  }
  0x14   :  { %249 = vmatprep.subr.bf16.mxu0 %v1752_v21  ;;  %322 = vmatprep.subr.bf16.mxu1 %v1754_v22  ;;  %v45_v59 = vpack.c.bf16 %v40_v56, %v39_v55  ;;  %v2258_v61 = vld [vmem:[%s2900_s2 + $0x88] ss:$16 sps:$4 sm:$0xff]   ;;  %v2265_v62 = vld [vmem:[%s2900_s2 + $0xa4] ss:$16 sps:$4 sm:$0xff]   ;;  %v2270_v63 = vld [vmem:[%s2900_s2 + $0xac] ss:$16 sps:$4 sm:$0xff]  }
  0x15   :  { %v2275_v0 = vld [vmem:[%s2900_s2 + $0xa0] ss:$16 sps:$4 sm:$0xff]   ;;  %v2282_v2 = vld [vmem:[%s2900_s2 + $0xa8] ss:$16 sps:$4 sm:$0xff]   ;;  %v2295_v5 = vld [vmem:[%s2900_s2 + $0xc4] ss:$16 sps:$4 sm:$0xff]  }
  0x16   :  { %v41_v3 = vld [vmem:[%s2901_s0 + $0x30] sm:$0xff]  ;;  %v42_v4 = vld [vmem:[%s2901_s0 + $0x38] sm:$0xff]  ;;  %v31_v14 = vld [vmem:[%s2902_s4] sm:$0xff]  ;;  %v397_v18 = vsub.s32 2, %v388_v17  ;;  %v401_v19 = vsub.s32 3, %v388_v17  ;;  %v389_v20 = vsub.s32 0, %v388_v17 }
  0x17   :  { %250 = vmatpush1.bf16.msra.mxu0 %v1756_v23  ;;  %323 = vmatpush1.bf16.msra.mxu1 %v1757_v24  ;;  %v2300_v6 = vld [vmem:[%s2900_s2 + $0xcc] ss:$16 sps:$4 sm:$0xff]   ;;  %v46_v7 = vpack.c.bf16 %v42_v4, %v41_v3  ;;  %v2309_v8 = vld [vmem:[%s2900_s2 + $0xc0] ss:$16 sps:$4 sm:$0xff]   ;;  %v2314_v9 = vld [vmem:[%s2900_s2 + $0xc8] ss:$16 sps:$4 sm:$0xff]   ;;  %v509_v15 = vpack.c.bf16 %v31_v14, %v31_v14 }
  0x18   :  { %251 = vmatprep.subr.bf16.mxu0 %v1758_v25  ;;  %324 = vmatprep.subr.bf16.mxu1 %v1760_v26  ;;  %v2321_v10 = vld [vmem:[%s2900_s2 + $0xe4] ss:$16 sps:$4 sm:$0xff]   ;;  %v2326_v11 = vld [vmem:[%s2900_s2 + $0xec] ss:$16 sps:$4 sm:$0xff]   ;;  %v2333_v12 = vld [vmem:[%s2900_s2 + $0xe0] ss:$16 sps:$4 sm:$0xff]  }
  0x19   :  { %v2338_v13 = vld [vmem:[%s2900_s2 + $0xe8] ss:$16 sps:$4 sm:$0xff]   ;;  %v385_v21 = vld [vmem:[%s2903_s3] sm:$0xf]  ;;  %v393_v22 = vsub.s32 1, %v388_v17 }
  0x1a   :  { %v2388_v23 = vrot.slane %v385_v21, %v397_v18  ;;  %v2394_v26 = vrot.slane %v385_v21, %v401_v19 }
  0x1b   :  { %252 = vmatpush1.bf16.msra.mxu0 %v1762_v27  ;;  %325 = vmatpush1.bf16.msra.mxu1 %v1763_v28  ;;  %v390_v27 = vrot.slane %v385_v21, %v389_v20 }
  0x1c   :  { %253 = vmatprep.subr.bf16.mxu0 %v1764_v29  ;;  %326 = vmatprep.subr.bf16.mxu1 %v1766_v30  ;;  %v394_v30 = vrot.slane %v385_v21, %v393_v22 }
  0x1f   :  { %254 = vmatpush1.bf16.msra.mxu0 %v1768_v31  ;;  %327 = vmatpush1.bf16.msra.mxu1 %v1769_v32 }
  0x20   :  { %670 = vmatprep.subr.bf16.mxu0 %v2131_v35  ;;  %711 = vmatprep.subr.bf16.mxu1 %v2136_v36 }
  0x22   :  { %272 = vmatmul.mubr.bf16.vlgmr.msra.gmra.mrb[0].mxu0 %v43_v37  ;;  %345 = vmatmul.mubr.bf16.vlgmr.msra.gmra.mrb[0].mxu1 %v43_v37 }
  0x23   :  { %671 = vmatpush1.bf16.msra.mxu0 %v2141_v38  ;;  %712 = vmatpush1.bf16.msra.mxu1 %v2146_v39 }
  0x24   :  { %672 = vmatprep.subr.bf16.mxu0 %v2153_v40  ;;  %713 = vmatprep.subr.bf16.mxu1 %v2158_v41 }
  0x25   :  { %281 = vmatprep.mubr.bf16.mxu0 %v2908_v1  ;;  %354 = vmatprep.mubr.bf16.mxu1 %v2908_v1 }
  0x27   :  { %673 = vmatpush1.bf16.msra.mxu0 %v2163_v42  ;;  %714 = vmatpush1.bf16.msra.mxu1 %v2168_v43 }
  0x28   :  { %674 = vmatprep.subr.bf16.mxu0 %v2181_v46  ;;  %715 = vmatprep.subr.bf16.mxu1 %v2188_v47 }
  0x2a   :  { %282 = vmatmul.mubr.bf16.gmra.mrb[4].mxu0 %v44_v48  ;;  %355 = vmatmul.mubr.bf16.gmra.mrb[4].mxu1 %v44_v48 }
  0x2b   :  { %675 = vmatpush1.bf16.msra.mxu0 %v2195_v49  ;;  %716 = vmatpush1.bf16.msra.mxu1 %v2200_v50 }
  0x2c   :  { %676 = vmatprep.subr.bf16.mxu0 %v2207_v51  ;;  %717 = vmatprep.subr.bf16.mxu1 %v2214_v52 }
  0x2d   :  { %291 = vmatprep.mubr.bf16.mxu0 %v2908_v1  ;;  %364 = vmatprep.mubr.bf16.mxu1 %v2908_v1 }
  0x2f   :  { %677 = vmatpush1.bf16.msra.mxu0 %v2219_v53  ;;  %718 = vmatpush1.bf16.msra.mxu1 %v2224_v54 }
  0x30   :  { %678 = vmatprep.subr.bf16.mxu0 %v2239_v57  ;;  %719 = vmatprep.subr.bf16.mxu1 %v2244_v58 }
  0x32   :  { %292 = vmatmul.mubr.bf16.gmra.mrb[8].mxu0 %v45_v59  ;;  %365 = vmatmul.mubr.bf16.gmra.mrb[8].mxu1 %v45_v59 }
  0x33   :  { %679 = vmatpush1.bf16.msra.mxu0 %v2253_v60  ;;  %720 = vmatpush1.bf16.msra.mxu1 %v2258_v61 }
  0x34   :  { %680 = vmatprep.subr.bf16.mxu0 %v2265_v62  ;;  %721 = vmatprep.subr.bf16.mxu1 %v2270_v63 }
  0x35   :  { %301 = vmatprep.mubr.bf16.mxu0 %v2908_v1  ;;  %374 = vmatprep.mubr.bf16.mxu1 %v2908_v1 }
  0x37   :  { %681 = vmatpush1.bf16.msra.mxu0 %v2275_v0  ;;  %722 = vmatpush1.bf16.msra.mxu1 %v2282_v2 }
  0x38   :  { %682 = vmatprep.subr.bf16.mxu0 %v2295_v5  ;;  %723 = vmatprep.subr.bf16.mxu1 %v2300_v6 }
  0x3a   :  { %302 = vmatmul.mubr.bf16.gmra.mrb[12].mxu0 %v46_v7  ;;  %375 = vmatmul.mubr.bf16.gmra.mrb[12].mxu1 %v46_v7 }
  0x3b   :  { %683 = vmatpush1.bf16.msra.mxu0 %v2309_v8  ;;  %724 = vmatpush1.bf16.msra.mxu1 %v2314_v9 }
  0x3c   :  { %684 = vmatprep.subr.bf16.mxu0 %v2321_v10  ;;  %725 = vmatprep.subr.bf16.mxu1 %v2326_v11 }
  0x3d   :  { %702 = vmatprep.mubr.bf16.mxu0 %v2908_v1  ;;  %743 = vmatprep.mubr.bf16.mxu1 %v2908_v1 }
  0x3f   :  { %685 = vmatpush1.bf16.msra.mxu0 %v2333_v12  ;;  %726 = vmatpush1.bf16.msra.mxu1 %v2338_v13 }
  0x40   :  { %787 = vmatprep.subr.bf16.mxu0 %v2131_v35  ;;  %828 = vmatprep.subr.bf16.mxu1 %v2136_v36 }
  0x42   :  { %703 = vmatmul.mubr.bf16.vlgmr.msra.gmra.mrb[16].mxu0 %v509_v15  ;;  %744 = vmatmul.mubr.bf16.vlgmr.msra.gmra.mrb[16].mxu1 %v509_v15 }
  0x43   :  { %788 = vmatpush1.bf16.msra.mxu0 %v2141_v38  ;;  %829 = vmatpush1.bf16.msra.mxu1 %v2146_v39 }
  0x44   :  { %789 = vmatprep.subr.bf16.mxu0 %v2153_v40  ;;  %830 = vmatprep.subr.bf16.mxu1 %v2158_v41 }
  0x45   :  { %819 = vmatprep.mubr.bf16.mxu0 %v2908_v1  ;;  %860 = vmatprep.mubr.bf16.mxu1 %v2908_v1 }
  0x47   :  { %790 = vmatpush1.bf16.msra.mxu0 %v2163_v42  ;;  %831 = vmatpush1.bf16.msra.mxu1 %v2168_v43 }
  0x48   :  { %791 = vmatprep.subr.bf16.mxu0 %v2181_v46  ;;  %832 = vmatprep.subr.bf16.mxu1 %v2188_v47 }
  0x4b   :  { %792 = vmatpush1.bf16.msra.mxu0 %v2195_v49  ;;  %833 = vmatpush1.bf16.msra.mxu1 %v2200_v50 }
  0x4c   :  { %793 = vmatprep.subr.bf16.mxu0 %v2207_v51  ;;  %834 = vmatprep.subr.bf16.mxu1 %v2214_v52 }
  0x4f   :  { %794 = vmatpush1.bf16.msra.mxu0 %v2219_v53  ;;  %835 = vmatpush1.bf16.msra.mxu1 %v2224_v54 }
  0x50   :  { %795 = vmatprep.subr.bf16.mxu0 %v2239_v57  ;;  %836 = vmatprep.subr.bf16.mxu1 %v2244_v58 }
  0x53   :  { %796 = vmatpush1.bf16.msra.mxu0 %v2253_v60  ;;  %837 = vmatpush1.bf16.msra.mxu1 %v2258_v61 }
  0x54   :  { %797 = vmatprep.subr.bf16.mxu0 %v2265_v62  ;;  %838 = vmatprep.subr.bf16.mxu1 %v2270_v63 }
  0x57   :  { %798 = vmatpush1.bf16.msra.mxu0 %v2275_v0  ;;  %839 = vmatpush1.bf16.msra.mxu1 %v2282_v2 }
  0x58   :  { %799 = vmatprep.subr.bf16.mxu0 %v2295_v5  ;;  %840 = vmatprep.subr.bf16.mxu1 %v2300_v6 }
  0x5b   :  { %800 = vmatpush1.bf16.msra.mxu0 %v2309_v8  ;;  %841 = vmatpush1.bf16.msra.mxu1 %v2314_v9 }
  0x5c   :  { %801 = vmatprep.subr.bf16.mxu0 %v2321_v10  ;;  %842 = vmatprep.subr.bf16.mxu1 %v2326_v11 }
  0x5f   :  { %802 = vmatpush1.bf16.msra.mxu0 %v2333_v12  ;;  %843 = vmatpush1.bf16.msra.mxu1 %v2338_v13 }
  0x60   :  { %905 = vmatprep.subr.bf16.mxu0 %v2131_v35  ;;  %946 = vmatprep.subr.bf16.mxu1 %v2136_v36 }
  0xf5   :  { %v2390_v24 = vpop.f32.mrb[0].mxu0  ;;  %v2392_v25 = vpop.f32.mrb[0].mxu1 }
  0xf6   :  { %v275_v28 = vpop.f32.mrb[1].mxu0  ;;  %v348_v29 = vpop.f32.mrb[1].mxu1 }
  0xf7   :  { %v277_v31 = vpop.f32.mrb[2].mxu0  ;;  %v350_v32 = vpop.f32.mrb[2].mxu1 }
  0xf8   :  { %v2396_v33 = vadd.f32 %v390_v27, %v277_v31  ;;  %v279_v34 = vpop.f32.mrb[3].mxu0  ;;  %v2399_v37 = vadd.f32 %v2388_v23, %v350_v32  ;;  %v352_v44 = vpop.f32.mrb[3].mxu1 }
  0xf9   :  { %v2401_v45 = vadd.f32 %v394_v30, %v279_v34  ;;  %v2404_v48 = vadd.f32 %v2394_v26, %v352_v44 }
  0xfd   :  { %v283_v55 = vpop.f32.mrb[4].mxu0  ;;  %v356_v56 = vpop.f32.mrb[4].mxu1 }
  0xfe   :  { %v2406_v59 = vadd.f32 %v390_v27, %v283_v55  ;;  %v285_v3 = vpop.f32.mrb[5].mxu0  ;;  %v2409_v4 = vadd.f32 %v2388_v23, %v356_v56  ;;  %v358_v7 = vpop.f32.mrb[5].mxu1 }
  0xff   :  { %v2411_v14 = vadd.f32 %v394_v30, %v285_v3  ;;  %v287_v15 = vpop.f32.mrb[6].mxu0  ;;  %v2414_v16 = vadd.f32 %v2394_v26, %v358_v7  ;;  %v360_v17 = vpop.f32.mrb[6].mxu1 }
 0x100   :  { %v2416_v18 = vadd.f32 %v390_v27, %v287_v15  ;;  %v289_v19 = vpop.f32.mrb[7].mxu0  ;;  %v2419_v20 = vadd.f32 %v2388_v23, %v360_v17  ;;  %v362_v21 = vpop.f32.mrb[7].mxu1 }
 0x101   :  { %2910 = vst [vmem:[#allocation5_spill] sm:$0xff] %v2414_v16  ;;  %v2421_v22 = vadd.f32 %v394_v30, %v289_v19  ;;  %v2424_v31 = vadd.f32 %v2394_v26, %v362_v21 }
 0x102   :  { %2911 = vst [vmem:[#allocation6_spill] sm:$0xff] %v2416_v18  ;;  %2912 = vst [vmem:[#allocation7_spill] sm:$0xff] %v2419_v20 }
 0x103   :  { %2913 = vst [vmem:[#allocation8_spill] sm:$0xff] %v2421_v22  ;;  %2914 = vst [vmem:[#allocation9_spill] sm:$0xff] %v2424_v31 }
 0x105   :  { %v293_v32 = vpop.f32.mrb[8].mxu0  ;;  %v366_v34 = vpop.f32.mrb[8].mxu1 }
 0x106   :  { %v2426_v44 = vadd.f32 %v390_v27, %v293_v32  ;;  %v295_v55 = vpop.f32.mrb[9].mxu0  ;;  %v2429_v56 = vadd.f32 %v2388_v23, %v366_v34  ;;  %v368_v3 = vpop.f32.mrb[9].mxu1 }
 0x107   :  { %v2431_v7 = vadd.f32 %v394_v30, %v295_v55  ;;  %v297_v15 = vpop.f32.mrb[10].mxu0  ;;  %v2434_v17 = vadd.f32 %v2394_v26, %v368_v3  ;;  %v370_v19 = vpop.f32.mrb[10].mxu1 }
 0x108   :  { %2915 = vst [vmem:[#allocation10_spill] sm:$0xff] %v2426_v44  ;;  %2916 = vst [vmem:[#allocation11_spill] sm:$0xff] %v2429_v56  ;;  %v2436_v1 = vadd.f32 %v390_v27, %v297_v15  ;;  %v299_v21 = vpop.f32.mrb[11].mxu0  ;;  %v2439_v31 = vadd.f32 %v2388_v23, %v370_v19  ;;  %v372_v32 = vpop.f32.mrb[11].mxu1 }
 0x109   :  { %2917 = vst [vmem:[#allocation12_spill] sm:$0xff] %v2431_v7  ;;  %2918 = vst [vmem:[#allocation13_spill] sm:$0xff] %v2434_v17  ;;  %v2441_v44 = vadd.f32 %v394_v30, %v299_v21  ;;  %v2444_v34 = vadd.f32 %v2394_v26, %v372_v32 }
 0x10a   :  { %2919 = vst [vmem:[#allocation14_spill] sm:$0xff] %v2436_v1  ;;  %2920 = vst [vmem:[#allocation15_spill] sm:$0xff] %v2439_v31 }
 0x10b   :  { %2921 = vst [vmem:[#allocation16_spill] sm:$0xff] %v2441_v44  ;;  %2922 = vst [vmem:[#allocation17_spill] sm:$0xff] %v2444_v34 }
 0x10d   :  { %v303_v56 = vpop.f32.mrb[12].mxu0  ;;  %v376_v55 = vpop.f32.mrb[12].mxu1 }
 0x10e   :  { %v2446_v7 = vadd.f32 %v390_v27, %v303_v56  ;;  %v305_v22 = vpop.f32.mrb[13].mxu0  ;;  %v2449_v3 = vadd.f32 %v2388_v23, %v376_v55  ;;  %v378_v15 = vpop.f32.mrb[13].mxu1 }
 0x10f   :  { %v2451_v1 = vadd.f32 %v394_v30, %v305_v22  ;;  %v307_v17 = vpop.f32.mrb[14].mxu0  ;;  %v2454_v19 = vadd.f32 %v2394_v26, %v378_v15  ;;  %v380_v21 = vpop.f32.mrb[14].mxu1  ;;  %v407_v22 = vadd.f32 %v390_v27, %v2390_v24  ;;  %v408_v15 = vadd.f32 %v394_v30, %v275_v28 }
 0x110   :  { %2923 = vst [vmem:[#allocation18_spill] sm:$0xff] %v2446_v7  ;;  %2924 = vst [vmem:[#allocation19_spill] sm:$0xff] %v2449_v3  ;;  %v2456_v44 = vadd.f32 %v390_v27, %v307_v17  ;;  %v309_v32 = vpop.f32.mrb[15].mxu0  ;;  %v2459_v34 = vadd.f32 %v2388_v23, %v380_v21  ;;  %v382_v56 = vpop.f32.mrb[15].mxu1 }
 0x111   :  { %2925 = vst [vmem:[#allocation20_spill] sm:$0xff] %v2451_v1  ;;  %2926 = vst [vmem:[#allocation21_spill] sm:$0xff] %v2454_v19  ;;  %v2461_v7 = vadd.f32 %v394_v30, %v309_v32  ;;  %v2464_v55 = vadd.f32 %v2394_v26, %v382_v56  ;;  %v409_v1 = vadd.f32 %v2388_v23, %v2392_v25  ;;  %v33_v30 = vld [vmem:[%s2904_s5] sm:$0xff] }
 0x112   :  { %2927 = vst [vmem:[#allocation22_spill] sm:$0xff] %v2456_v44  ;;  %2928 = vst [vmem:[#allocation23_spill] sm:$0xff] %v2459_v34  ;;  %v410_v19 = vadd.f32 %v2394_v26, %v348_v29 }
 0x113   :  { %2929 = vst [vmem:[#allocation24_spill] sm:$0xff] %v2461_v7  ;;  %2930 = vst [vmem:[#allocation25_spill] sm:$0xff] %v2464_v55 }
 0x115   :  { %v704_v17 = vpop.f32.mrb[16].mxu0  ;;  %v745_v44 = vpop.f32.mrb[16].mxu1 }
 0x116   :  { %v752_v3 = vadd.f32 %v704_v17, %v407_v22  ;;  %v754_v31 = vadd.f32 %v745_v44, %v409_v1  ;;  %v706_v21 = vpop.f32.mrb[17].mxu0  ;;  %v747_v34 = vpop.f32.mrb[17].mxu1  ;;  %v2931_v22 = vmov 0  }
 0x117   :  { %v753_v20 = vadd.f32 %v706_v21, %v408_v15  ;;  %v755_v32 = vadd.f32 %v747_v34, %v410_v19  ;;  %v708_v7 = vpop.f32.mrb[18].mxu0  ;;  %v749_v18 = vpop.f32.mrb[18].mxu1 }
 0x118   :  { %v1690_v56 = vmul.f32 -1.442695, %v752_v3  ;;  %v709_v55 = vpop.f32.mrb[19].mxu0  ;;  %v750_v16 = vpop.f32.mrb[19].mxu1 }
 0x119   :  { %v1691_v24 = vmul.f32 -1.442695, %v753_v20  ;;  %v1692_v23 = vmul.f32 -1.442695, %v755_v32 }
 0x11a   :  { %1818 = vpow2.f32 %v1690_v56 }
 0x11b   :  { %1820 = vpow2.f32 %v1691_v24 }
 0x11c   :  { %1822 = vpow2.f32 %v1692_v23 }
 0x11d   :  { %1824 = vtanh.f32 %v754_v31 }
 0x124   :  { %v1819_v25 = vpop.eup %1818 }
 0x125   :  { %v1821_v27 = vpop.eup %1820  ;;  %v759_v26 = vadd.f32 1.0, %v1819_v25 }
 0x126   :  { %v765_v28 = vadd.f32 1.0, %v1821_v27  ;;  %v1823_v1 = vpop.eup %1822 }
 0x127   :  { %1826 = vrcp.f32 %v759_v26  ;;  %v1825_v29 = vpop.eup %1824  ;;  %v772_v44 = vadd.f32 1.0, %v1823_v1 }
 0x128   :  { %1828 = vrcp.f32 %v765_v28 }
 0x129   :  { %1830 = vrcp.f32 %v772_v44 }
 0x131   :  { %v1827_v18 = vpop.eup %1826 }
 0x132   :  { %v1829_v16 = vpop.eup %1828  ;;  %v776_v20 = vmul.f32 %v1827_v18, %v1825_v29 }
 0x133   :  { %v775_v7 = vmul.f32 %v1829_v16, %v33_v30  ;;  %v1831_v31 = vpop.eup %1830 }
 0x135   :  { %v2473_v34 = vadd.f32 %v776_v20, %v775_v7 }
 0x137   :  { %1832 = vtanh.f32 %v2473_v34 }
 0x141   :  { %v1833_v3 = vpop.eup %1832 }
 0x142   :  { %v779_v19 = vmul.f32 %v1833_v3, %v1831_v31 }
 0x144   :  { %780 = vst [vmem:[%s2905_s6] sm:$0xff] %v779_v19  ;;  %v786_v55 = vpack.c.bf16 %v779_v19, %v779_v19 }
 0x146   :  { %820 = vmatmul.mubr.bf16.vlgmr.msra.gmra.mrb[20].mxu0 %v786_v55  ;;  %861 = vmatmul.mubr.bf16.vlgmr.msra.gmra.mrb[20].mxu1 %v786_v55 }
 0x147   :  { %906 = vmatpush1.bf16.msra.mxu0 %v2141_v38  ;;  %947 = vmatpush1.bf16.msra.mxu1 %v2146_v39 }
 0x148   :  { %907 = vmatprep.subr.bf16.mxu0 %v2153_v40  ;;  %948 = vmatprep.subr.bf16.mxu1 %v2158_v41 }
 0x149   :  { %937 = vmatprep.mubr.bf16.mxu0 %v2931_v22  ;;  %978 = vmatprep.mubr.bf16.mxu1 %v2931_v22 }
 0x14b   :  { %908 = vmatpush1.bf16.msra.mxu0 %v2163_v42  ;;  %949 = vmatpush1.bf16.msra.mxu1 %v2168_v43 }
 0x14c   :  { %909 = vmatprep.subr.bf16.mxu0 %v2181_v46  ;;  %950 = vmatprep.subr.bf16.mxu1 %v2188_v47 }
 0x14f   :  { %910 = vmatpush1.bf16.msra.mxu0 %v2195_v49  ;;  %951 = vmatpush1.bf16.msra.mxu1 %v2200_v50 }
 0x150   :  { %911 = vmatprep.subr.bf16.mxu0 %v2207_v51  ;;  %952 = vmatprep.subr.bf16.mxu1 %v2214_v52 }
 0x153   :  { %912 = vmatpush1.bf16.msra.mxu0 %v2219_v53  ;;  %953 = vmatpush1.bf16.msra.mxu1 %v2224_v54 }
 0x154   :  { %913 = vmatprep.subr.bf16.mxu0 %v2239_v57  ;;  %954 = vmatprep.subr.bf16.mxu1 %v2244_v58 }
 0x157   :  { %914 = vmatpush1.bf16.msra.mxu0 %v2253_v60  ;;  %955 = vmatpush1.bf16.msra.mxu1 %v2258_v61 }
 0x158   :  { %915 = vmatprep.subr.bf16.mxu0 %v2265_v62  ;;  %956 = vmatprep.subr.bf16.mxu1 %v2270_v63 }
 0x15b   :  { %916 = vmatpush1.bf16.msra.mxu0 %v2275_v0  ;;  %957 = vmatpush1.bf16.msra.mxu1 %v2282_v2 }
 0x15c   :  { %917 = vmatprep.subr.bf16.mxu0 %v2295_v5  ;;  %958 = vmatprep.subr.bf16.mxu1 %v2300_v6 }
 0x15f   :  { %918 = vmatpush1.bf16.msra.mxu0 %v2309_v8  ;;  %959 = vmatpush1.bf16.msra.mxu1 %v2314_v9 }
 0x160   :  { %919 = vmatprep.subr.bf16.mxu0 %v2321_v10  ;;  %960 = vmatprep.subr.bf16.mxu1 %v2326_v11 }
 0x163   :  { %920 = vmatpush1.bf16.msra.mxu0 %v2333_v12  ;;  %961 = vmatpush1.bf16.msra.mxu1 %v2338_v13 }
 0x164   :  { %1023 = vmatprep.subr.bf16.mxu0 %v2131_v35  ;;  %1064 = vmatprep.subr.bf16.mxu1 %v2136_v36 }
 0x219   :  { %v821_v15 = vpop.f32.mrb[20].mxu0  ;;  %v862_v17 = vpop.f32.mrb[20].mxu1 }
 0x21a   :  { %v869_v21 = vadd.f32 %v821_v15, %v2396_v33  ;;  %v871_v32 = vadd.f32 %v862_v17, %v2399_v37  ;;  %v823_v56 = vpop.f32.mrb[21].mxu0  ;;  %v864_v24 = vpop.f32.mrb[21].mxu1 }
 0x21b   :  { %v870_v23 = vadd.f32 %v823_v56, %v2401_v45  ;;  %v872_v25 = vadd.f32 %v864_v24, %v2404_v48  ;;  %v825_v27 = vpop.f32.mrb[22].mxu0  ;;  %v866_v26 = vpop.f32.mrb[22].mxu1 }
 0x21c   :  { %v1693_v28 = vmul.f32 -1.442695, %v869_v21  ;;  %v826_v1 = vpop.f32.mrb[23].mxu0  ;;  %v867_v29 = vpop.f32.mrb[23].mxu1 }
 0x21d   :  { %v1694_v30 = vmul.f32 -1.442695, %v870_v23  ;;  %v1695_v18 = vmul.f32 -1.442695, %v872_v25 }
 0x21e   :  { %1834 = vpow2.f32 %v1693_v28  ;;  %v2932_v28 = vld [vmem:[#allocation5_spill] sm:$0xff] }
 0x21f   :  { %1836 = vpow2.f32 %v1694_v30 }
 0x220   :  { %1838 = vpow2.f32 %v1695_v18 }
 0x221   :  { %1840 = vtanh.f32 %v871_v32 }
 0x228   :  { %v1835_v16 = vpop.eup %1834 }
 0x229   :  { %v1837_v20 = vpop.eup %1836  ;;  %v876_v33 = vadd.f32 1.0, %v1835_v16 }
 0x22a   :  { %v882_v37 = vadd.f32 1.0, %v1837_v20  ;;  %v1839_v45 = vpop.eup %1838 }
 0x22b   :  { %1842 = vrcp.f32 %v876_v33  ;;  %v1841_v44 = vpop.eup %1840  ;;  %v889_v3 = vadd.f32 1.0, %v1839_v45 }
 0x22c   :  { %1844 = vrcp.f32 %v882_v37 }
 0x22d   :  { %1846 = vrcp.f32 %v889_v3 }
 0x235   :  { %v1843_v48 = vpop.eup %1842 }
 0x236   :  { %v1845_v7 = vpop.eup %1844  ;;  %v893_v31 = vmul.f32 %v1843_v48, %v1841_v44 }
 0x237   :  { %v892_v19 = vmul.f32 %v1845_v7, %v2473_v34  ;;  %v1847_v15 = vpop.eup %1846 }
 0x239   :  { %v2518_v55 = vadd.f32 %v893_v31, %v892_v19 }
 0x23b   :  { %1848 = vtanh.f32 %v2518_v55 }
 0x245   :  { %v1849_v17 = vpop.eup %1848 }
 0x246   :  { %v896_v21 = vmul.f32 %v1849_v17, %v1847_v15 }
 0x248   :  { %1696 = vst [vmem:[%s2905_s6 + $0x8] sm:$0xff] %v896_v21  ;;  %v904_v32 = vpack.c.bf16 %v896_v21, %v896_v21 }
 0x24a   :  { %938 = vmatmul.mubr.bf16.vlgmr.msra.gmra.mrb[24].mxu0 %v904_v32  ;;  %979 = vmatmul.mubr.bf16.vlgmr.msra.gmra.mrb[24].mxu1 %v904_v32 }
 0x24b   :  { %1024 = vmatpush1.bf16.msra.mxu0 %v2141_v38  ;;  %1065 = vmatpush1.bf16.msra.mxu1 %v2146_v39 }
 0x24c   :  { %1025 = vmatprep.subr.bf16.mxu0 %v2153_v40  ;;  %1066 = vmatprep.subr.bf16.mxu1 %v2158_v41 }
 0x24d   :  { %1055 = vmatprep.mubr.bf16.mxu0 %v2931_v22  ;;  %1096 = vmatprep.mubr.bf16.mxu1 %v2931_v22 }
 0x24f   :  { %1026 = vmatpush1.bf16.msra.mxu0 %v2163_v42  ;;  %1067 = vmatpush1.bf16.msra.mxu1 %v2168_v43 }
 0x250   :  { %1027 = vmatprep.subr.bf16.mxu0 %v2181_v46  ;;  %1068 = vmatprep.subr.bf16.mxu1 %v2188_v47 }
 0x253   :  { %1028 = vmatpush1.bf16.msra.mxu0 %v2195_v49  ;;  %1069 = vmatpush1.bf16.msra.mxu1 %v2200_v50 }
 0x254   :  { %1029 = vmatprep.subr.bf16.mxu0 %v2207_v51  ;;  %1070 = vmatprep.subr.bf16.mxu1 %v2214_v52 }
 0x257   :  { %1030 = vmatpush1.bf16.msra.mxu0 %v2219_v53  ;;  %1071 = vmatpush1.bf16.msra.mxu1 %v2224_v54 }
 0x258   :  { %1031 = vmatprep.subr.bf16.mxu0 %v2239_v57  ;;  %1072 = vmatprep.subr.bf16.mxu1 %v2244_v58 }
 0x25b   :  { %1032 = vmatpush1.bf16.msra.mxu0 %v2253_v60  ;;  %1073 = vmatpush1.bf16.msra.mxu1 %v2258_v61 }
 0x25c   :  { %1033 = vmatprep.subr.bf16.mxu0 %v2265_v62  ;;  %1074 = vmatprep.subr.bf16.mxu1 %v2270_v63 }
 0x25f   :  { %1034 = vmatpush1.bf16.msra.mxu0 %v2275_v0  ;;  %1075 = vmatpush1.bf16.msra.mxu1 %v2282_v2 }
 0x260   :  { %1035 = vmatprep.subr.bf16.mxu0 %v2295_v5  ;;  %1076 = vmatprep.subr.bf16.mxu1 %v2300_v6 }
 0x263   :  { %1036 = vmatpush1.bf16.msra.mxu0 %v2309_v8  ;;  %1077 = vmatpush1.bf16.msra.mxu1 %v2314_v9 }
 0x264   :  { %1037 = vmatprep.subr.bf16.mxu0 %v2321_v10  ;;  %1078 = vmatprep.subr.bf16.mxu1 %v2326_v11 }
 0x267   :  { %1038 = vmatpush1.bf16.msra.mxu0 %v2333_v12  ;;  %1079 = vmatpush1.bf16.msra.mxu1 %v2338_v13 }
 0x268   :  { %1141 = vmatprep.subr.bf16.mxu0 %v2131_v35  ;;  %1182 = vmatprep.subr.bf16.mxu1 %v2136_v36 }
 0x31d   :  { %v939_v34 = vpop.f32.mrb[24].mxu0  ;;  %v980_v56 = vpop.f32.mrb[24].mxu1 }
 0x31e   :  { %v987_v24 = vadd.f32 %v939_v34, %v2406_v59  ;;  %v989_v23 = vadd.f32 %v980_v56, %v2409_v4  ;;  %v941_v25 = vpop.f32.mrb[25].mxu0  ;;  %v982_v27 = vpop.f32.mrb[25].mxu1 }
 0x31f   :  { %v988_v26 = vadd.f32 %v941_v25, %v2411_v14  ;;  %v990_v1 = vadd.f32 %v982_v27, %v2932_v28  ;;  %v943_v29 = vpop.f32.mrb[26].mxu0  ;;  %v984_v30 = vpop.f32.mrb[26].mxu1  ;;  %v2934_v27 = vld [vmem:[#allocation7_spill] sm:$0xff] }
 0x320   :  { %v1697_v18 = vmul.f32 -1.442695, %v987_v24  ;;  %v944_v16 = vpop.f32.mrb[27].mxu0  ;;  %v985_v20 = vpop.f32.mrb[27].mxu1  ;;  %v2935_v29 = vld [vmem:[#allocation8_spill] sm:$0xff] }
 0x321   :  { %v1698_v33 = vmul.f32 -1.442695, %v988_v26  ;;  %v1699_v37 = vmul.f32 -1.442695, %v990_v1 }
 0x322   :  { %1850 = vpow2.f32 %v1697_v18  ;;  %v2936_v18 = vld [vmem:[#allocation9_spill] sm:$0xff] }
 0x323   :  { %1852 = vpow2.f32 %v1698_v33 }
 0x324   :  { %1854 = vpow2.f32 %v1699_v37 }
 0x325   :  { %1856 = vtanh.f32 %v989_v23  ;;  %v2933_v23 = vld [vmem:[#allocation6_spill] sm:$0xff] }
 0x32c   :  { %v1851_v45 = vpop.eup %1850 }
 0x32d   :  { %v1853_v44 = vpop.eup %1852  ;;  %v994_v59 = vadd.f32 1.0, %v1851_v45 }
 0x32e   :  { %v1000_v4 = vadd.f32 1.0, %v1853_v44  ;;  %v1855_v14 = vpop.eup %1854 }
 0x32f   :  { %1858 = vrcp.f32 %v994_v59  ;;  %v1857_v48 = vpop.eup %1856  ;;  %v1007_v19 = vadd.f32 1.0, %v1855_v14 }
 0x330   :  { %1860 = vrcp.f32 %v1000_v4 }
 0x331   :  { %1862 = vrcp.f32 %v1007_v19 }
 0x339   :  { %v1859_v7 = vpop.eup %1858 }
 0x33a   :  { %v1861_v31 = vpop.eup %1860  ;;  %v1011_v3 = vmul.f32 %v1859_v7, %v1857_v48 }
 0x33b   :  { %v1010_v15 = vmul.f32 %v1861_v31, %v2518_v55  ;;  %v1863_v21 = vpop.eup %1862 }
 0x33d   :  { %v2563_v17 = vadd.f32 %v1011_v3, %v1010_v15 }
 0x33f   :  { %1864 = vtanh.f32 %v2563_v17 }
 0x349   :  { %v1865_v32 = vpop.eup %1864 }
 0x34a   :  { %v1014_v34 = vmul.f32 %v1865_v32, %v1863_v21 }
 0x34c   :  { %1700 = vst [vmem:[%s2905_s6 + $0x10] sm:$0xff] %v1014_v34  ;;  %v1022_v56 = vpack.c.bf16 %v1014_v34, %v1014_v34 }
 0x34e   :  { %1056 = vmatmul.mubr.bf16.vlgmr.msra.gmra.mrb[28].mxu0 %v1022_v56  ;;  %1097 = vmatmul.mubr.bf16.vlgmr.msra.gmra.mrb[28].mxu1 %v1022_v56 }
 0x34f   :  { %1142 = vmatpush1.bf16.msra.mxu0 %v2141_v38  ;;  %1183 = vmatpush1.bf16.msra.mxu1 %v2146_v39 }
 0x350   :  { %1143 = vmatprep.subr.bf16.mxu0 %v2153_v40  ;;  %1184 = vmatprep.subr.bf16.mxu1 %v2158_v41 }
 0x351   :  { %1173 = vmatprep.mubr.bf16.mxu0 %v2931_v22  ;;  %1214 = vmatprep.mubr.bf16.mxu1 %v2931_v22 }
 0x353   :  { %1144 = vmatpush1.bf16.msra.mxu0 %v2163_v42  ;;  %1185 = vmatpush1.bf16.msra.mxu1 %v2168_v43 }
 0x354   :  { %1145 = vmatprep.subr.bf16.mxu0 %v2181_v46  ;;  %1186 = vmatprep.subr.bf16.mxu1 %v2188_v47 }
 0x357   :  { %1146 = vmatpush1.bf16.msra.mxu0 %v2195_v49  ;;  %1187 = vmatpush1.bf16.msra.mxu1 %v2200_v50 }
 0x358   :  { %1147 = vmatprep.subr.bf16.mxu0 %v2207_v51  ;;  %1188 = vmatprep.subr.bf16.mxu1 %v2214_v52 }
 0x35b   :  { %1148 = vmatpush1.bf16.msra.mxu0 %v2219_v53  ;;  %1189 = vmatpush1.bf16.msra.mxu1 %v2224_v54 }
 0x35c   :  { %1149 = vmatprep.subr.bf16.mxu0 %v2239_v57  ;;  %1190 = vmatprep.subr.bf16.mxu1 %v2244_v58 }
 0x35f   :  { %1150 = vmatpush1.bf16.msra.mxu0 %v2253_v60  ;;  %1191 = vmatpush1.bf16.msra.mxu1 %v2258_v61 }
 0x360   :  { %1151 = vmatprep.subr.bf16.mxu0 %v2265_v62  ;;  %1192 = vmatprep.subr.bf16.mxu1 %v2270_v63 }
 0x363   :  { %1152 = vmatpush1.bf16.msra.mxu0 %v2275_v0  ;;  %1193 = vmatpush1.bf16.msra.mxu1 %v2282_v2 }
 0x364   :  { %1153 = vmatprep.subr.bf16.mxu0 %v2295_v5  ;;  %1194 = vmatprep.subr.bf16.mxu1 %v2300_v6 }
 0x367   :  { %1154 = vmatpush1.bf16.msra.mxu0 %v2309_v8  ;;  %1195 = vmatpush1.bf16.msra.mxu1 %v2314_v9 }
 0x368   :  { %1155 = vmatprep.subr.bf16.mxu0 %v2321_v10  ;;  %1196 = vmatprep.subr.bf16.mxu1 %v2326_v11 }
 0x36b   :  { %1156 = vmatpush1.bf16.msra.mxu0 %v2333_v12  ;;  %1197 = vmatpush1.bf16.msra.mxu1 %v2338_v13 }
 0x36c   :  { %1259 = vmatprep.subr.bf16.mxu0 %v2131_v35  ;;  %1300 = vmatprep.subr.bf16.mxu1 %v2136_v36 }
 0x421   :  { %v1057_v55 = vpop.f32.mrb[28].mxu0  ;;  %v1098_v24 = vpop.f32.mrb[28].mxu1 }
 0x422   :  { %v1105_v25 = vadd.f32 %v1057_v55, %v2933_v23  ;;  %v1107_v26 = vadd.f32 %v1098_v24, %v2934_v27  ;;  %v1059_v28 = vpop.f32.mrb[29].mxu0  ;;  %v1100_v1 = vpop.f32.mrb[29].mxu1 }
 0x423   :  { %v1106_v30 = vadd.f32 %v1059_v28, %v2935_v29  ;;  %v1108_v16 = vadd.f32 %v1100_v1, %v2936_v18  ;;  %v1061_v20 = vpop.f32.mrb[30].mxu0  ;;  %v1102_v33 = vpop.f32.mrb[30].mxu1 }
 0x424   :  { %v1701_v37 = vmul.f32 -1.442695, %v1105_v25  ;;  %v1062_v45 = vpop.f32.mrb[31].mxu0  ;;  %v1103_v44 = vpop.f32.mrb[31].mxu1 }
 0x425   :  { %v1702_v35 = vmul.f32 -1.442695, %v1106_v30  ;;  %v1703_v36 = vmul.f32 -1.442695, %v1108_v16  ;;  %v2672_v45 = vld [vmem:[%s2900_s2] ss:$16 sps:$4 sm:$0xff]  }
 0x426   :  { %1866 = vpow2.f32 %v1701_v37  ;;  %v2678_v44 = vld [vmem:[%s2900_s2 + $0x8] ss:$16 sps:$4 sm:$0xff]  }
 0x427   :  { %1868 = vpow2.f32 %v1702_v35  ;;  %v2684_v35 = vld [vmem:[%s2900_s2 + $0x24] ss:$16 sps:$4 sm:$0xff]  }
 0x428   :  { %1870 = vpow2.f32 %v1703_v36  ;;  %v2690_v36 = vld [vmem:[%s2900_s2 + $0x2c] ss:$16 sps:$4 sm:$0xff]  }
 0x429   :  { %1872 = vtanh.f32 %v1107_v26 }
 0x430   :  { %v1867_v59 = vpop.eup %1866 }
 0x431   :  { %v1869_v4 = vpop.eup %1868  ;;  %v1112_v14 = vadd.f32 1.0, %v1867_v59  ;;  %v2698_v59 = vld [vmem:[%s2900_s2 + $0x20] ss:$16 sps:$4 sm:$0xff]  }
 0x432   :  { %v1118_v48 = vadd.f32 1.0, %v1869_v4  ;;  %v1871_v7 = vpop.eup %1870  ;;  %v2704_v4 = vld [vmem:[%s2900_s2 + $0x28] ss:$16 sps:$4 sm:$0xff]  }
 0x433   :  { %1874 = vrcp.f32 %v1112_v14  ;;  %v1873_v31 = vpop.eup %1872  ;;  %v1125_v21 = vadd.f32 1.0, %v1871_v7  ;;  %v2710_v14 = vld [vmem:[%s2900_s2 + $0x44] ss:$16 sps:$4 sm:$0xff]   ;;  %v2722_v7 = vld [vmem:[%s2900_s2 + $0x40] ss:$16 sps:$4 sm:$0xff]  }
 0x434   :  { %1876 = vrcp.f32 %v1118_v48  ;;  %v2716_v48 = vld [vmem:[%s2900_s2 + $0x4c] ss:$16 sps:$4 sm:$0xff]  }
 0x435   :  { %1878 = vrcp.f32 %v1125_v21  ;;  %v2752_v21 = vld [vmem:[%s2900_s2 + $0x68] ss:$16 sps:$4 sm:$0xff]  }
 0x43d   :  { %v1875_v3 = vpop.eup %1874 }
 0x43e   :  { %v1877_v19 = vpop.eup %1876  ;;  %v1129_v15 = vmul.f32 %v1875_v3, %v1873_v31  ;;  %v2728_v31 = vld [vmem:[%s2900_s2 + $0x48] ss:$16 sps:$4 sm:$0xff]   ;;  %v2734_v3 = vld [vmem:[%s2900_s2 + $0x64] ss:$16 sps:$4 sm:$0xff]  }
 0x43f   :  { %v1128_v32 = vmul.f32 %v1877_v19, %v2563_v17  ;;  %v1879_v56 = vpop.eup %1878  ;;  %v2740_v19 = vld [vmem:[%s2900_s2 + $0x6c] ss:$16 sps:$4 sm:$0xff]  }
 0x441   :  { %v2608_v34 = vadd.f32 %v1129_v15, %v1128_v32  ;;  %v2746_v15 = vld [vmem:[%s2900_s2 + $0x60] ss:$16 sps:$4 sm:$0xff]   ;;  %v2758_v32 = vld [vmem:[%s2900_s2 + $0x84] ss:$16 sps:$4 sm:$0xff]  }
 0x443   :  { %1880 = vtanh.f32 %v2608_v34 }
 0x44d   :  { %v1881_v55 = vpop.eup %1880 }
 0x44e   :  { %v1132_v24 = vmul.f32 %v1881_v55, %v1879_v56  ;;  %v2770_v56 = vld [vmem:[%s2900_s2 + $0x80] ss:$16 sps:$4 sm:$0xff]   ;;  %v2776_v55 = vld [vmem:[%s2900_s2 + $0x88] ss:$16 sps:$4 sm:$0xff]  }
 0x450   :  { %1704 = vst [vmem:[%s2905_s6 + $0x18] sm:$0xff] %v1132_v24  ;;  %v1140_v23 = vpack.c.bf16 %v1132_v24, %v1132_v24  ;;  %v2782_v24 = vld [vmem:[%s2900_s2 + $0xa4] ss:$16 sps:$4 sm:$0xff]  }
 0x452   :  { %1174 = vmatmul.mubr.bf16.vlgmr.msra.gmra.mrb[32].mxu0 %v1140_v23  ;;  %1215 = vmatmul.mubr.bf16.vlgmr.msra.gmra.mrb[32].mxu1 %v1140_v23  ;;  %v2788_v23 = vld [vmem:[%s2900_s2 + $0xac] ss:$16 sps:$4 sm:$0xff]  }
 0x453   :  { %1260 = vmatpush1.bf16.msra.mxu0 %v2141_v38  ;;  %1301 = vmatpush1.bf16.msra.mxu1 %v2146_v39  ;;  %v2649_v38 = vld [vmem:[%s2900_s2 + $0x4] ss:$16 sps:$4 sm:$0xff]   ;;  %v2655_v39 = vld [vmem:[%s2900_s2 + $0xc] ss:$16 sps:$4 sm:$0xff]  }
 0x454   :  { %1261 = vmatprep.subr.bf16.mxu0 %v2153_v40  ;;  %1302 = vmatprep.subr.bf16.mxu1 %v2158_v41 }
 0x455   :  { %1291 = vmatprep.mubr.bf16.mxu0 %v2931_v22  ;;  %1332 = vmatprep.mubr.bf16.mxu1 %v2931_v22 }
 0x457   :  { %1262 = vmatpush1.bf16.msra.mxu0 %v2163_v42  ;;  %1303 = vmatpush1.bf16.msra.mxu1 %v2168_v43  ;;  %v2937_v42 = vld [vmem:[#allocation10_spill] sm:$0xff] }
 0x458   :  { %1263 = vmatprep.subr.bf16.mxu0 %v2181_v46  ;;  %1304 = vmatprep.subr.bf16.mxu1 %v2188_v47  ;;  %v2938_v46 = vld [vmem:[#allocation11_spill] sm:$0xff] }
 0x45b   :  { %1264 = vmatpush1.bf16.msra.mxu0 %v2195_v49  ;;  %1305 = vmatpush1.bf16.msra.mxu1 %v2200_v50 }
 0x45c   :  { %1265 = vmatprep.subr.bf16.mxu0 %v2207_v51  ;;  %1306 = vmatprep.subr.bf16.mxu1 %v2214_v52  ;;  %v2939_v51 = vld [vmem:[#allocation12_spill] sm:$0xff] }
 0x45f   :  { %1266 = vmatpush1.bf16.msra.mxu0 %v2219_v53  ;;  %1307 = vmatpush1.bf16.msra.mxu1 %v2224_v54  ;;  %v2940_v53 = vld [vmem:[#allocation13_spill] sm:$0xff] }
 0x460   :  { %1267 = vmatprep.subr.bf16.mxu0 %v2239_v57  ;;  %1308 = vmatprep.subr.bf16.mxu1 %v2244_v58 }
 0x463   :  { %1268 = vmatpush1.bf16.msra.mxu0 %v2253_v60  ;;  %1309 = vmatpush1.bf16.msra.mxu1 %v2258_v61 }
 0x464   :  { %1269 = vmatprep.subr.bf16.mxu0 %v2265_v62  ;;  %1310 = vmatprep.subr.bf16.mxu1 %v2270_v63 }
 0x467   :  { %1270 = vmatpush1.bf16.msra.mxu0 %v2275_v0  ;;  %1311 = vmatpush1.bf16.msra.mxu1 %v2282_v2 }
 0x468   :  { %1271 = vmatprep.subr.bf16.mxu0 %v2295_v5  ;;  %1312 = vmatprep.subr.bf16.mxu1 %v2300_v6 }
 0x46b   :  { %1272 = vmatpush1.bf16.msra.mxu0 %v2309_v8  ;;  %1313 = vmatpush1.bf16.msra.mxu1 %v2314_v9 }
 0x46c   :  { %1273 = vmatprep.subr.bf16.mxu0 %v2321_v10  ;;  %1314 = vmatprep.subr.bf16.mxu1 %v2326_v11 }
 0x46f   :  { %1274 = vmatpush1.bf16.msra.mxu0 %v2333_v12  ;;  %1315 = vmatpush1.bf16.msra.mxu1 %v2338_v13 }
 0x470   :  { %1377 = vmatprep.subr.bf16.mxu0 %v2649_v38  ;;  %1418 = vmatprep.subr.bf16.mxu1 %v2655_v39 }
 0x525   :  { %v1175_v40 = vpop.f32.mrb[32].mxu0  ;;  %v1216_v41 = vpop.f32.mrb[32].mxu1 }
 0x526   :  { %v1223_v43 = vadd.f32 %v1175_v40, %v2937_v42  ;;  %v1225_v47 = vadd.f32 %v1216_v41, %v2938_v46  ;;  %v1177_v49 = vpop.f32.mrb[33].mxu0  ;;  %v1218_v50 = vpop.f32.mrb[33].mxu1  ;;  %v2794_v40 = vld [vmem:[%s2900_s2 + $0xa0] ss:$16 sps:$4 sm:$0xff]   ;;  %v2800_v41 = vld [vmem:[%s2900_s2 + $0xa8] ss:$16 sps:$4 sm:$0xff]  }
 0x527   :  { %v1224_v52 = vadd.f32 %v1177_v49, %v2939_v51  ;;  %v1226_v54 = vadd.f32 %v1218_v50, %v2940_v53  ;;  %v1179_v57 = vpop.f32.mrb[34].mxu0  ;;  %v1220_v58 = vpop.f32.mrb[34].mxu1  ;;  %v2806_v42 = vld [vmem:[%s2900_s2 + $0xc4] ss:$16 sps:$4 sm:$0xff]   ;;  %v2941_v49 = vld [vmem:[#allocation14_spill] sm:$0xff]  ;;  %v2943_v53 = vld [vmem:[#allocation16_spill] sm:$0xff] }
 0x528   :  { %v1705_v60 = vmul.f32 -1.442695, %v1223_v43  ;;  %v1180_v61 = vpop.f32.mrb[35].mxu0  ;;  %v1221_v62 = vpop.f32.mrb[35].mxu1  ;;  %v2812_v43 = vld [vmem:[%s2900_s2 + $0xcc] ss:$16 sps:$4 sm:$0xff]  }
 0x529   :  { %v1706_v63 = vmul.f32 -1.442695, %v1224_v52  ;;  %v1707_v0 = vmul.f32 -1.442695, %v1226_v54  ;;  %v2942_v51 = vld [vmem:[#allocation15_spill] sm:$0xff]  ;;  %v2944_v54 = vld [vmem:[#allocation17_spill] sm:$0xff] }
 0x52a   :  { %1882 = vpow2.f32 %v1705_v60 }
 0x52b   :  { %1884 = vpow2.f32 %v1706_v63 }
 0x52c   :  { %1886 = vpow2.f32 %v1707_v0 }
 0x52d   :  { %1888 = vtanh.f32 %v1225_v47 }
 0x534   :  { %v1883_v2 = vpop.eup %1882 }
 0x535   :  { %v1885_v5 = vpop.eup %1884  ;;  %v1230_v6 = vadd.f32 1.0, %v1883_v2 }
 0x536   :  { %v1236_v17 = vadd.f32 1.0, %v1885_v5  ;;  %v1887_v25 = vpop.eup %1886 }
 0x537   :  { %1890 = vrcp.f32 %v1230_v6  ;;  %v1889_v27 = vpop.eup %1888  ;;  %v1243_v29 = vadd.f32 1.0, %v1887_v25 }
 0x538   :  { %1892 = vrcp.f32 %v1236_v17 }
 0x539   :  { %1894 = vrcp.f32 %v1243_v29 }
 0x541   :  { %v1891_v26 = vpop.eup %1890 }
 0x542   :  { %v1893_v28 = vpop.eup %1892  ;;  %v1247_v1 = vmul.f32 %v1891_v26, %v1889_v27 }
 0x543   :  { %v1246_v30 = vmul.f32 %v1893_v28, %v2608_v34  ;;  %v1895_v16 = vpop.eup %1894  ;;  %v2764_v34 = vld [vmem:[%s2900_s2 + $0x8c] ss:$16 sps:$4 sm:$0xff]  }
 0x545   :  { %v2663_v18 = vadd.f32 %v1247_v1, %v1246_v30 }
 0x547   :  { %1896 = vtanh.f32 %v2663_v18 }
 0x551   :  { %v1897_v20 = vpop.eup %1896 }
 0x552   :  { %v1250_v33 = vmul.f32 %v1897_v20, %v1895_v16  ;;  %v1974_v20 = vld [vmem:[%s2900_s2 + $0xe4] ss:$16 sps:$4 sm:$0xff]  }
 0x554   :  { %1708 = vst [vmem:[%s2905_s6 + $0x20] sm:$0xff] %v1250_v33  ;;  %v1258_v37 = vpack.c.bf16 %v1250_v33, %v1250_v33  ;;  %v1975_v33 = vld [vmem:[%s2900_s2 + $0xec] ss:$16 sps:$4 sm:$0xff]  }
 0x556   :  { %1292 = vmatmul.mubr.bf16.vlgmr.msra.gmra.mrb[36].mxu0 %v1258_v37  ;;  %1333 = vmatmul.mubr.bf16.vlgmr.msra.gmra.mrb[36].mxu1 %v1258_v37  ;;  %v1976_v37 = vld [vmem:[%s2900_s2 + $0xe0] ss:$16 sps:$4 sm:$0xff]  }
 0x557   :  { %1378 = vmatpush1.bf16.msra.mxu0 %v2672_v45  ;;  %1419 = vmatpush1.bf16.msra.mxu1 %v2678_v44 }
 0x558   :  { %1379 = vmatprep.subr.bf16.mxu0 %v2684_v35  ;;  %1420 = vmatprep.subr.bf16.mxu1 %v2690_v36 }
 0x559   :  { %1409 = vmatprep.mubr.bf16.mxu0 %v2931_v22  ;;  %1450 = vmatprep.mubr.bf16.mxu1 %v2931_v22 }
 0x55b   :  { %1380 = vmatpush1.bf16.msra.mxu0 %v2698_v59  ;;  %1421 = vmatpush1.bf16.msra.mxu1 %v2704_v4 }
 0x55c   :  { %1381 = vmatprep.subr.bf16.mxu0 %v2710_v14  ;;  %1422 = vmatprep.subr.bf16.mxu1 %v2716_v48 }
 0x55f   :  { %1382 = vmatpush1.bf16.msra.mxu0 %v2722_v7  ;;  %1423 = vmatpush1.bf16.msra.mxu1 %v2728_v31 }
 0x560   :  { %1383 = vmatprep.subr.bf16.mxu0 %v2734_v3  ;;  %1424 = vmatprep.subr.bf16.mxu1 %v2740_v19 }
 0x563   :  { %1384 = vmatpush1.bf16.msra.mxu0 %v2746_v15  ;;  %1425 = vmatpush1.bf16.msra.mxu1 %v2752_v21 }
 0x564   :  { %1385 = vmatprep.subr.bf16.mxu0 %v2758_v32  ;;  %1426 = vmatprep.subr.bf16.mxu1 %v2764_v34 }
 0x567   :  { %1386 = vmatpush1.bf16.msra.mxu0 %v2770_v56  ;;  %1427 = vmatpush1.bf16.msra.mxu1 %v2776_v55 }
 0x568   :  { %1387 = vmatprep.subr.bf16.mxu0 %v2782_v24  ;;  %1428 = vmatprep.subr.bf16.mxu1 %v2788_v23 }
 0x56b   :  { %1388 = vmatpush1.bf16.msra.mxu0 %v2794_v40  ;;  %1429 = vmatpush1.bf16.msra.mxu1 %v2800_v41 }
 0x56c   :  { %1389 = vmatprep.subr.bf16.mxu0 %v2806_v42  ;;  %1430 = vmatprep.subr.bf16.mxu1 %v2812_v43 }
 0x56f   :  { %1390 = vmatpush1.bf16.msra.mxu0 %v2309_v8  ;;  %1431 = vmatpush1.bf16.msra.mxu1 %v2314_v9 }
 0x570   :  { %1391 = vmatprep.subr.bf16.mxu0 %v2321_v10  ;;  %1432 = vmatprep.subr.bf16.mxu1 %v2326_v11 }
 0x573   :  { %1392 = vmatpush1.bf16.msra.mxu0 %v2333_v12  ;;  %1433 = vmatpush1.bf16.msra.mxu1 %v2338_v13 }
 0x574   :  { %1495 = vmatprep.subr.bf16.mxu0 %v2649_v38  ;;  %1536 = vmatprep.subr.bf16.mxu1 %v2655_v39 }
 0x629   :  { %v1293_v46 = vpop.f32.mrb[36].mxu0  ;;  %v1334_v47 = vpop.f32.mrb[36].mxu1 }
 0x62a   :  { %v1341_v50 = vadd.f32 %v1293_v46, %v2941_v49  ;;  %v1343_v8 = vadd.f32 %v1334_v47, %v2942_v51  ;;  %v1295_v52 = vpop.f32.mrb[37].mxu0  ;;  %v1336_v9 = vpop.f32.mrb[37].mxu1 }
 0x62b   :  { %v1342_v10 = vadd.f32 %v1295_v52, %v2943_v53  ;;  %v1344_v11 = vadd.f32 %v1336_v9, %v2944_v54  ;;  %v1297_v57 = vpop.f32.mrb[38].mxu0  ;;  %v1338_v12 = vpop.f32.mrb[38].mxu1 }
 0x62c   :  { %v1709_v58 = vmul.f32 -1.442695, %v1341_v50  ;;  %v1298_v13 = vpop.f32.mrb[39].mxu0  ;;  %v1339_v60 = vpop.f32.mrb[39].mxu1 }
 0x62d   :  { %v1710_v38 = vmul.f32 -1.442695, %v1342_v10  ;;  %v1711_v39 = vmul.f32 -1.442695, %v1344_v11  ;;  %v2950_v60 = vld [vmem:[#allocation23_spill] sm:$0xff] }
 0x62e   :  { %1898 = vpow2.f32 %v1709_v58  ;;  %v2949_v58 = vld [vmem:[#allocation22_spill] sm:$0xff] }
 0x62f   :  { %1900 = vpow2.f32 %v1710_v38 }
 0x630   :  { %1902 = vpow2.f32 %v1711_v39 }
 0x631   :  { %1904 = vtanh.f32 %v1343_v8 }
 0x638   :  { %v1899_v61 = vpop.eup %1898 }
 0x639   :  { %v1901_v62 = vpop.eup %1900  ;;  %v1348_v63 = vadd.f32 1.0, %v1899_v61 }
 0x63a   :  { %v1354_v0 = vadd.f32 1.0, %v1901_v62  ;;  %v1903_v2 = vpop.eup %1902  ;;  %v2951_v62 = vld [vmem:[#allocation24_spill] sm:$0xff] }
 0x63b   :  { %1906 = vrcp.f32 %v1348_v63  ;;  %v1905_v5 = vpop.eup %1904  ;;  %v1361_v27 = vadd.f32 1.0, %v1903_v2 }
 0x63c   :  { %1908 = vrcp.f32 %v1354_v0  ;;  %v2952_v0 = vld [vmem:[#allocation25_spill] sm:$0xff] }
 0x63d   :  { %1910 = vrcp.f32 %v1361_v27 }
 0x645   :  { %v1907_v6 = vpop.eup %1906 }
 0x646   :  { %v1909_v17 = vpop.eup %1908  ;;  %v1365_v25 = vmul.f32 %v1907_v6, %v1905_v5 }
 0x647   :  { %v1364_v26 = vmul.f32 %v1909_v17, %v2663_v18  ;;  %v1911_v1 = vpop.eup %1910  ;;  %v1973_v18 = vld [vmem:[%s2900_s2 + $0xc8] ss:$16 sps:$4 sm:$0xff]  }
 0x649   :  { %v2828_v28 = vadd.f32 %v1365_v25, %v1364_v26 }
 0x64b   :  { %1912 = vtanh.f32 %v2828_v28 }
 0x655   :  { %v1913_v29 = vpop.eup %1912 }
 0x656   :  { %v1368_v30 = vmul.f32 %v1913_v29, %v1911_v1 }
 0x658   :  { %1712 = vst [vmem:[%s2905_s6 + $0x28] sm:$0xff] %v1368_v30  ;;  %v1376_v16 = vpack.c.bf16 %v1368_v30, %v1368_v30 }
 0x65a   :  { %1410 = vmatmul.mubr.bf16.vlgmr.msra.gmra.mrb[40].mxu0 %v1376_v16  ;;  %1451 = vmatmul.mubr.bf16.vlgmr.msra.gmra.mrb[40].mxu1 %v1376_v16 }
 0x65b   :  { %1496 = vmatpush1.bf16.msra.mxu0 %v2672_v45  ;;  %1537 = vmatpush1.bf16.msra.mxu1 %v2678_v44  ;;  %v1977_v45 = vld [vmem:[%s2900_s2 + $0xe8] ss:$16 sps:$4 sm:$0xff]  }
 0x65c   :  { %1497 = vmatprep.subr.bf16.mxu0 %v2684_v35  ;;  %1538 = vmatprep.subr.bf16.mxu1 %v2690_v36  ;;  %v2945_v36 = vld [vmem:[#allocation18_spill] sm:$0xff] }
 0x65d   :  { %1527 = vmatprep.mubr.bf16.mxu0 %v2931_v22  ;;  %1568 = vmatprep.mubr.bf16.mxu1 %v2931_v22  ;;  %v1972_v22 = vld [vmem:[%s2900_s2 + $0xc0] ss:$16 sps:$4 sm:$0xff]  }
 0x65f   :  { %1498 = vmatpush1.bf16.msra.mxu0 %v2698_v59  ;;  %1539 = vmatpush1.bf16.msra.mxu1 %v2704_v4  ;;  %v2946_v4 = vld [vmem:[#allocation19_spill] sm:$0xff] }
 0x660   :  { %1499 = vmatprep.subr.bf16.mxu0 %v2710_v14  ;;  %1540 = vmatprep.subr.bf16.mxu1 %v2716_v48 }
 0x663   :  { %1500 = vmatpush1.bf16.msra.mxu0 %v2722_v7  ;;  %1541 = vmatpush1.bf16.msra.mxu1 %v2728_v31  ;;  %v2947_v31 = vld [vmem:[#allocation20_spill] sm:$0xff] }
 0x664   :  { %1501 = vmatprep.subr.bf16.mxu0 %v2734_v3  ;;  %1542 = vmatprep.subr.bf16.mxu1 %v2740_v19  ;;  %v2948_v19 = vld [vmem:[#allocation21_spill] sm:$0xff] }
 0x667   :  { %1502 = vmatpush1.bf16.msra.mxu0 %v2746_v15  ;;  %1543 = vmatpush1.bf16.msra.mxu1 %v2752_v21 }
 0x668   :  { %1503 = vmatprep.subr.bf16.mxu0 %v2758_v32  ;;  %1544 = vmatprep.subr.bf16.mxu1 %v2764_v34 }
 0x66b   :  { %1504 = vmatpush1.bf16.msra.mxu0 %v2770_v56  ;;  %1545 = vmatpush1.bf16.msra.mxu1 %v2776_v55 }
 0x66c   :  { %1505 = vmatprep.subr.bf16.mxu0 %v2782_v24  ;;  %1546 = vmatprep.subr.bf16.mxu1 %v2788_v23 }
 0x66f   :  { %1506 = vmatpush1.bf16.msra.mxu0 %v2794_v40  ;;  %1547 = vmatpush1.bf16.msra.mxu1 %v2800_v41 }
 0x670   :  { %1507 = vmatprep.subr.bf16.mxu0 %v2806_v42  ;;  %1548 = vmatprep.subr.bf16.mxu1 %v2812_v43 }
 0x673   :  { %1508 = vmatpush1.bf16.msra.mxu0 %v1972_v22  ;;  %1549 = vmatpush1.bf16.msra.mxu1 %v1973_v18 }
 0x674   :  { %1509 = vmatprep.subr.bf16.mxu0 %v1974_v20  ;;  %1550 = vmatprep.subr.bf16.mxu1 %v1975_v33 }
 0x677   :  { %1510 = vmatpush1.bf16.msra.mxu0 %v1976_v37  ;;  %1551 = vmatpush1.bf16.msra.mxu1 %v1977_v45 }
 0x72d   :  { %v1411_v44 = vpop.f32.mrb[40].mxu0  ;;  %v1452_v35 = vpop.f32.mrb[40].mxu1 }
 0x72e   :  { %v1459_v59 = vadd.f32 %v1411_v44, %v2945_v36  ;;  %v1461_v14 = vadd.f32 %v1452_v35, %v2946_v4  ;;  %v1413_v48 = vpop.f32.mrb[41].mxu0  ;;  %v1454_v7 = vpop.f32.mrb[41].mxu1 }
 0x72f   :  { %v1460_v3 = vadd.f32 %v1413_v48, %v2947_v31  ;;  %v1462_v15 = vadd.f32 %v1454_v7, %v2948_v19  ;;  %v1415_v21 = vpop.f32.mrb[42].mxu0  ;;  %v1456_v32 = vpop.f32.mrb[42].mxu1 }
 0x730   :  { %v1713_v34 = vmul.f32 -1.442695, %v1459_v59  ;;  %v1416_v56 = vpop.f32.mrb[43].mxu0  ;;  %v1457_v55 = vpop.f32.mrb[43].mxu1 }
 0x731   :  { %v1714_v24 = vmul.f32 -1.442695, %v1460_v3  ;;  %v1715_v23 = vmul.f32 -1.442695, %v1462_v15 }
 0x732   :  { %1914 = vpow2.f32 %v1713_v34 }
 0x733   :  { %1916 = vpow2.f32 %v1714_v24 }
 0x734   :  { %1918 = vpow2.f32 %v1715_v23 }
 0x735   :  { %1920 = vtanh.f32 %v1461_v14 }
 0x73c   :  { %v1915_v40 = vpop.eup %1914 }
 0x73d   :  { %v1917_v41 = vpop.eup %1916  ;;  %v1466_v42 = vadd.f32 1.0, %v1915_v40 }
 0x73e   :  { %v1472_v43 = vadd.f32 1.0, %v1917_v41  ;;  %v1919_v46 = vpop.eup %1918 }
 0x73f   :  { %1922 = vrcp.f32 %v1466_v42  ;;  %v1921_v47 = vpop.eup %1920  ;;  %v1479_v8 = vadd.f32 1.0, %v1919_v46 }
 0x740   :  { %1924 = vrcp.f32 %v1472_v43 }
 0x741   :  { %1926 = vrcp.f32 %v1479_v8 }
 0x749   :  { %v1923_v49 = vpop.eup %1922 }
 0x74a   :  { %v1925_v50 = vpop.eup %1924  ;;  %v1483_v51 = vmul.f32 %v1923_v49, %v1921_v47 }
 0x74b   :  { %v1482_v52 = vmul.f32 %v1925_v50, %v2828_v28  ;;  %v1927_v53 = vpop.eup %1926 }
 0x74d   :  { %v1484_v9 = vadd.f32 %v1483_v51, %v1482_v52 }
 0x74f   :  { %1928 = vtanh.f32 %v1484_v9 }
 0x759   :  { %v1929_v10 = vpop.eup %1928 }
 0x75a   :  { %v1486_v54 = vmul.f32 %v1929_v10, %v1927_v53 }
 0x75c   :  { %1716 = vst [vmem:[%s2905_s6 + $0x30] sm:$0xff] %v1486_v54  ;;  %v1494_v11 = vpack.c.bf16 %v1486_v54, %v1486_v54 }
 0x75e   :  { %1528 = vmatmul.mubr.bf16.vlgmr.msra.gmra.mrb[44].mxu0 %v1494_v11  ;;  %1569 = vmatmul.mubr.bf16.vlgmr.msra.gmra.mrb[44].mxu1 %v1494_v11 }
 0x831   :  { %v1529_v57 = vpop.f32.mrb[44].mxu0  ;;  %v1570_v12 = vpop.f32.mrb[44].mxu1 }
 0x832   :  { %v1577_v13 = vadd.f32 %v1529_v57, %v2949_v58  ;;  %v1579_v38 = vadd.f32 %v1570_v12, %v2950_v60  ;;  %v1531_v39 = vpop.f32.mrb[45].mxu0  ;;  %v1572_v61 = vpop.f32.mrb[45].mxu1 }
 0x833   :  { %v1578_v63 = vadd.f32 %v1531_v39, %v2951_v62  ;;  %v1580_v2 = vadd.f32 %v1572_v61, %v2952_v0  ;;  %v1533_v5 = vpop.f32.mrb[46].mxu0  ;;  %v1574_v6 = vpop.f32.mrb[46].mxu1 }
 0x834   :  { %v1717_v17 = vmul.f32 -1.442695, %v1577_v13  ;;  %v1534_v25 = vpop.f32.mrb[47].mxu0  ;;  %v1575_v27 = vpop.f32.mrb[47].mxu1 }
 0x835   :  { %v1718_v26 = vmul.f32 -1.442695, %v1578_v63  ;;  %v1719_v28 = vmul.f32 -1.442695, %v1580_v2 }
 0x836   :  { %1930 = vpow2.f32 %v1717_v17 }
 0x837   :  { %1932 = vpow2.f32 %v1718_v26 }
 0x838   :  { %1934 = vpow2.f32 %v1719_v28 }
 0x839   :  { %1936 = vtanh.f32 %v1579_v38 }
 0x840   :  { %v1931_v1 = vpop.eup %1930 }
 0x841   :  { %v1933_v29 = vpop.eup %1932  ;;  %v1584_v30 = vadd.f32 1.0, %v1931_v1 }
 0x842   :  { %v1590_v16 = vadd.f32 1.0, %v1933_v29  ;;  %v1935_v22 = vpop.eup %1934 }
 0x843   :  { %1938 = vrcp.f32 %v1584_v30  ;;  %v1937_v18 = vpop.eup %1936  ;;  %v1597_v45 = vadd.f32 1.0, %v1935_v22 }
 0x844   :  { %1940 = vrcp.f32 %v1590_v16 }
 0x845   :  { %1942 = vrcp.f32 %v1597_v45 }
 0x84d   :  { %v1939_v20 = vpop.eup %1938 }
 0x84e   :  { %v1941_v33 = vpop.eup %1940  ;;  %v1601_v37 = vmul.f32 %v1939_v20, %v1937_v18 }
 0x84f   :  { %v1600_v44 = vmul.f32 %v1941_v33, %v1484_v9  ;;  %v1943_v36 = vpop.eup %1942 }
 0x851   :  { %v1602_v35 = vadd.f32 %v1601_v37, %v1600_v44 }
 0x853   :  { %1944 = vtanh.f32 %v1602_v35  ;;  %1613 = vst [vmem:[%s2906_s8] sm:$0xff] %v1602_v35 }
 0x85d   :  { %v1945_v59 = vpop.eup %1944 }
 0x85e   :  { %v1604_v4 = vmul.f32 %v1945_v59, %v1943_v36 }
 0x860   :  { %1720 = vst [vmem:[%s2905_s6 + $0x38] sm:$0xff] %v1604_v4  ;;  %1612 = vst [vmem:[%s2907_s7] sm:$0xff] %v1604_v4 }

</bundles_post_ra>
